<compile_context>
chip_gen: v5e
topology: v5e:2x2
jax: 0.10.0
libtpu: 0.0.40
codegen_flags: <defaults>
</compile_context>

<pallas_src>
import functools

import jax
import jax.numpy as jnp
from jax.experimental import pallas as pl
from jax.experimental.pallas import tpu as pltpu

VMEM_SPEC = pl.BlockSpec(memory_space=pltpu.MemorySpace.VMEM)

N_CONV_LAYERS = 4
_REFS_PER_LAYER = 6  # dense_w(bf16), bias_f, gamma, beta, sel(F,C), selT(C,F)


# ------------------------------ fused kernel ------------------------------- #
def _fused_gen_kernel(*refs):
    """compose + discriminator(4 conv+BN+LeakyReLU, linear) + LSGAN gen loss."""
    x_ref, xo_ref, m_ref = refs[0], refs[1], refs[2]
    conv_refs = refs[3:3 + _REFS_PER_LAYER * N_CONV_LAYERS]
    lw_ref = refs[3 + _REFS_PER_LAYER * N_CONV_LAYERS]
    lb_ref = refs[4 + _REFS_PER_LAYER * N_CONV_LAYERS]
    fine_ref = refs[5 + _REFS_PER_LAYER * N_CONV_LAYERS]
    loss_ref = refs[6 + _REFS_PER_LAYER * N_CONV_LAYERS]

    # ---- compose: hard_mask = (mask.repeat(1,3,1,1) > 0.9); fine = x_out*hm + x*(1-hm)
    # Inputs are NCHW-flattened rows: x/x_out (B, 3*H*W), mask (B, H*W).
    hard = (m_ref[...] > 0.9).astype(jnp.float32)                    # (B, HW)
    hard3 = jnp.concatenate([hard, hard, hard], axis=1)              # (B, 3*HW) channel-major
    fine = xo_ref[...] * hard3 + x_ref[...] * (1.0 - hard3)          # f32, lane-dense
    fine_ref[...] = fine

    # ---- discriminator: 4 x (dense-conv GEMM + BN(train) + LeakyReLU(0.2)) ----
    h = fine
    for li in range(N_CONV_LAYERS):
        w_ref, b_ref, g_ref, be_ref, sel_ref, selT_ref = conv_refs[
            _REFS_PER_LAYER * li:_REFS_PER_LAYER * (li + 1)]
        # Conv (im2col structure pre-folded into a dense weight at init):
        # bf16 operands on the MXU, f32 accumulation.
        y = jnp.dot(h.astype(jnp.bfloat16), w_ref[...],
                    preferred_element_type=jnp.float32) + b_ref[...]     # (B, Fout)
        b_sz, f_out = y.shape
        c_out = sel_ref.shape[1]
        inv_m = 1.0 / float(b_sz * (f_out // c_out))                     # 1/(N*H*W) per channel
        # BatchNorm2d, training mode (biased batch stats per channel). Per-channel
        # grouping is done with tiny 0/1 selector matmuls (no in-kernel reshape).
        s1_c = jnp.sum(jnp.dot(y, sel_ref[...], preferred_element_type=jnp.float32),
                       axis=0, keepdims=True) * inv_m                    # mean, (1, C)
        s2_c = jnp.sum(jnp.dot(y * y, sel_ref[...], preferred_element_type=jnp.float32),
                       axis=0, keepdims=True) * inv_m                    # E[y^2], (1, C)
        var_c = s2_c - s1_c * s1_c                                       # biased variance
        scale_c = g_ref[...] * jax.lax.rsqrt(var_c + 1e-5)
        shift_c = be_ref[...] - s1_c * scale_c
        aff = jnp.dot(jnp.concatenate([scale_c, shift_c], axis=0), selT_ref[...],
                      preferred_element_type=jnp.float32)                # (2, Fout)
        yn = y * aff[0:1, :] + aff[1:2, :]
        h = jnp.where(yn >= 0, yn, 0.2 * yn)                             # LeakyReLU(0.2)

    # ---- linear head: features are already in torch's x.view(B,-1) order ----
    logits = jnp.sum(h * lw_ref[...], axis=1, keepdims=True) + lb_ref[...]   # (B, 1)

    # ---- LSGAN generator loss: MSE(dis(fake), 1) ----
    t = logits - 1.0
    loss_ref[...] = jnp.mean(t * t, keepdims=True)                       # (1, 1)


# --------------------------- init-time parameter prep ----------------------- #
def spectral_normalize(w_mat, key, n_iter=1, eps=1e-12):
    """PyTorch-style spectral norm on weight.reshape(Cout, -1) with deterministic u."""
    u = jax.random.normal(key, (w_mat.shape[0],), dtype=jnp.float32)
    u = u / (jnp.linalg.norm(u) + eps)
    v = None
    for _ in range(n_iter):
        v = w_mat.T @ u
        v = v / (jnp.linalg.norm(v) + eps)
        u = w_mat @ v
        u = u / (jnp.linalg.norm(u) + eps)
    sigma = u @ (w_mat @ v)
    return w_mat / sigma


def conv_to_dense(w_oihw, cin, hin, win, stride=2, pad=2):
    """Unroll Conv2d(k=5,s=2,p=2) into a dense (Cin*Hin*Win, Cout*Ho*Wo) matrix
    (NCHW flatten order on both sides). Runs once at init."""
    fin = cin * hin * win
    eye = jnp.eye(fin, dtype=jnp.float32).reshape(fin, cin, hin, win)
    out = jax.lax.conv_general_dilated(
        eye, w_oihw, window_strides=(stride, stride),
        padding=((pad, pad), (pad, pad)),
        dimension_numbers=("NCHW", "OIHW", "NCHW"))
    _, cout, ho, wo = out.shape
    return out.reshape(fin, cout * ho * wo), (ho, wo)


def init_discriminator_params(key, hidden_channels=8, patch_size=16, k=5):
    """Deterministic kaiming-style init (weight_init('kaiming'), biases = 0)."""
    chans = [3, hidden_channels, hidden_channels * 2, hidden_channels * 4,
             hidden_channels * 8]
    convs = []
    keys = jax.random.split(key, 5)
    hin = win = patch_size
    for i in range(N_CONV_LAYERS):
        cin, cout = chans[i], chans[i + 1]
        fan_in = cin * k * k
        kw, ku = jax.random.split(keys[i])
        w = jax.random.normal(kw, (cout, cin, k, k), jnp.float32) * jnp.sqrt(2.0 / fan_in)
        w_sn = spectral_normalize(w.reshape(cout, -1), ku).reshape(cout, cin, k, k)
        dense, (ho, wo) = conv_to_dense(w_sn, cin, hin, win)
        f_out = cout * ho * wo
        b_c = jnp.zeros((cout,), jnp.float32)
        b_f = jnp.repeat(b_c, ho * wo)[None, :]                       # (1, Fout), channel-major
        gamma = jnp.ones((1, cout), jnp.float32)                      # BatchNorm2d defaults
        beta = jnp.zeros((1, cout), jnp.float32)
        # 0/1 channel-selector matrices for in-kernel BN stats / broadcast
        sel = (jnp.arange(f_out)[:, None] // (ho * wo)
               == jnp.arange(cout)[None, :]).astype(jnp.float32)      # (Fout, C)
        selT = sel.T                                                  # (C, Fout)
        convs.append((dense.astype(jnp.bfloat16), b_f, gamma, beta, sel, selT))
        hin, win = ho, wo
    now_size = patch_size // 2 ** N_CONV_LAYERS
    feat = now_size * now_size * 8 * hidden_channels
    lw = jax.random.normal(keys[4], (1, feat), jnp.float32) * jnp.sqrt(2.0 / feat)
    lb = jnp.zeros((1, 1), jnp.float32)
    return {"convs": convs, "lin_w": lw, "lin_b": lb}


# ------------------------------- forward wrapper ---------------------------- #
def inpaint_model_gen_forward(params, x_nchw, x_out_nchw, result_mask_nchw, coarse_nchw):
    """InpaintModel.forward(x, update='gen') semantics.

    mask_generator / Coarse2FineModel generator are external modules not defined in
    this file; their outputs (coarse image, mask, x_out) are taken as inputs here.
    """
    # TODO(synk): mask_generator (init_nets) is an external network; its output mask is a stand-in input.
    # TODO(synk): Coarse2FineModel generator is external; x_out / offsets are stand-in inputs.
    B, C, H, W = x_nchw.shape
    f0 = C * H * W
    x_f = x_nchw.reshape(B, f0)                # free row-major NCHW flatten
    xo_f = x_out_nchw.reshape(B, f0)
    m_f = result_mask_nchw.reshape(B, H * W)

    inputs = [x_f, xo_f, m_f]
    for layer in params["convs"]:
        inputs.extend(layer)
    inputs.append(params["lin_w"])
    inputs.append(params["lin_b"])

    fine_flat, loss = pl.pallas_call(
        _fused_gen_kernel,
        out_shape=(
            jax.ShapeDtypeStruct((B, f0), jnp.float32),   # lane-dense fine image
            jax.ShapeDtypeStruct((1, 1), jnp.float32),    # LSGAN generator loss
        ),
        in_specs=[VMEM_SPEC] * len(inputs),
        out_specs=(VMEM_SPEC, VMEM_SPEC),
    )(*inputs)

    fine_image = fine_flat.reshape(B, C, H, W)   # free reshape back to NCHW
    gen_loss = loss[0, 0]
    offsets = None
    return (x_out_nchw, gen_loss, fine_image, result_mask_nchw, coarse_nchw, offsets)


if __name__ == "__main__":
    key = jax.random.PRNGKey(0)
    k_p, k_x, k_xo, k_m, k_c = jax.random.split(key, 5)

    B, H, W = 2, 16, 16                      # patch_size = 16 -> 16 / 2**4 = 1
    hidden_channels = 8                      # opt['gen']['hidden_channels']

    params = init_discriminator_params(k_p, hidden_channels=hidden_channels, patch_size=H)

    x = jax.random.normal(k_x, (B, 3, H, W), jnp.float32)          # input image (NCHW)
    x_out = jax.random.normal(k_xo, (B, 3, H, W), jnp.float32)     # generator output stand-in
    result_mask = jax.random.uniform(k_m, (B, 1, H, W), jnp.float32)
    coarse = jax.random.normal(k_c, (B, 3, H, W), jnp.float32)     # mask-generator coarse stand-in

    fwd = jax.jit(functools.partial(inpaint_model_gen_forward, params))
    x_out_r, gen_loss, fine_image, result_mask_r, coarse_r, offsets = fwd(
        x, x_out, result_mask, coarse)
    jax.block_until_ready((gen_loss, fine_image))

    assert fine_image.shape == (B, 3, H, W)
    assert gen_loss.shape == ()
    assert bool(jnp.isfinite(gen_loss))
    print("KERNEL_OK")
</pallas_src>

<mosaic_0001>
module attributes {stable_mosaic.version = 11 : i64} {
  func.func @_fused_gen_kernel(%arg0: memref<2x768xf32, #tpu.memory_space<vmem>>, %arg1: memref<2x768xf32, #tpu.memory_space<vmem>>, %arg2: memref<2x256xf32, #tpu.memory_space<vmem>>, %arg3: memref<768x512xbf16, #tpu.memory_space<vmem>>, %arg4: memref<1x512xf32, #tpu.memory_space<vmem>>, %arg5: memref<1x8xf32, #tpu.memory_space<vmem>>, %arg6: memref<1x8xf32, #tpu.memory_space<vmem>>, %arg7: memref<512x8xf32, #tpu.memory_space<vmem>>, %arg8: memref<8x512xf32, #tpu.memory_space<vmem>>, %arg9: memref<512x256xbf16, #tpu.memory_space<vmem>>, %arg10: memref<1x256xf32, #tpu.memory_space<vmem>>, %arg11: memref<1x16xf32, #tpu.memory_space<vmem>>, %arg12: memref<1x16xf32, #tpu.memory_space<vmem>>, %arg13: memref<256x16xf32, #tpu.memory_space<vmem>>, %arg14: memref<16x256xf32, #tpu.memory_space<vmem>>, %arg15: memref<256x128xbf16, #tpu.memory_space<vmem>>, %arg16: memref<1x128xf32, #tpu.memory_space<vmem>>, %arg17: memref<1x32xf32, #tpu.memory_space<vmem>>, %arg18: memref<1x32xf32, #tpu.memory_space<vmem>>, %arg19: memref<128x32xf32, #tpu.memory_space<vmem>>, %arg20: memref<32x128xf32, #tpu.memory_space<vmem>>, %arg21: memref<128x64xbf16, #tpu.memory_space<vmem>>, %arg22: memref<1x64xf32, #tpu.memory_space<vmem>>, %arg23: memref<1x64xf32, #tpu.memory_space<vmem>>, %arg24: memref<1x64xf32, #tpu.memory_space<vmem>>, %arg25: memref<64x64xf32, #tpu.memory_space<vmem>>, %arg26: memref<64x64xf32, #tpu.memory_space<vmem>>, %arg27: memref<1x64xf32, #tpu.memory_space<vmem>>, %arg28: memref<1x1xf32, #tpu.memory_space<vmem>>, %arg29: memref<2x768xf32, #tpu.memory_space<vmem>>, %arg30: memref<1x1xf32, #tpu.memory_space<vmem>>) attributes {dimension_semantics = [], scalar_prefetch = 0 : i64, scratch_operands = 0 : i64, tpu.core_type = #tpu.core_type<tc>} {
    %c0 = arith.constant 0 : index
    %c0_0 = arith.constant 0 : index
    %0 = vector.load %arg2[%c0, %c0_0] : memref<2x256xf32, #tpu.memory_space<vmem>>, vector<2x256xf32>
    %cst = arith.constant 0.899999976 : f32
    %1 = vector.broadcast %cst : f32 to vector<2x256xf32>
    %2 = arith.cmpf ogt, %0, %1 : vector<2x256xf32>
    %3 = arith.extui %2 : vector<2x256xi1> to vector<2x256xi32>
    %4 = arith.sitofp %3 : vector<2x256xi32> to vector<2x256xf32>
    %5 = tpu.concatenate %4, %4, %4 in 1 : vector<2x256xf32>, vector<2x256xf32>, vector<2x256xf32> -> vector<2x768xf32>
    %c0_1 = arith.constant 0 : index
    %c0_2 = arith.constant 0 : index
    %6 = vector.load %arg1[%c0_1, %c0_2] : memref<2x768xf32, #tpu.memory_space<vmem>>, vector<2x768xf32>
    %7 = arith.mulf %6, %5 : vector<2x768xf32>
    %c0_3 = arith.constant 0 : index
    %c0_4 = arith.constant 0 : index
    %8 = vector.load %arg0[%c0_3, %c0_4] : memref<2x768xf32, #tpu.memory_space<vmem>>, vector<2x768xf32>
    %cst_5 = arith.constant 1.000000e+00 : f32
    %9 = vector.broadcast %cst_5 : f32 to vector<2x768xf32>
    %10 = arith.subf %9, %5 : vector<2x768xf32>
    %11 = arith.mulf %8, %10 : vector<2x768xf32>
    %12 = arith.addf %7, %11 : vector<2x768xf32>
    %c0_6 = arith.constant 0 : index
    %c0_7 = arith.constant 0 : index
    %13 = vector.load %arg29[%c0_6, %c0_7] : memref<2x768xf32, #tpu.memory_space<vmem>>, vector<2x768xf32>
    tpu.vector_store %arg29[%c0_6, %c0_7], %12 {strides = array<i32>} : memref<2x768xf32, #tpu.memory_space<vmem>>, vector<2x768xf32>,
    %14 = arith.truncf %12 : vector<2x768xf32> to vector<2x768xbf16>
    %c0_8 = arith.constant 0 : index
    %c0_9 = arith.constant 0 : index
    %15 = vector.load %arg3[%c0_8, %c0_9] : memref<768x512xbf16, #tpu.memory_space<vmem>>, vector<768x512xbf16>
    %cst_10 = arith.constant dense<0.000000e+00> : vector<2x512xf32>
    %16 = tpu.matmul %14, %15, %cst_10 {dimension_numbers = #tpu.dot_dimension_numbers<[1], [0], [0], [1], [0, 0, 1, 1], [], []>} : vector<2x768xbf16>, vector<768x512xbf16>, vector<2x512xf32> -> vector<2x512xf32>
    %c0_11 = arith.constant 0 : index
    %c0_12 = arith.constant 0 : index
    %17 = vector.load %arg4[%c0_11, %c0_12] : memref<1x512xf32, #tpu.memory_space<vmem>>, vector<1x512xf32>
    %18 = vector.broadcast %17 : vector<1x512xf32> to vector<2x512xf32>
    %19 = arith.addf %16, %18 : vector<2x512xf32>
    %c0_13 = arith.constant 0 : index
    %c0_14 = arith.constant 0 : index
    %20 = vector.load %arg7[%c0_13, %c0_14] : memref<512x8xf32, #tpu.memory_space<vmem>>, vector<512x8xf32>
    %cst_15 = arith.constant dense<0.000000e+00> : vector<2x8xf32>
    %21 = tpu.matmul %19, %20, %cst_15 {dimension_numbers = #tpu.dot_dimension_numbers<[1], [0], [0], [1], [0, 0, 1, 1], [], []>} : vector<2x512xf32>, vector<512x8xf32>, vector<2x8xf32> -> vector<2x8xf32>
    %cst_16 = arith.constant dense<0.000000e+00> : vector<8xf32>
    %22 = vector.multi_reduction <add>, %21, %cst_16 [0] : vector<2x8xf32> to vector<8xf32>
    %23 = vector.shape_cast %22 : vector<8xf32> to vector<1x8xf32>
    %cst_17 = arith.constant 7.812500e-03 : f32
    %24 = vector.broadcast %cst_17 : f32 to vector<1x8xf32>
    %25 = arith.mulf %23, %24 : vector<1x8xf32>
    %26 = arith.mulf %19, %19 : vector<2x512xf32>
    %c0_18 = arith.constant 0 : index
    %c0_19 = arith.constant 0 : index
    %27 = vector.load %arg7[%c0_18, %c0_19] : memref<512x8xf32, #tpu.memory_space<vmem>>, vector<512x8xf32>
    %cst_20 = arith.constant dense<0.000000e+00> : vector<2x8xf32>
    %28 = tpu.matmul %26, %27, %cst_20 {dimension_numbers = #tpu.dot_dimension_numbers<[1], [0], [0], [1], [0, 0, 1, 1], [], []>} : vector<2x512xf32>, vector<512x8xf32>, vector<2x8xf32> -> vector<2x8xf32>
    %cst_21 = arith.constant dense<0.000000e+00> : vector<8xf32>
    %29 = vector.multi_reduction <add>, %28, %cst_21 [0] : vector<2x8xf32> to vector<8xf32>
    %30 = vector.shape_cast %29 : vector<8xf32> to vector<1x8xf32>
    %cst_22 = arith.constant 7.812500e-03 : f32
    %31 = vector.broadcast %cst_22 : f32 to vector<1x8xf32>
    %32 = arith.mulf %30, %31 : vector<1x8xf32>
    %33 = arith.mulf %25, %25 : vector<1x8xf32>
    %34 = arith.subf %32, %33 : vector<1x8xf32>
    %c0_23 = arith.constant 0 : index
    %c0_24 = arith.constant 0 : index
    %35 = vector.load %arg5[%c0_23, %c0_24] : memref<1x8xf32, #tpu.memory_space<vmem>>, vector<1x8xf32>
    %cst_25 = arith.constant 9.99999974E-6 : f32
    %36 = vector.broadcast %cst_25 : f32 to vector<1x8xf32>
    %37 = arith.addf %34, %36 : vector<1x8xf32>
    %38 = math.rsqrt %37 : vector<1x8xf32>
    %39 = arith.mulf %35, %38 : vector<1x8xf32>
    %c0_26 = arith.constant 0 : index
    %c0_27 = arith.constant 0 : index
    %40 = vector.load %arg6[%c0_26, %c0_27] : memref<1x8xf32, #tpu.memory_space<vmem>>, vector<1x8xf32>
    %41 = arith.mulf %25, %39 : vector<1x8xf32>
    %42 = arith.subf %40, %41 : vector<1x8xf32>
    %43 = tpu.concatenate %39, %42 in 0 : vector<1x8xf32>, vector<1x8xf32> -> vector<2x8xf32>
    %c0_28 = arith.constant 0 : index
    %c0_29 = arith.constant 0 : index
    %44 = vector.load %arg8[%c0_28, %c0_29] : memref<8x512xf32, #tpu.memory_space<vmem>>, vector<8x512xf32>
    %cst_30 = arith.constant dense<0.000000e+00> : vector<2x512xf32>
    %45 = tpu.matmul %43, %44, %cst_30 {dimension_numbers = #tpu.dot_dimension_numbers<[1], [0], [0], [1], [0, 0, 1, 1], [], []>} : vector<2x8xf32>, vector<8x512xf32>, vector<2x512xf32> -> vector<2x512xf32>
    %46 = vector.extract_strided_slice %45 {offsets = [0, 0], sizes = [1, 512], strides = [1, 1]} : vector<2x512xf32> to vector<1x512xf32>
    %47 = vector.broadcast %46 : vector<1x512xf32> to vector<2x512xf32>
    %48 = arith.mulf %19, %47 : vector<2x512xf32>
    %49 = vector.extract_strided_slice %45 {offsets = [1, 0], sizes = [1, 512], strides = [1, 1]} : vector<2x512xf32> to vector<1x512xf32>
    %50 = vector.broadcast %49 : vector<1x512xf32> to vector<2x512xf32>
    %51 = arith.addf %48, %50 : vector<2x512xf32>
    %cst_31 = arith.constant 0.000000e+00 : f32
    %52 = vector.broadcast %cst_31 : f32 to vector<2x512xf32>
    %53 = arith.cmpf oge, %51, %52 : vector<2x512xf32>
    %cst_32 = arith.constant 2.000000e-01 : f32
    %54 = vector.broadcast %cst_32 : f32 to vector<2x512xf32>
    %55 = arith.mulf %54, %51 : vector<2x512xf32>
    %56 = arith.select %53, %51, %55 : vector<2x512xi1>, vector<2x512xf32>
    %57 = arith.truncf %56 : vector<2x512xf32> to vector<2x512xbf16>
    %c0_33 = arith.constant 0 : index
    %c0_34 = arith.constant 0 : index
    %58 = vector.load %arg9[%c0_33, %c0_34] : memref<512x256xbf16, #tpu.memory_space<vmem>>, vector<512x256xbf16>
    %cst_35 = arith.constant dense<0.000000e+00> : vector<2x256xf32>
    %59 = tpu.matmul %57, %58, %cst_35 {dimension_numbers = #tpu.dot_dimension_numbers<[1], [0], [0], [1], [0, 0, 1, 1], [], []>} : vector<2x512xbf16>, vector<512x256xbf16>, vector<2x256xf32> -> vector<2x256xf32>
    %c0_36 = arith.constant 0 : index
    %c0_37 = arith.constant 0 : index
    %60 = vector.load %arg10[%c0_36, %c0_37] : memref<1x256xf32, #tpu.memory_space<vmem>>, vector<1x256xf32>
    %61 = vector.broadcast %60 : vector<1x256xf32> to vector<2x256xf32>
    %62 = arith.addf %59, %61 : vector<2x256xf32>
    %c0_38 = arith.constant 0 : index
    %c0_39 = arith.constant 0 : index
    %63 = vector.load %arg13[%c0_38, %c0_39] : memref<256x16xf32, #tpu.memory_space<vmem>>, vector<256x16xf32>
    %cst_40 = arith.constant dense<0.000000e+00> : vector<2x16xf32>
    %64 = tpu.matmul %62, %63, %cst_40 {dimension_numbers = #tpu.dot_dimension_numbers<[1], [0], [0], [1], [0, 0, 1, 1], [], []>} : vector<2x256xf32>, vector<256x16xf32>, vector<2x16xf32> -> vector<2x16xf32>
    %cst_41 = arith.constant dense<0.000000e+00> : vector<16xf32>
    %65 = vector.multi_reduction <add>, %64, %cst_41 [0] : vector<2x16xf32> to vector<16xf32>
    %66 = vector.shape_cast %65 : vector<16xf32> to vector<1x16xf32>
    %cst_42 = arith.constant 3.125000e-02 : f32
    %67 = vector.broadcast %cst_42 : f32 to vector<1x16xf32>
    %68 = arith.mulf %66, %67 : vector<1x16xf32>
    %69 = arith.mulf %62, %62 : vector<2x256xf32>
    %c0_43 = arith.constant 0 : index
    %c0_44 = arith.constant 0 : index
    %70 = vector.load %arg13[%c0_43, %c0_44] : memref<256x16xf32, #tpu.memory_space<vmem>>, vector<256x16xf32>
    %cst_45 = arith.constant dense<0.000000e+00> : vector<2x16xf32>
    %71 = tpu.matmul %69, %70, %cst_45 {dimension_numbers = #tpu.dot_dimension_numbers<[1], [0], [0], [1], [0, 0, 1, 1], [], []>} : vector<2x256xf32>, vector<256x16xf32>, vector<2x16xf32> -> vector<2x16xf32>
    %cst_46 = arith.constant dense<0.000000e+00> : vector<16xf32>
    %72 = vector.multi_reduction <add>, %71, %cst_46 [0] : vector<2x16xf32> to vector<16xf32>
    %73 = vector.shape_cast %72 : vector<16xf32> to vector<1x16xf32>
    %cst_47 = arith.constant 3.125000e-02 : f32
    %74 = vector.broadcast %cst_47 : f32 to vector<1x16xf32>
    %75 = arith.mulf %73, %74 : vector<1x16xf32>
    %76 = arith.mulf %68, %68 : vector<1x16xf32>
    %77 = arith.subf %75, %76 : vector<1x16xf32>
    %c0_48 = arith.constant 0 : index
    %c0_49 = arith.constant 0 : index
    %78 = vector.load %arg11[%c0_48, %c0_49] : memref<1x16xf32, #tpu.memory_space<vmem>>, vector<1x16xf32>
    %cst_50 = arith.constant 9.99999974E-6 : f32
    %79 = vector.broadcast %cst_50 : f32 to vector<1x16xf32>
    %80 = arith.addf %77, %79 : vector<1x16xf32>
    %81 = math.rsqrt %80 : vector<1x16xf32>
    %82 = arith.mulf %78, %81 : vector<1x16xf32>
    %c0_51 = arith.constant 0 : index
    %c0_52 = arith.constant 0 : index
    %83 = vector.load %arg12[%c0_51, %c0_52] : memref<1x16xf32, #tpu.memory_space<vmem>>, vector<1x16xf32>
    %84 = arith.mulf %68, %82 : vector<1x16xf32>
    %85 = arith.subf %83, %84 : vector<1x16xf32>
    %86 = tpu.concatenate %82, %85 in 0 : vector<1x16xf32>, vector<1x16xf32> -> vector<2x16xf32>
    %c0_53 = arith.constant 0 : index
    %c0_54 = arith.constant 0 : index
    %87 = vector.load %arg14[%c0_53, %c0_54] : memref<16x256xf32, #tpu.memory_space<vmem>>, vector<16x256xf32>
    %cst_55 = arith.constant dense<0.000000e+00> : vector<2x256xf32>
    %88 = tpu.matmul %86, %87, %cst_55 {dimension_numbers = #tpu.dot_dimension_numbers<[1], [0], [0], [1], [0, 0, 1, 1], [], []>} : vector<2x16xf32>, vector<16x256xf32>, vector<2x256xf32> -> vector<2x256xf32>
    %89 = vector.extract_strided_slice %88 {offsets = [0, 0], sizes = [1, 256], strides = [1, 1]} : vector<2x256xf32> to vector<1x256xf32>
    %90 = vector.broadcast %89 : vector<1x256xf32> to vector<2x256xf32>
    %91 = arith.mulf %62, %90 : vector<2x256xf32>
    %92 = vector.extract_strided_slice %88 {offsets = [1, 0], sizes = [1, 256], strides = [1, 1]} : vector<2x256xf32> to vector<1x256xf32>
    %93 = vector.broadcast %92 : vector<1x256xf32> to vector<2x256xf32>
    %94 = arith.addf %91, %93 : vector<2x256xf32>
    %cst_56 = arith.constant 0.000000e+00 : f32
    %95 = vector.broadcast %cst_56 : f32 to vector<2x256xf32>
    %96 = arith.cmpf oge, %94, %95 : vector<2x256xf32>
    %cst_57 = arith.constant 2.000000e-01 : f32
    %97 = vector.broadcast %cst_57 : f32 to vector<2x256xf32>
    %98 = arith.mulf %97, %94 : vector<2x256xf32>
    %99 = arith.select %96, %94, %98 : vector<2x256xi1>, vector<2x256xf32>
    %100 = arith.truncf %99 : vector<2x256xf32> to vector<2x256xbf16>
    %c0_58 = arith.constant 0 : index
    %c0_59 = arith.constant 0 : index
    %101 = vector.load %arg15[%c0_58, %c0_59] : memref<256x128xbf16, #tpu.memory_space<vmem>>, vector<256x128xbf16>
    %cst_60 = arith.constant dense<0.000000e+00> : vector<2x128xf32>
    %102 = tpu.matmul %100, %101, %cst_60 {dimension_numbers = #tpu.dot_dimension_numbers<[1], [0], [0], [1], [0, 0, 1, 1], [], []>} : vector<2x256xbf16>, vector<256x128xbf16>, vector<2x128xf32> -> vector<2x128xf32>
    %c0_61 = arith.constant 0 : index
    %c0_62 = arith.constant 0 : index
    %103 = vector.load %arg16[%c0_61, %c0_62] : memref<1x128xf32, #tpu.memory_space<vmem>>, vector<1x128xf32>
    %104 = vector.broadcast %103 : vector<1x128xf32> to vector<2x128xf32>
    %105 = arith.addf %102, %104 : vector<2x128xf32>
    %c0_63 = arith.constant 0 : index
    %c0_64 = arith.constant 0 : index
    %106 = vector.load %arg19[%c0_63, %c0_64] : memref<128x32xf32, #tpu.memory_space<vmem>>, vector<128x32xf32>
    %cst_65 = arith.constant dense<0.000000e+00> : vector<2x32xf32>
    %107 = tpu.matmul %105, %106, %cst_65 {dimension_numbers = #tpu.dot_dimension_numbers<[1], [0], [0], [1], [0, 0, 1, 1], [], []>} : vector<2x128xf32>, vector<128x32xf32>, vector<2x32xf32> -> vector<2x32xf32>
    %cst_66 = arith.constant dense<0.000000e+00> : vector<32xf32>
    %108 = vector.multi_reduction <add>, %107, %cst_66 [0] : vector<2x32xf32> to vector<32xf32>
    %109 = vector.shape_cast %108 : vector<32xf32> to vector<1x32xf32>
    %cst_67 = arith.constant 1.250000e-01 : f32
    %110 = vector.broadcast %cst_67 : f32 to vector<1x32xf32>
    %111 = arith.mulf %109, %110 : vector<1x32xf32>
    %112 = arith.mulf %105, %105 : vector<2x128xf32>
    %c0_68 = arith.constant 0 : index
    %c0_69 = arith.constant 0 : index
    %113 = vector.load %arg19[%c0_68, %c0_69] : memref<128x32xf32, #tpu.memory_space<vmem>>, vector<128x32xf32>
    %cst_70 = arith.constant dense<0.000000e+00> : vector<2x32xf32>
    %114 = tpu.matmul %112, %113, %cst_70 {dimension_numbers = #tpu.dot_dimension_numbers<[1], [0], [0], [1], [0, 0, 1, 1], [], []>} : vector<2x128xf32>, vector<128x32xf32>, vector<2x32xf32> -> vector<2x32xf32>
    %cst_71 = arith.constant dense<0.000000e+00> : vector<32xf32>
    %115 = vector.multi_reduction <add>, %114, %cst_71 [0] : vector<2x32xf32> to vector<32xf32>
    %116 = vector.shape_cast %115 : vector<32xf32> to vector<1x32xf32>
    %cst_72 = arith.constant 1.250000e-01 : f32
    %117 = vector.broadcast %cst_72 : f32 to vector<1x32xf32>
    %118 = arith.mulf %116, %117 : vector<1x32xf32>
    %119 = arith.mulf %111, %111 : vector<1x32xf32>
    %120 = arith.subf %118, %119 : vector<1x32xf32>
    %c0_73 = arith.constant 0 : index
    %c0_74 = arith.constant 0 : index
    %121 = vector.load %arg17[%c0_73, %c0_74] : memref<1x32xf32, #tpu.memory_space<vmem>>, vector<1x32xf32>
    %cst_75 = arith.constant 9.99999974E-6 : f32
    %122 = vector.broadcast %cst_75 : f32 to vector<1x32xf32>
    %123 = arith.addf %120, %122 : vector<1x32xf32>
    %124 = math.rsqrt %123 : vector<1x32xf32>
    %125 = arith.mulf %121, %124 : vector<1x32xf32>
    %c0_76 = arith.constant 0 : index
    %c0_77 = arith.constant 0 : index
    %126 = vector.load %arg18[%c0_76, %c0_77] : memref<1x32xf32, #tpu.memory_space<vmem>>, vector<1x32xf32>
    %127 = arith.mulf %111, %125 : vector<1x32xf32>
    %128 = arith.subf %126, %127 : vector<1x32xf32>
    %129 = tpu.concatenate %125, %128 in 0 : vector<1x32xf32>, vector<1x32xf32> -> vector<2x32xf32>
    %c0_78 = arith.constant 0 : index
    %c0_79 = arith.constant 0 : index
    %130 = vector.load %arg20[%c0_78, %c0_79] : memref<32x128xf32, #tpu.memory_space<vmem>>, vector<32x128xf32>
    %cst_80 = arith.constant dense<0.000000e+00> : vector<2x128xf32>
    %131 = tpu.matmul %129, %130, %cst_80 {dimension_numbers = #tpu.dot_dimension_numbers<[1], [0], [0], [1], [0, 0, 1, 1], [], []>} : vector<2x32xf32>, vector<32x128xf32>, vector<2x128xf32> -> vector<2x128xf32>
    %132 = vector.extract_strided_slice %131 {offsets = [0, 0], sizes = [1, 128], strides = [1, 1]} : vector<2x128xf32> to vector<1x128xf32>
    %133 = vector.broadcast %132 : vector<1x128xf32> to vector<2x128xf32>
    %134 = arith.mulf %105, %133 : vector<2x128xf32>
    %135 = vector.extract_strided_slice %131 {offsets = [1, 0], sizes = [1, 128], strides = [1, 1]} : vector<2x128xf32> to vector<1x128xf32>
    %136 = vector.broadcast %135 : vector<1x128xf32> to vector<2x128xf32>
    %137 = arith.addf %134, %136 : vector<2x128xf32>
    %cst_81 = arith.constant 0.000000e+00 : f32
    %138 = vector.broadcast %cst_81 : f32 to vector<2x128xf32>
    %139 = arith.cmpf oge, %137, %138 : vector<2x128xf32>
    %cst_82 = arith.constant 2.000000e-01 : f32
    %140 = vector.broadcast %cst_82 : f32 to vector<2x128xf32>
    %141 = arith.mulf %140, %137 : vector<2x128xf32>
    %142 = arith.select %139, %137, %141 : vector<2x128xi1>, vector<2x128xf32>
    %143 = arith.truncf %142 : vector<2x128xf32> to vector<2x128xbf16>
    %c0_83 = arith.constant 0 : index
    %c0_84 = arith.constant 0 : index
    %144 = vector.load %arg21[%c0_83, %c0_84] : memref<128x64xbf16, #tpu.memory_space<vmem>>, vector<128x64xbf16>
    %cst_85 = arith.constant dense<0.000000e+00> : vector<2x64xf32>
    %145 = tpu.matmul %143, %144, %cst_85 {dimension_numbers = #tpu.dot_dimension_numbers<[1], [0], [0], [1], [0, 0, 1, 1], [], []>} : vector<2x128xbf16>, vector<128x64xbf16>, vector<2x64xf32> -> vector<2x64xf32>
    %c0_86 = arith.constant 0 : index
    %c0_87 = arith.constant 0 : index
    %146 = vector.load %arg22[%c0_86, %c0_87] : memref<1x64xf32, #tpu.memory_space<vmem>>, vector<1x64xf32>
    %147 = vector.broadcast %146 : vector<1x64xf32> to vector<2x64xf32>
    %148 = arith.addf %145, %147 : vector<2x64xf32>
    %c0_88 = arith.constant 0 : index
    %c0_89 = arith.constant 0 : index
    %149 = vector.load %arg25[%c0_88, %c0_89] : memref<64x64xf32, #tpu.memory_space<vmem>>, vector<64x64xf32>
    %cst_90 = arith.constant dense<0.000000e+00> : vector<2x64xf32>
    %150 = tpu.matmul %148, %149, %cst_90 {dimension_numbers = #tpu.dot_dimension_numbers<[1], [0], [0], [1], [0, 0, 1, 1], [], []>} : vector<2x64xf32>, vector<64x64xf32>, vector<2x64xf32> -> vector<2x64xf32>
    %cst_91 = arith.constant dense<0.000000e+00> : vector<64xf32>
    %151 = vector.multi_reduction <add>, %150, %cst_91 [0] : vector<2x64xf32> to vector<64xf32>
    %152 = vector.shape_cast %151 : vector<64xf32> to vector<1x64xf32>
    %cst_92 = arith.constant 5.000000e-01 : f32
    %153 = vector.broadcast %cst_92 : f32 to vector<1x64xf32>
    %154 = arith.mulf %152, %153 : vector<1x64xf32>
    %155 = arith.mulf %148, %148 : vector<2x64xf32>
    %c0_93 = arith.constant 0 : index
    %c0_94 = arith.constant 0 : index
    %156 = vector.load %arg25[%c0_93, %c0_94] : memref<64x64xf32, #tpu.memory_space<vmem>>, vector<64x64xf32>
    %cst_95 = arith.constant dense<0.000000e+00> : vector<2x64xf32>
    %157 = tpu.matmul %155, %156, %cst_95 {dimension_numbers = #tpu.dot_dimension_numbers<[1], [0], [0], [1], [0, 0, 1, 1], [], []>} : vector<2x64xf32>, vector<64x64xf32>, vector<2x64xf32> -> vector<2x64xf32>
    %cst_96 = arith.constant dense<0.000000e+00> : vector<64xf32>
    %158 = vector.multi_reduction <add>, %157, %cst_96 [0] : vector<2x64xf32> to vector<64xf32>
    %159 = vector.shape_cast %158 : vector<64xf32> to vector<1x64xf32>
    %cst_97 = arith.constant 5.000000e-01 : f32
    %160 = vector.broadcast %cst_97 : f32 to vector<1x64xf32>
    %161 = arith.mulf %159, %160 : vector<1x64xf32>
    %162 = arith.mulf %154, %154 : vector<1x64xf32>
    %163 = arith.subf %161, %162 : vector<1x64xf32>
    %c0_98 = arith.constant 0 : index
    %c0_99 = arith.constant 0 : index
    %164 = vector.load %arg23[%c0_98, %c0_99] : memref<1x64xf32, #tpu.memory_space<vmem>>, vector<1x64xf32>
    %cst_100 = arith.constant 9.99999974E-6 : f32
    %165 = vector.broadcast %cst_100 : f32 to vector<1x64xf32>
    %166 = arith.addf %163, %165 : vector<1x64xf32>
    %167 = math.rsqrt %166 : vector<1x64xf32>
    %168 = arith.mulf %164, %167 : vector<1x64xf32>
    %c0_101 = arith.constant 0 : index
    %c0_102 = arith.constant 0 : index
    %169 = vector.load %arg24[%c0_101, %c0_102] : memref<1x64xf32, #tpu.memory_space<vmem>>, vector<1x64xf32>
    %170 = arith.mulf %154, %168 : vector<1x64xf32>
    %171 = arith.subf %169, %170 : vector<1x64xf32>
    %172 = tpu.concatenate %168, %171 in 0 : vector<1x64xf32>, vector<1x64xf32> -> vector<2x64xf32>
    %c0_103 = arith.constant 0 : index
    %c0_104 = arith.constant 0 : index
    %173 = vector.load %arg26[%c0_103, %c0_104] : memref<64x64xf32, #tpu.memory_space<vmem>>, vector<64x64xf32>
    %cst_105 = arith.constant dense<0.000000e+00> : vector<2x64xf32>
    %174 = tpu.matmul %172, %173, %cst_105 {dimension_numbers = #tpu.dot_dimension_numbers<[1], [0], [0], [1], [0, 0, 1, 1], [], []>} : vector<2x64xf32>, vector<64x64xf32>, vector<2x64xf32> -> vector<2x64xf32>
    %175 = vector.extract_strided_slice %174 {offsets = [0, 0], sizes = [1, 64], strides = [1, 1]} : vector<2x64xf32> to vector<1x64xf32>
    %176 = vector.broadcast %175 : vector<1x64xf32> to vector<2x64xf32>
    %177 = arith.mulf %148, %176 : vector<2x64xf32>
    %178 = vector.extract_strided_slice %174 {offsets = [1, 0], sizes = [1, 64], strides = [1, 1]} : vector<2x64xf32> to vector<1x64xf32>
    %179 = vector.broadcast %178 : vector<1x64xf32> to vector<2x64xf32>
    %180 = arith.addf %177, %179 : vector<2x64xf32>
    %cst_106 = arith.constant 0.000000e+00 : f32
    %181 = vector.broadcast %cst_106 : f32 to vector<2x64xf32>
    %182 = arith.cmpf oge, %180, %181 : vector<2x64xf32>
    %cst_107 = arith.constant 2.000000e-01 : f32
    %183 = vector.broadcast %cst_107 : f32 to vector<2x64xf32>
    %184 = arith.mulf %183, %180 : vector<2x64xf32>
    %185 = arith.select %182, %180, %184 : vector<2x64xi1>, vector<2x64xf32>
    %c0_108 = arith.constant 0 : index
    %c0_109 = arith.constant 0 : index
    %186 = vector.load %arg27[%c0_108, %c0_109] : memref<1x64xf32, #tpu.memory_space<vmem>>, vector<1x64xf32>
    %187 = vector.broadcast %186 : vector<1x64xf32> to vector<2x64xf32>
    %188 = arith.mulf %185, %187 : vector<2x64xf32>
    %cst_110 = arith.constant dense<0.000000e+00> : vector<2xf32>
    %189 = vector.multi_reduction <add>, %188, %cst_110 [1] : vector<2x64xf32> to vector<2xf32>
    %190 = vector.shape_cast %189 : vector<2xf32> to vector<2x1xf32>
    %c0_111 = arith.constant 0 : index
    %c0_112 = arith.constant 0 : index
    %191 = vector.load %arg28[%c0_111, %c0_112] : memref<1x1xf32, #tpu.memory_space<vmem>>, vector<1x1xf32>
    %192 = vector.broadcast %191 : vector<1x1xf32> to vector<2x1xf32>
    %193 = arith.addf %190, %192 : vector<2x1xf32>
    %cst_113 = arith.constant 1.000000e+00 : f32
    %194 = vector.broadcast %cst_113 : f32 to vector<2x1xf32>
    %195 = arith.subf %193, %194 : vector<2x1xf32>
    %196 = arith.mulf %195, %195 : vector<2x1xf32>
    %197 = vector.shape_cast %196 : vector<2x1xf32> to vector<1x2x1xf32>
    %cst_114 = arith.constant dense<0.000000e+00> : vector<1xf32>
    %198 = vector.multi_reduction <add>, %197, %cst_114 [1, 2] : vector<1x2x1xf32> to vector<1xf32>
    %199 = vector.shape_cast %198 : vector<1xf32> to vector<1x1x1xf32>
    %200 = vector.extract %199[0, 0, 0] : f32 from vector<1x1x1xf32>
    %201 = vector.broadcast %200 : f32 to vector<1x1xf32>
    %cst_115 = arith.constant 2.000000e+00 : f32
    %202 = vector.broadcast %cst_115 : f32 to vector<1x1xf32>
    %203 = arith.divf %201, %202 : vector<1x1xf32>
    %c0_116 = arith.constant 0 : index
    %c0_117 = arith.constant 0 : index
    %204 = vector.load %arg30[%c0_116, %c0_117] : memref<1x1xf32, #tpu.memory_space<vmem>>, vector<1x1xf32>
    tpu.vector_store %arg30[%c0_116, %c0_117], %203 {strides = array<i32>} : memref<1x1xf32, #tpu.memory_space<vmem>>, vector<1x1xf32>,
    return
  }
}

</mosaic_0001>

<bundles_post_ra>
// kernel: inpaint_model_gen_forward.1
= control target key start
LH: loop header
LB: loop body
LE: loop exit
PB: predicated region body
PF: predicated region fallthrough
CT: control target
= control target key end

     0   :  { %s5297_s6 = smov 1   ;;  %s5298_s10 = smov 2   ;;  %s5970_s0 = inlined_call_operand.smem [shape: u32[31], index: -1, kind: input, shape index: {}] }
   0x1   :  { %s5354_s5 = sld [smem:[%s5970_s0]]   ;;  %s5299_s14 = smov 3  }
   0x2   :  { %s5359_s9 = sld [smem:[%s5970_s0 + %s5297_s6]]   ;;  %s5300_s18 = smov 4  }
   0x3   :  { %s5364_s13 = sld [smem:[%s5970_s0 + %s5298_s10]]   ;;  %s5301_s22 = smov 5  }
   0x4   :  { %s5369_s17 = sld [smem:[%s5970_s0 + %s5299_s14]]   ;;  %s5302_s26 = smov 6  }
   0x5   :  { %s5374_s21 = sld [smem:[%s5970_s0 + %s5300_s18]]   ;;  %s5303_s30 = smov 7  }
   0x6   :  { %s5379_s25 = sld [smem:[%s5970_s0 + %s5301_s22]]   ;;  %s5304_s4 = smov 8  }
   0x7   :  { %s5384_s29 = sld [smem:[%s5970_s0 + %s5302_s26]]   ;;  %s5305_s10 = smov 9  }
   0x8   :  { %s5389_s3 = sld [smem:[%s5970_s0 + %s5303_s30]]   ;;  %s5306_s15 = smov 10  }
   0x9   :  { %s5394_s8 = sld [smem:[%s5970_s0 + %s5304_s4]]   ;;  %s5307_s20 = smov 11  }
   0xa   :  { %s5399_s14 = sld [smem:[%s5970_s0 + %s5305_s10]]   ;;  %s5308_s26 = smov 12  }
   0xb   :  { %s5404_s19 = sld [smem:[%s5970_s0 + %s5306_s15]]   ;;  %s5309_s1 = smov 13  }
   0xc   :  { %5973 = sst [smem:[#allocation28_spill]] %s5379_s25  ;;  %s5310_s7 = smov 14  }
   0xd   :  { %5974 = sst [smem:[#allocation29_spill]] %s5384_s29  ;;  %s5311_s15 = smov 15  }
   0xe   :  { %s5409_s24 = sld [smem:[%s5970_s0 + %s5307_s20]]   ;;  %s5312_s22 = smov 16  }
   0xf   :  { %s5414_s30 = sld [smem:[%s5970_s0 + %s5308_s26]]   ;;  %s5313_s28 = smov 17  }
  0x10   :  { %s5419_s6 = sld [smem:[%s5970_s0 + %s5309_s1]]   ;;  %s5325_s1 = smov 29  }
  0x11   :  { %5975 = sst [smem:[#allocation30_spill]] %s5404_s19  ;;  %s5326_s10 = smov 30  }
  0x12   :  { %s5424_s12 = sld [smem:[%s5970_s0 + %s5310_s7]]   ;;  %s5314_s7 = smov 18  }
  0x13   :  { %s5429_s20 = sld [smem:[%s5970_s0 + %s5311_s15]]   ;;  %s5315_s15 = smov 19  }
  0x14   :  { %5976 = sst [smem:[#allocation31_spill]] %s5409_s24 }
  0x15   :  { %5977 = sst [smem:[#allocation32_spill]] %s5414_s30 }
  0x16   :  { %s5434_s27 = sld [smem:[%s5970_s0 + %s5312_s22]]   ;;  %s5316_s22 = smov 20  }
  0x17   :  { %s5439_s4 = sld [smem:[%s5970_s0 + %s5313_s28]]   ;;  %s5317_s28 = smov 21  }
  0x18   :  { %s5444_s30 = sld [smem:[%s5970_s0 + %s5314_s7]]   ;;  %s5318_s7 = smov 22  }
  0x19   :  { %s5449_s24 = sld [smem:[%s5970_s0 + %s5315_s15]]   ;;  %s5319_s15 = smov 23  }
  0x1a   :  { %s5497_s29 = sld [smem:[%s5970_s0 + %s5325_s1]]  }
  0x1b   :  { %s5502_s25 = sld [smem:[%s5970_s0 + %s5326_s10]]  }
  0x1c   :  { %5978 = sst [smem:[#allocation33_spill]] %s5434_s27 }
  0x1d   :  { %5979 = sst [smem:[#allocation34_spill]] %s5439_s4 }
  0x1e   :  { %5980 = sst [smem:[#allocation35_spill]] %s5444_s30 }
  0x1f   :  { %5981 = sst [smem:[#allocation36_spill]] %s5449_s24 }
  0x20   :  { %s5454_s27 = sld [smem:[%s5970_s0 + %s5316_s22]]   ;;  %s5320_s22 = smov 24  }
  0x21   :  { %s5459_s4 = sld [smem:[%s5970_s0 + %s5317_s28]]   ;;  %s5321_s28 = smov 25  }
  0x22   :  { %s5464_s30 = sld [smem:[%s5970_s0 + %s5318_s7]]   ;;  %s5322_s7 = smov 26  }
  0x23   :  { %s5469_s24 = sld [smem:[%s5970_s0 + %s5319_s15]]   ;;  %s5323_s15 = smov 27  }
  0x24   :  { %s5479_s19 = sld [smem:[%s5970_s0 + %s5321_s28]]  }
  0x26   :  { %5982 = sst [smem:[#allocation37_spill]] %s5454_s27 }
  0x27   :  { %s5474_s27 = sld [smem:[%s5970_s0 + %s5320_s22]]   ;;  %s5324_s22 = smov 28  }
  0x28   :  { %5983 = sst [smem:[#allocation38_spill]] %s5464_s30 }
  0x29   :  { %5984 = sst [smem:[#allocation39_spill]] %s5469_s24 }
  0x2a   :  { %s5484_s30 = sld [smem:[%s5970_s0 + %s5322_s7]]  }
  0x2b   :  { %s5489_s24 = sld [smem:[%s5970_s0 + %s5323_s15]]  }
  0x2d   :  { %5985 = sst [smem:[#allocation40_spill]] %s5474_s27 }
  0x2e   :  { %s3539_s27 = sld [smem:[%s5970_s0 + %s5324_s22]]  }
  0x34   :  { %v67_v0 = vstv %s3539_s27 }
  0x35   :  { %68 = vst [vmem:[#allocation2] sm:$0x1] %v67_v0 }
  0x36   :  { %69 = vsyncpa [#allocation4], 0 }
  0x37   :  { %70 = vsyncpa [#allocation7], 0 }
  0x38   :  { %71 = vsyncpa [#allocation10], 0 }
  0x39   :  { %72 = vsyncpa [#allocation13], 0 }
  0x3a   :  { %73 = vsyncpa [#allocation16], 0 }
  0x3b   :  { %74 = vsyncpa [#allocation19], 0  ;;  %s105_s15 = sshll.u32 %s5389_s3, 4  ;;  %s106_s15 = int_to_ptr.hbm [resolvable:$true] %s105_s15 }
  0x3c   :  { %75 = vsyncpa [#allocation5], 0  ;;  %s5327_s16 = smov [#allocation6]   ;;  %s129_s0 = sshll.u32 %s5399_s14, 4  ;;  %s130_s0 = int_to_ptr.hbm [resolvable:$true] %s129_s0 }
  0x3d   :  { %s107_s18 = sshll.u32 %s5327_s16, 4  ;;  %s5019_s22 = sshra.s32 %s106_s15, 4  ;;  %s108_s18 = int_to_ptr.vmem [resolvable:$true] %s107_s18  ;;  %s5020_s22 = int_to_ptr.hbm [resolvable:$true] %s5019_s22 }
  0x3e   :  { %s5021_s27 = scalar_lea.hbm %s5020_s22, 512  ;;  %s5023_s23 = scalar_lea.hbm %s5389_s3, 512 }
  0x3f   :  { %p5022_p0 = scmp.ne.s32.totalorder %s5020_s22, %s5021_s27  ;;  %p5024_p1 = scmp.lt.s32.totalorder %s5020_s22, %s5389_s3 }
  0x40   :  { %p5025_p2 = scmp.lt.s32.totalorder %s5023_s23, %s5021_s27 }
  0x42   :  { %p5026_p3 = por %p5025_p2, %p5024_p1 }
  0x44   :  { %p5027_p4 = pnand %p5026_p3, %p5022_p0 }
  0x46   :  { %5030 = shalt.err (!%p5027_p4)
}
  0x47   :  { %s5328_s26 = smov 128   ;;  %s5329_s1 = smov 8  }
  0x48   :  { %113 = dma.hbm_to_vmem [thread:$0]  %s106_s15, 8192, %s108_s18, [#allocation7], %s5328_s26, %s5328_s26, %s5329_s1  }
  0x49   :  { %s5330_s28 = smov [#allocation9]   ;;  %s5043_s10 = sshra.s32 %s130_s0, 4  ;;  %s5044_s10 = int_to_ptr.hbm [resolvable:$true] %s5043_s10 }
  0x4a   :  { %s131_s2 = sshll.u32 %s5330_s28, 4  ;;  %s5045_s7 = scalar_lea.hbm %s5044_s10, 512  ;;  %s132_s2 = int_to_ptr.vmem [resolvable:$true] %s131_s2 }
  0x4b   :  { %p5046_p5 = scmp.ne.s32.totalorder %s5044_s10, %s5045_s7  ;;  %s5047_s3 = scalar_lea.hbm %s5399_s14, 512 }
  0x4c   :  { %p5048_p6 = scmp.lt.s32.totalorder %s5044_s10, %s5399_s14  ;;  %p5049_p7 = scmp.lt.s32.totalorder %s5047_s3, %s5045_s7 }
  0x4e   :  { %p5050_p8 = por %p5049_p7, %p5048_p6 }
  0x50   :  { %p5051_p9 = pnand %p5050_p8, %p5046_p5 }
  0x52   :  { %5054 = shalt.err (!%p5051_p9)
}
  0x53   :  { %137 = dma.hbm_to_vmem [thread:$0]  %s130_s0, 8192, %s132_s2, [#allocation10], %s5328_s26, %s5328_s26, %s5329_s1  }
  0x54   :  { %s161_s11 = sshll.u32 %s5424_s12, 4  ;;  %s5331_s15 = smov [#allocation12]   ;;  %s162_s11 = int_to_ptr.hbm [resolvable:$true] %s161_s11 }
  0x55   :  { %s163_s16 = sshll.u32 %s5331_s15, 4  ;;  %s5067_s18 = sshra.s32 %s162_s11, 4  ;;  %s164_s16 = int_to_ptr.vmem [resolvable:$true] %s163_s16  ;;  %s5068_s18 = int_to_ptr.hbm [resolvable:$true] %s5067_s18 }
  0x56   :  { %s5069_s22 = scalar_lea.hbm %s5068_s18, 32  ;;  %s5071_s14 = scalar_lea.hbm %s5424_s12, 32 }
  0x57   :  { %p5070_p10 = scmp.ne.s32.totalorder %s5068_s18, %s5069_s22  ;;  %p5072_p11 = scmp.lt.s32.totalorder %s5068_s18, %s5424_s12 }
  0x58   :  { %p5073_p12 = scmp.lt.s32.totalorder %s5071_s14, %s5069_s22 }
  0x5a   :  { %p5074_p13 = por %p5073_p12, %p5072_p11 }
  0x5c   :  { %p5075_p0 = pnand %p5074_p13, %p5070_p10 }
  0x5e   :  { %5078 = shalt.err (!%p5075_p0)
}
  0x5f   :  { %s5332_s27 = smov 256   ;;  %s5333_s0 = smov 16  }
  0x60   :  { %169 = dma.hbm_to_vmem [thread:$0]  %s162_s11, 512, %s164_s16, [#allocation13], %s5332_s27, %s5332_s27, %s5333_s0  }
  0x61   :  { %s197_s23 = sshll.u32 %s5459_s4, 4  ;;  %s5334_s28 = smov [#allocation15]   ;;  %s198_s23 = int_to_ptr.hbm [resolvable:$true] %s197_s23 }
  0x62   :  { %s199_s2 = sshll.u32 %s5334_s28, 4  ;;  %s86_s10 = sshll.u32 %s5369_s17, 4  ;;  %s200_s2 = int_to_ptr.vmem [resolvable:$true] %s199_s2  ;;  %s5524_s10 = int_to_ptr.hbm [resolvable:$true] %s86_s10 }
  0x63   :  { %s5091_s12 = sshra.s32 %s198_s23, 4  ;;  %s5095_s3 = scalar_lea.hbm %s5459_s4, 64  ;;  %s5092_s12 = int_to_ptr.hbm [resolvable:$true] %s5091_s12 }
  0x64   :  { %s5093_s7 = scalar_lea.hbm %s5092_s12, 64  ;;  %p5096_p2 = scmp.lt.s32.totalorder %s5092_s12, %s5459_s4 }
  0x65   :  { %p5094_p1 = scmp.ne.s32.totalorder %s5092_s12, %s5093_s7  ;;  %p5097_p3 = scmp.lt.s32.totalorder %s5095_s3, %s5093_s7 }
  0x67   :  { %p5098_p4 = por %p5097_p3, %p5096_p2 }
  0x69   :  { %p5099_p5 = pnand %p5098_p4, %p5094_p1 }
  0x6b   :  { %5102 = shalt.err (!%p5099_p5)
}
  0x6c   :  { %s5335_s15 = smov 64   ;;  %s5336_s11 = smov 4  }
  0x6d   :  { %205 = dma.hbm_to_vmem [thread:$0]  %s198_s23, 1024, %s200_s2, [#allocation16], %s5335_s15, %s5335_s15, %s5336_s11  }
  0x6e   :  { %s119_s16 = sshll.u32 %s5394_s8, 4  ;;  %s5337_s18 = smov [#allocation3]   ;;  %s120_s16 = int_to_ptr.hbm [resolvable:$true] %s119_s16 }
  0x6f   :  { %s88_s22 = sshll.u32 %s5337_s18, 4  ;;  %s5115_s4 = sshra.s32 %s5524_s10, 4  ;;  %s89_s22 = int_to_ptr.vmem [resolvable:$true] %s88_s22  ;;  %s5116_s4 = int_to_ptr.hbm [resolvable:$true] %s5115_s4 }
  0x70   :  { %s5117_s14 = scalar_lea.hbm %s5116_s4, 1536  ;;  %s5119_s28 = scalar_lea.hbm %s5369_s17, 1536 }
  0x71   :  { %p5118_p6 = scmp.ne.s32.totalorder %s5116_s4, %s5117_s14  ;;  %p5120_p7 = scmp.lt.s32.totalorder %s5116_s4, %s5369_s17 }
  0x72   :  { %p5121_p8 = scmp.lt.s32.totalorder %s5119_s28, %s5117_s14 }
  0x74   :  { %p5122_p9 = por %p5121_p8, %p5120_p7 }
  0x76   :  { %p5123_p10 = pnand %p5122_p9, %p5118_p6 }
  0x78   :  { %5126 = shalt.err (!%p5123_p10)
}
  0x79   :  { %94 = dma.hbm_to_vmem [thread:$0]  %s5524_s10, 24576, %s89_s22, [#allocation4], %s5332_s27, %s5332_s27, %s5333_s0  }
  0x7a   :  { %s5338_s23 = smov [#allocation8]   ;;  %s148_s12 = sshll.u32 %s5419_s6, 4  ;;  %s5540_s12 = int_to_ptr.hbm [resolvable:$true] %s148_s12 }
  0x7b   :  { %s121_s2 = sshll.u32 %s5338_s23, 4  ;;  %s5139_s7 = sshra.s32 %s120_s16, 4  ;;  %s122_s2 = int_to_ptr.vmem [resolvable:$true] %s121_s2  ;;  %s5140_s7 = int_to_ptr.hbm [resolvable:$true] %s5139_s7 }
  0x7c   :  { %s5141_s17 = scalar_lea.hbm %s5140_s7, 32  ;;  %s5143_s3 = scalar_lea.hbm %s5394_s8, 32 }
  0x7d   :  { %p5142_p11 = scmp.ne.s32.totalorder %s5140_s7, %s5141_s17  ;;  %p5144_p12 = scmp.lt.s32.totalorder %s5140_s7, %s5394_s8 }
  0x7e   :  { %p5145_p13 = scmp.lt.s32.totalorder %s5143_s3, %s5141_s17 }
  0x80   :  { %p5146_p0 = por %p5145_p13, %p5144_p12 }
  0x82   :  { %p5147_p1 = pnand %p5146_p0, %p5142_p11 }
  0x84   :  { %5150 = shalt.err (!%p5147_p1)
}
  0x85   :  { %124 = dma.hbm_to_vmem [thread:$0]  %s120_s16, 512, %s122_s2, [#allocation7]  }
  0x86   :  { %s174_s27 = sshll.u32 %s5429_s20, 4  ;;  %s5339_s0 = smov [#allocation11]   ;;  %s5545_s27 = int_to_ptr.hbm [resolvable:$true] %s174_s27 }
  0x87   :  { %s150_s10 = sshll.u32 %s5339_s0, 4  ;;  %s5163_s18 = sshra.s32 %s5540_s12, 4  ;;  %s151_s10 = int_to_ptr.vmem [resolvable:$true] %s150_s10  ;;  %s5164_s18 = int_to_ptr.hbm [resolvable:$true] %s5163_s18 }
  0x88   :  { %s5165_s22 = scalar_lea.hbm %s5164_s18, 256  ;;  %s5167_s8 = scalar_lea.hbm %s5419_s6, 256 }
  0x89   :  { %p5166_p2 = scmp.ne.s32.totalorder %s5164_s18, %s5165_s22  ;;  %p5168_p3 = scmp.lt.s32.totalorder %s5164_s18, %s5419_s6 }
  0x8a   :  { %p5169_p4 = scmp.lt.s32.totalorder %s5167_s8, %s5165_s22 }
  0x8c   :  { %p5170_p5 = por %p5169_p4, %p5168_p3 }
  0x8e   :  { %p5171_p6 = pnand %p5170_p5, %p5166_p2 }
  0x90   :  { %5174 = shalt.err (!%p5171_p6)
}
  0x91   :  { %156 = dma.hbm_to_vmem [thread:$0]  %s5540_s12, 4096, %s151_s10, [#allocation10], %s5328_s26, %s5328_s26, %s5329_s1  }
  0x92   :  { %s5340_s16 = smov [#allocation14]   ;;  %s216_s14 = sshll.u32 %s5479_s19, 4  ;;  %s5555_s14 = int_to_ptr.hbm [resolvable:$true] %s216_s14 }
  0x93   :  { %s176_s4 = sshll.u32 %s5340_s16, 4  ;;  %s5187_s6 = sshra.s32 %s5545_s27, 4  ;;  %s177_s4 = int_to_ptr.vmem [resolvable:$true] %s176_s4  ;;  %s5188_s6 = int_to_ptr.hbm [resolvable:$true] %s5187_s6 }
  0x94   :  { %s5189_s28 = scalar_lea.hbm %s5188_s6, 128  ;;  %s5191_s23 = scalar_lea.hbm %s5429_s20, 128 }
  0x95   :  { %p5190_p7 = scmp.ne.s32.totalorder %s5188_s6, %s5189_s28  ;;  %p5192_p8 = scmp.lt.s32.totalorder %s5188_s6, %s5429_s20 }
  0x96   :  { %p5193_p9 = scmp.lt.s32.totalorder %s5191_s23, %s5189_s28 }
  0x98   :  { %p5194_p10 = por %p5193_p9, %p5192_p8 }
  0x9a   :  { %p5195_p11 = pnand %p5194_p10, %p5190_p7 }
  0x9c   :  { %5198 = shalt.err (!%p5195_p11)
}
  0x9d   :  { %182 = dma.hbm_to_vmem [thread:$0]  %s5545_s27, 2048, %s177_s4, [#allocation13], %s5335_s15, %s5335_s15, %s5336_s11  }
  0x9e   :  { %s229_s2 = sshll.u32 %s5484_s30, 4  ;;  %s5341_s12 = smov [#allocation17]   ;;  %s5565_s2 = int_to_ptr.hbm [resolvable:$true] %s229_s2 }
  0x9f   :  { %s218_s7 = sshll.u32 %s5341_s12, 4  ;;  %s5211_s20 = sshra.s32 %s5555_s14, 4  ;;  %s219_s7 = int_to_ptr.vmem [resolvable:$true] %s218_s7  ;;  %s5212_s20 = int_to_ptr.hbm [resolvable:$true] %s5211_s20 }
  0xa0   :  { %s5213_s17 = scalar_lea.hbm %s5212_s20, 64  ;;  %s5215_s3 = scalar_lea.hbm %s5479_s19, 64 }
  0xa1   :  { %p5214_p12 = scmp.ne.s32.totalorder %s5212_s20, %s5213_s17  ;;  %p5216_p13 = scmp.lt.s32.totalorder %s5212_s20, %s5479_s19 }
  0xa2   :  { %p5217_p0 = scmp.lt.s32.totalorder %s5215_s3, %s5213_s17 }
  0xa4   :  { %p5218_p1 = por %p5217_p0, %p5216_p13 }
  0xa6   :  { %p5219_p2 = pnand %p5218_p1, %p5214_p12 }
  0xa8   :  { %5222 = shalt.err (!%p5219_p2)
}
  0xa9   :  { %224 = dma.hbm_to_vmem [thread:$0]  %s5555_s14, 1024, %s219_s7, [#allocation16], %s5328_s26, %s5328_s26, %s5329_s1  }
  0xaa   :  { %s5342_s15 = smov [#allocation18]   ;;  %s5235_s27 = sshra.s32 %s5565_s2, 4  ;;  %s5236_s27 = int_to_ptr.hbm [resolvable:$true] %s5235_s27 }
  0xab   :  { %s231_s11 = sshll.u32 %s5342_s15, 4  ;;  %s5237_s0 = scalar_lea.hbm %s5236_s27, 64  ;;  %s232_s11 = int_to_ptr.vmem [resolvable:$true] %s231_s11 }
  0xac   :  { %p5238_p3 = scmp.ne.s32.totalorder %s5236_s27, %s5237_s0  ;;  %s5239_s19 = scalar_lea.hbm %s5484_s30, 64 }
  0xad   :  { %p5240_p4 = scmp.lt.s32.totalorder %s5236_s27, %s5484_s30  ;;  %p5241_p5 = scmp.lt.s32.totalorder %s5239_s19, %s5237_s0 }
  0xaf   :  { %p5242_p6 = por %p5241_p5, %p5240_p4 }
  0xb1   :  { %p5243_p7 = pnand %p5242_p6, %p5238_p3 }
  0xb3   :  { %5246 = shalt.err (!%p5243_p7)
}
  0xb4   :  { %237 = dma.hbm_to_vmem [thread:$0]  %s5565_s2, 1024, %s232_s11, [#allocation19], %s5328_s26, %s5328_s26, %s5329_s1  }
  0xb5   :  { %5283 = dma.done.wait [#allocation4], 24576  }
  0xb6   :  { %5284 = vsyncadd [#allocation4], 4294942720 }
  0xb7   :  { %5285 = dma.done.wait [#allocation7], 8704  }
  0xb8   :  { %5286 = vsyncadd [#allocation7], 4294958592 }
  0xb9   :  { %5287 = dma.done.wait [#allocation10], 12288  }
  0xba   :  { %5288 = vsyncadd [#allocation10], 4294955008 }
  0xbb   :  { %5289 = dma.done.wait [#allocation13], 2560  }
  0xbc   :  { %5290 = vsyncadd [#allocation13], 4294964736 }
  0xbd   :  { %5291 = dma.done.wait [#allocation16], 2048  }
  0xbe   :  { %5292 = vsyncadd [#allocation16], 4294965248 }
  0xbf   :  { %5293 = dma.done.wait [#allocation19], 1024  }
  0xc0   :  { %5294 = vsyncadd [#allocation19], 4294966272  ;;  %v3657_v1 = vld [vmem:[#allocation3 + $0xe0] sm:$0xf]  ;;  %v4704_v2 = vld [vmem:[#allocation3 + $0xec] sm:$0xf0] }
  0xc1   :  { %v3785_v3 = vld [vmem:[#allocation3 + $0x1e0] sm:$0xf]  ;;  %v3658_v4 = vor.u32 %v4704_v2, %v3657_v1  ;;  %v4736_v5 = vld [vmem:[#allocation3 + $0x1ec] sm:$0xf0]  ;;  %vm308_vm1 = vcmask 1041408   ;;  %vm310_vm2 = vcmask 1045508  }
  0xc2   :  { %v3913_v6 = vld [vmem:[#allocation3 + $0x2e0] sm:$0xf]  ;;  %v4768_v7 = vld [vmem:[#allocation3 + $0x2ec] sm:$0xf0]  ;;  %v3786_v8 = vor.u32 %v4736_v5, %v3785_v3  ;;  %vm312_vm3 = vcmask 1043456   ;;  %vm1990_vm4 = vcmask 58368  }
  0xc3   :  { %v3914_v9 = vor.u32 %v4768_v7, %v3913_v6  ;;  %v4041_v10 = vld [vmem:[#allocation3 + $0x3e0] sm:$0xf]  ;;  %v4800_v11 = vld [vmem:[#allocation3 + $0x3ec] sm:$0xf0]  ;;  %1534 = vmatpush.bf16.msra.mxu0 %v3658_v4  ;;  %vm2112_vm8 = vcmask 1040384   ;;  %vm2118_vm9 = vcmask 64512  }
  0xc4   :  { %v3641_v12 = vld [vmem:[#allocation3 + $0xc0] sm:$0xf]  ;;  %v4042_v13 = vor.u32 %v4800_v11, %v4041_v10  ;;  %v4700_v14 = vld [vmem:[#allocation3 + $0xcc] sm:$0xf0]  ;;  %1547 = vmatpush.bf16.msra.mxu1 %v3786_v8  ;;  %vm2800_vm14 = vcmask 123904   ;;  %s5991_s30 = sld [smem:[#allocation36_spill]] }
  0xc5   :  { %v3769_v15 = vld [vmem:[#allocation3 + $0x1c0] sm:$0xf]  ;;  %v4732_v16 = vld [vmem:[#allocation3 + $0x1cc] sm:$0xf0]  ;;  %1560 = vmatpush.bf16.msra.mxu2 %v3914_v9  ;;  %v3642_v17 = vor.u32 %v4700_v14, %v3641_v12  ;;  %s5992_s26 = sld [smem:[#allocation33_spill]]  ;;  %s3495_s14 = sshll.u32 %s5502_s25, 4  ;;  %s3496_s14 = int_to_ptr.hbm [resolvable:$true] %s3495_s14 }
  0xc6   :  { %v3770_v18 = vor.u32 %v4732_v16, %v3769_v15  ;;  %v3897_v19 = vld [vmem:[#allocation3 + $0x2c0] sm:$0xf]  ;;  %v4764_v20 = vld [vmem:[#allocation3 + $0x2cc] sm:$0xf0]  ;;  %1573 = vmatpush.bf16.msra.mxu3 %v4042_v13  ;;  %s5993_s1 = sld [smem:[#allocation37_spill]]  ;;  %s5271_s28 = sshra.s32 %s3496_s14, 4  ;;  %s5272_s28 = int_to_ptr.hbm [resolvable:$true] %s5271_s28 }
  0xc7   :  { %v4025_v21 = vld [vmem:[#allocation3 + $0x3c0] sm:$0xf]  ;;  %v3898_v22 = vor.u32 %v4764_v20, %v3897_v19  ;;  %v4796_v23 = vld [vmem:[#allocation3 + $0x3cc] sm:$0xf0]  ;;  %1535 = vmatpush.bf16.msra.mxu0 %v3642_v17  ;;  %s5994_s10 = sld [smem:[#allocation34_spill]]  ;;  %s5273_s23 = scalar_lea.hbm %s5272_s28, 1 }
  0xc8   :  { %v3625_v24 = vld [vmem:[#allocation3 + $0xa0] sm:$0xf]  ;;  %v4696_v25 = vld [vmem:[#allocation3 + $0xac] sm:$0xf0]  ;;  %v4026_v26 = vor.u32 %v4796_v23, %v4025_v21  ;;  %1548 = vmatpush.bf16.msra.mxu1 %v3770_v18  ;;  %s5995_s18 = sld [smem:[#allocation35_spill]]  ;;  %p5274_p8 = scmp.ne.s32.totalorder %s5272_s28, %s5273_s23 }
  0xc9   :  { %v3753_v27 = vld [vmem:[#allocation3 + $0x1a0] sm:$0xf]  ;;  %v4728_v28 = vld [vmem:[#allocation3 + $0x1ac] sm:$0xf0]  ;;  %v3626_v30 = vor.u32 %v4696_v25, %v3625_v24  ;;  %1561 = vmatpush.bf16.msra.mxu2 %v3898_v22  ;;  %s5996_s22 = sld [smem:[#allocation38_spill]]  ;;  %s5275_s2 = scalar_lea.hbm %s5502_s25, 1 }
  0xca   :  { %v3881_v29 = vld [vmem:[#allocation3 + $0x2a0] sm:$0xf]  ;;  %v4760_v31 = vld [vmem:[#allocation3 + $0x2ac] sm:$0xf0]  ;;  %v3754_v34 = vor.u32 %v4728_v28, %v3753_v27  ;;  %1574 = vmatpush.bf16.msra.mxu3 %v4026_v26  ;;  %s5997_s8 = sld [smem:[#allocation39_spill]]  ;;  %p5276_p9 = scmp.lt.s32.totalorder %s5272_s28, %s5502_s25 }
  0xcb   :  { %v4009_v32 = vld [vmem:[#allocation3 + $0x3a0] sm:$0xf]  ;;  %v4792_v33 = vld [vmem:[#allocation3 + $0x3ac] sm:$0xf0]  ;;  %v3882_v35 = vor.u32 %v4760_v31, %v3881_v29  ;;  %1536 = vmatpush.bf16.msra.mxu0 %v3626_v30  ;;  %s5998_s16 = sld [smem:[#allocation40_spill]]  ;;  %p5277_p10 = scmp.lt.s32.totalorder %s5275_s2, %s5273_s23 }
  0xcc   :  { %v3609_v36 = vld [vmem:[#allocation3 + $0x80] sm:$0xf]  ;;  %v4692_v37 = vld [vmem:[#allocation3 + $0x8c] sm:$0xf0]  ;;  %v4010_v39 = vor.u32 %v4792_v33, %v4009_v32  ;;  %1549 = vmatpush.bf16.msra.mxu1 %v3754_v34  ;;  %v4702_v34 = vld [vmem:[#allocation3 + $0xe4] sm:$0xf] }
  0xcd   :  { %v3737_v38 = vld [vmem:[#allocation3 + $0x180] sm:$0xf]  ;;  %v4724_v40 = vld [vmem:[#allocation3 + $0x18c] sm:$0xf0]  ;;  %v3610_v45 = vor.u32 %v4692_v37, %v3609_v36  ;;  %1562 = vmatpush.bf16.msra.mxu2 %v3882_v35  ;;  %v3659_v35 = vld [vmem:[#allocation3 + $0xf0] sm:$0xf0]  ;;  %p5278_p11 = por %p5277_p10, %p5276_p9 }
  0xce   :  { %v3865_v41 = vld [vmem:[#allocation3 + $0x280] sm:$0xf]  ;;  %v4756_v42 = vld [vmem:[#allocation3 + $0x28c] sm:$0xf0]  ;;  %v3738_v46 = vor.u32 %v4724_v40, %v3737_v38  ;;  %1575 = vmatpush.bf16.msra.mxu3 %v4010_v39  ;;  %v4734_v38 = vld [vmem:[#allocation3 + $0x1e4] sm:$0xf] }
  0xcf   :  { %v3993_v43 = vld [vmem:[#allocation3 + $0x380] sm:$0xf]  ;;  %v4788_v44 = vld [vmem:[#allocation3 + $0x38c] sm:$0xf0]  ;;  %v3866_v47 = vor.u32 %v4756_v42, %v3865_v41  ;;  %1537 = vmatpush.bf16.msra.mxu0 %v3610_v45  ;;  %v3787_v39 = vld [vmem:[#allocation3 + $0x1f0] sm:$0xf0]  ;;  %p5279_p12 = pnand %p5278_p11, %p5274_p8 }
  0xd0   :  { %v3593_v48 = vld [vmem:[#allocation3 + $0x60] sm:$0xf]  ;;  %v4688_v49 = vld [vmem:[#allocation3 + $0x6c] sm:$0xf0]  ;;  %v3994_v51 = vor.u32 %v4788_v44, %v3993_v43  ;;  %1550 = vmatpush.bf16.msra.mxu1 %v3738_v46  ;;  %v3662_v43 = vor.u32 %v4702_v34, %v3659_v35 }
  0xd1   :  { %v3721_v50 = vld [vmem:[#allocation3 + $0x160] sm:$0xf]  ;;  %v4720_v52 = vld [vmem:[#allocation3 + $0x16c] sm:$0xf0]  ;;  %v3594_v57 = vor.u32 %v4688_v49, %v3593_v48  ;;  %1563 = vmatpush.bf16.msra.mxu2 %v3866_v47  ;;  %v3790_v47 = vor.u32 %v4734_v38, %v3787_v39  ;;  %v4698_v49 = vld [vmem:[#allocation3 + $0xc4] sm:$0xf] }
  0xd2   :  { %v3849_v53 = vld [vmem:[#allocation3 + $0x260] sm:$0xf]  ;;  %v4752_v54 = vld [vmem:[#allocation3 + $0x26c] sm:$0xf0]  ;;  %v3722_v58 = vor.u32 %v4720_v52, %v3721_v50  ;;  %1576 = vmatpush.bf16.msra.mxu3 %v3994_v51  ;;  %v3643_v50 = vld [vmem:[#allocation3 + $0xd0] sm:$0xf0] }
  0xd3   :  { %v3977_v55 = vld [vmem:[#allocation3 + $0x360] sm:$0xf]  ;;  %v4784_v56 = vld [vmem:[#allocation3 + $0x36c] sm:$0xf0]  ;;  %v3850_v59 = vor.u32 %v4752_v54, %v3849_v53  ;;  %1538 = vmatpush.bf16.msra.mxu0 %v3594_v57  ;;  %v4730_v51 = vld [vmem:[#allocation3 + $0x1c4] sm:$0xf] }
  0xd4   :  { %v3577_v60 = vld [vmem:[#allocation3 + $0x40] sm:$0xf]  ;;  %v4684_v61 = vld [vmem:[#allocation3 + $0x4c] sm:$0xf0]  ;;  %v3978_v63 = vor.u32 %v4784_v56, %v3977_v55  ;;  %1551 = vmatpush.bf16.msra.mxu1 %v3722_v58  ;;  %v3771_v52 = vld [vmem:[#allocation3 + $0x1d0] sm:$0xf0]  ;;  %v3646_v56 = vor.u32 %v4698_v49, %v3643_v50 }
  0xd5   :  { %v3705_v62 = vld [vmem:[#allocation3 + $0x140] sm:$0xf]  ;;  %v4716_v0 = vld [vmem:[#allocation3 + $0x14c] sm:$0xf0]  ;;  %v3578_v5 = vor.u32 %v4684_v61, %v3577_v60  ;;  %1564 = vmatpush.bf16.msra.mxu2 %v3850_v59  ;;  %v3774_v60 = vor.u32 %v4730_v51, %v3771_v52  ;;  %v4694_v61 = vld [vmem:[#allocation3 + $0xa4] sm:$0xf] }
  0xd6   :  { %v3833_v1 = vld [vmem:[#allocation3 + $0x240] sm:$0xf]  ;;  %v4748_v2 = vld [vmem:[#allocation3 + $0x24c] sm:$0xf0]  ;;  %v3706_v6 = vor.u32 %v4716_v0, %v3705_v62  ;;  %1577 = vmatpush.bf16.msra.mxu3 %v3978_v63  ;;  %v3627_v62 = vld [vmem:[#allocation3 + $0xb0] sm:$0xf0] }
  0xd7   :  { %v3961_v3 = vld [vmem:[#allocation3 + $0x340] sm:$0xf]  ;;  %v4780_v4 = vld [vmem:[#allocation3 + $0x34c] sm:$0xf0]  ;;  %v3834_v7 = vor.u32 %v4748_v2, %v3833_v1  ;;  %1539 = vmatpush.bf16.msra.mxu0 %v3578_v5  ;;  %v4726_v63 = vld [vmem:[#allocation3 + $0x1a4] sm:$0xf] }
  0xd8   :  { %v3561_v8 = vld [vmem:[#allocation3 + $0x20] sm:$0xf]  ;;  %v4680_v9 = vld [vmem:[#allocation3 + $0x2c] sm:$0xf0]  ;;  %v3962_v11 = vor.u32 %v4780_v4, %v3961_v3  ;;  %1552 = vmatpush.bf16.msra.mxu1 %v3706_v6  ;;  %v3755_v0 = vld [vmem:[#allocation3 + $0x1b0] sm:$0xf0] }
  0xd9   :  { %v3689_v10 = vld [vmem:[#allocation3 + $0x120] sm:$0xf]  ;;  %v4712_v12 = vld [vmem:[#allocation3 + $0x12c] sm:$0xf0]  ;;  %v3562_v17 = vor.u32 %v4680_v9, %v3561_v8  ;;  %1565 = vmatpush.bf16.msra.mxu2 %v3834_v7  ;;  %v4690_v6 = vld [vmem:[#allocation3 + $0x84] sm:$0xf] }
  0xda   :  { %v3817_v13 = vld [vmem:[#allocation3 + $0x220] sm:$0xf]  ;;  %v4744_v14 = vld [vmem:[#allocation3 + $0x22c] sm:$0xf0]  ;;  %v3690_v20 = vor.u32 %v4712_v12, %v3689_v10  ;;  %1578 = vmatpush.bf16.msra.mxu3 %v3962_v11  ;;  %v3611_v7 = vld [vmem:[#allocation3 + $0x90] sm:$0xf0]  ;;  %v3630_v10 = vor.u32 %v4694_v61, %v3627_v62 }
  0xdb   :  { %v3945_v15 = vld [vmem:[#allocation3 + $0x320] sm:$0xf]  ;;  %v4776_v16 = vld [vmem:[#allocation3 + $0x32c] sm:$0xf0]  ;;  %v3818_v21 = vor.u32 %v4744_v14, %v3817_v13  ;;  %1540 = vmatpush.bf16.msra.mxu0 %v3562_v17  ;;  %v282_v8 = vld [vmem:[%s5364_s13] sm:$0xf]  ;;  %v3758_v13 = vor.u32 %v4726_v63, %v3755_v0 }
  0xdc   :  { %v3545_v18 = vld [vmem:[#allocation3] sm:$0xf]  ;;  %v4676_v19 = vld [vmem:[#allocation3 + $0xc] sm:$0xf0]  ;;  %v3946_v25 = vor.u32 %v4776_v16, %v3945_v15  ;;  %1553 = vmatpush.bf16.msra.mxu1 %v3690_v20  ;;  %v4722_v11 = vld [vmem:[#allocation3 + $0x184] sm:$0xf] }
  0xdd   :  { %v3673_v22 = vld [vmem:[#allocation3 + $0x100] sm:$0xf]  ;;  %v4708_v23 = vld [vmem:[#allocation3 + $0x10c] sm:$0xf0]  ;;  %v3546_v32 = vor.u32 %v4676_v19, %v3545_v18  ;;  %1566 = vmatpush.bf16.msra.mxu2 %v3818_v21  ;;  %v3739_v12 = vld [vmem:[#allocation3 + $0x190] sm:$0xf0]  ;;  %v3614_v19 = vor.u32 %v4690_v6, %v3611_v7 }
  0xde   :  { %v3801_v24 = vld [vmem:[#allocation3 + $0x200] sm:$0xf]  ;;  %v4740_v26 = vld [vmem:[#allocation3 + $0x20c] sm:$0xf0]  ;;  %v3674_v36 = vor.u32 %v4708_v23, %v3673_v22  ;;  %1579 = vmatpush.bf16.msra.mxu3 %v3946_v25  ;;  %vm283_vm0 = vcmp.gt.f32.partialorder %v282_v8, 0.9  ;;  %v3742_v23 = vor.u32 %v4722_v11, %v3739_v12 }
  0xdf   :  { %v3929_v27 = vld [vmem:[#allocation3 + $0x300] sm:$0xf]  ;;  %v4772_v28 = vld [vmem:[#allocation3 + $0x30c] sm:$0xf0]  ;;  %v3802_v37 = vor.u32 %v4740_v26, %v3801_v24  ;;  %1541 = vmatpush.bf16.msra.mxu0 %v3546_v32  ;;  %v5343_v14 = vmov 0.0   ;;  %s5988_s13 = sld [smem:[#allocation30_spill]] }
  0xe0   :  { %v4169_v29 = vld [vmem:[#allocation3 + $0x4e0] sm:$0xf]  ;;  %v4832_v30 = vld [vmem:[#allocation3 + $0x4ec] sm:$0xf0]  ;;  %v3930_v40 = vor.u32 %v4772_v28, %v3929_v27  ;;  %1554 = vmatpush.bf16.msra.mxu1 %v3674_v36  ;;  %v5582_v15 = vsel %vm283_vm0, 1.0, %v5343_v14 }
  0xe1   :  { %v4297_v31 = vld [vmem:[#allocation3 + $0x5e0] sm:$0xf]  ;;  %v4864_v33 = vld [vmem:[#allocation3 + $0x5ec] sm:$0xf0]  ;;  %v4170_v41 = vor.u32 %v4832_v30, %v4169_v29  ;;  %1567 = vmatpush.bf16.msra.mxu2 %v3802_v37  ;;  %287 = vst [vmem:[#allocation1] ss:$4 sm:$0xff] %v5582_v15 }
  0xe2   :  { %v4298_v42 = vor.u32 %v4864_v33, %v4297_v31  ;;  %v4153_v44 = vld [vmem:[#allocation3 + $0x4c0] sm:$0xf]  ;;  %v4828_v45 = vld [vmem:[#allocation3 + $0x4cc] sm:$0xf0]  ;;  %1580 = vmatpush.bf16.msra.mxu3 %v3930_v40  ;;  %v4686_v24 = vld [vmem:[#allocation3 + $0x64] sm:$0xf] }
  0xe3   :  { %v4281_v46 = vld [vmem:[#allocation3 + $0x5c0] sm:$0xf]  ;;  %v4860_v48 = vld [vmem:[#allocation3 + $0x5cc] sm:$0xf0]  ;;  %1586 = vmatpush.bf16.msrb.mxu0 %v4170_v41  ;;  %v4154_v53 = vor.u32 %v4828_v45, %v4153_v44  ;;  %v3595_v25 = vld [vmem:[#allocation3 + $0x70] sm:$0xf0] }
  0xe4   :  { %v4137_v54 = vld [vmem:[#allocation3 + $0x4a0] sm:$0xf]  ;;  %1599 = vmatpush.bf16.msrb.mxu1 %v4298_v42  ;;  %v4282_v55 = vor.u32 %v4860_v48, %v4281_v46  ;;  %v4824_v57 = vld [vmem:[#allocation3 + $0x4ac] sm:$0xf0]  ;;  %v4718_v26 = vld [vmem:[#allocation3 + $0x164] sm:$0xf]  ;;  %v3598_v35 = vor.u32 %v4686_v24, %v3595_v25 }
  0xe5   :  { %1612 = vmatpush.bf16.msrb.mxu2 %v3662_v43  ;;  %v4265_v58 = vld [vmem:[#allocation3 + $0x5a0] sm:$0xf]  ;;  %v4856_v59 = vld [vmem:[#allocation3 + $0x5ac] sm:$0xf0]  ;;  %v4138_v3 = vor.u32 %v4824_v57, %v4137_v54  ;;  %v3723_v27 = vld [vmem:[#allocation3 + $0x170] sm:$0xf0] }
  0xe6   :  { %1625 = vmatpush.bf16.msrb.mxu3 %v3790_v47  ;;  %v4121_v1 = vld [vmem:[#allocation3 + $0x480] sm:$0xf]  ;;  %v4820_v2 = vld [vmem:[#allocation3 + $0x48c] sm:$0xf0]  ;;  %v4266_v9 = vor.u32 %v4856_v59, %v4265_v58  ;;  %v4682_v33 = vld [vmem:[#allocation3 + $0x44] sm:$0xf]  ;;  %v3726_v39 = vor.u32 %v4718_v26, %v3723_v27 }
  0xe7   :  { %1587 = vmatpush.bf16.msrb.mxu0 %v4154_v53  ;;  %v4249_v4 = vld [vmem:[#allocation3 + $0x580] sm:$0xf]  ;;  %v4852_v5 = vld [vmem:[#allocation3 + $0x58c] sm:$0xf0]  ;;  %v4122_v16 = vor.u32 %v4820_v2, %v4121_v1  ;;  %v3579_v36 = vld [vmem:[#allocation3 + $0x50] sm:$0xf0] }
  0xe8   :  { %1600 = vmatpush.bf16.msrb.mxu1 %v4282_v55  ;;  %v4105_v17 = vld [vmem:[#allocation3 + $0x460] sm:$0xf]  ;;  %v4250_v18 = vor.u32 %v4852_v5, %v4249_v4  ;;  %v4816_v20 = vld [vmem:[#allocation3 + $0x46c] sm:$0xf0]  ;;  %v4714_v37 = vld [vmem:[#allocation3 + $0x144] sm:$0xf]  ;;  %v3582_v48 = vor.u32 %v4682_v33, %v3579_v36 }
  0xe9   :  { %1613 = vmatpush.bf16.msrb.mxu2 %v3646_v56  ;;  %v4233_v21 = vld [vmem:[#allocation3 + $0x560] sm:$0xf]  ;;  %v4848_v22 = vld [vmem:[#allocation3 + $0x56c] sm:$0xf0]  ;;  %v4106_v30 = vor.u32 %v4816_v20, %v4105_v17  ;;  %v3707_v38 = vld [vmem:[#allocation3 + $0x150] sm:$0xf0] }
  0xea   :  { %1626 = vmatpush.bf16.msrb.mxu3 %v3774_v60  ;;  %v4089_v28 = vld [vmem:[#allocation3 + $0x440] sm:$0xf]  ;;  %v4812_v29 = vld [vmem:[#allocation3 + $0x44c] sm:$0xf0]  ;;  %v4234_v34 = vor.u32 %v4848_v22, %v4233_v21  ;;  %v4678_v50 = vld [vmem:[#allocation3 + $0x24] sm:$0xf]  ;;  %v3710_v52 = vor.u32 %v4714_v37, %v3707_v38 }
  0xeb   :  { %1588 = vmatpush.bf16.msrb.mxu0 %v4138_v3  ;;  %v4217_v31 = vld [vmem:[#allocation3 + $0x540] sm:$0xf]  ;;  %v4844_v32 = vld [vmem:[#allocation3 + $0x54c] sm:$0xf0]  ;;  %v4090_v43 = vor.u32 %v4812_v29, %v4089_v28  ;;  %v3563_v51 = vld [vmem:[#allocation3 + $0x30] sm:$0xf0] }
  0xec   :  { %1601 = vmatpush.bf16.msrb.mxu1 %v4266_v9  ;;  %v288_v40 = vld.sshfl [vmem:[#allocation1] sm:$0xff pattern:$0x73625140]  ;;  %v289_v41 = vld.sshfl [vmem:[#allocation1 + $0x8] sm:$0xff pattern:$0x73625140]  ;;  %v4218_v47 = vor.u32 %v4844_v32, %v4217_v31  ;;  %v3566_v1 = vor.u32 %v4678_v50, %v3563_v51 }
  0xed   :  { %1614 = vmatpush.bf16.msrb.mxu2 %v3630_v10  ;;  %292 = vst [vmem:[#allocation1] ss:$4 sm:$0xff] %v5582_v15  ;;  %v322_v42 = vsub.f32 1.0, %v289_v41  ;;  %v4073_v44 = vld [vmem:[#allocation3 + $0x420] sm:$0xf]  ;;  %v304_v53 = vrot.slane %v289_v41, 6 }
  0xee   :  { %1627 = vmatpush.bf16.msrb.mxu3 %v3758_v13  ;;  %v4808_v45 = vld [vmem:[#allocation3 + $0x42c] sm:$0xf0]  ;;  %v4201_v46 = vld [vmem:[#allocation3 + $0x520] sm:$0xf]  ;;  %v4710_v54 = vld [vmem:[#allocation3 + $0x124] sm:$0xf] }
  0xef   :  { %1589 = vmatpush.bf16.msrb.mxu0 %v4122_v16  ;;  %v4840_v49 = vld [vmem:[#allocation3 + $0x52c] sm:$0xf0]  ;;  %v3691_v55 = vld [vmem:[#allocation3 + $0x130] sm:$0xf0]  ;;  %v321_v56 = vsub.f32 1.0, %v288_v40  ;;  %v333_v57 = vrot.slane %v322_v42, 6  ;;  %v4074_v60 = vor.u32 %v4808_v45, %v4073_v44  ;;  %v309_v7 = vsel %vm308_vm1, %v288_v40, %v304_v53 }
  0xf0   :  { %1602 = vmatpush.bf16.msrb.mxu1 %v4250_v18  ;;  %v4057_v58 = vld [vmem:[#allocation3 + $0x400] sm:$0xf]  ;;  %v4804_v59 = vld [vmem:[#allocation3 + $0x40c] sm:$0xf0]  ;;  %v4674_v63 = vld [vmem:[#allocation3 + $0x4] sm:$0xf]  ;;  %v4202_v0 = vor.u32 %v4840_v49, %v4201_v46  ;;  %v3694_v8 = vor.u32 %v4710_v54, %v3691_v55 }
  0xf1   :  { %1615 = vmatpush.bf16.msrb.mxu2 %v3614_v19  ;;  %v4185_v61 = vld [vmem:[#allocation3 + $0x500] sm:$0xf]  ;;  %v4836_v62 = vld [vmem:[#allocation3 + $0x50c] sm:$0xf0]  ;;  %v3547_v2 = vld [vmem:[#allocation3 + $0x10] sm:$0xf0]  ;;  %v337_v14 = vsel %vm308_vm1, %v321_v56, %v333_v57  ;;  %v4058_v16 = vor.u32 %v4804_v59, %v4057_v58 }
  0xf2   :  { %1628 = vmatpush.bf16.msrb.mxu3 %v3742_v23  ;;  %v4706_v3 = vld [vmem:[#allocation3 + $0x104] sm:$0xf]  ;;  %v3675_v4 = vld [vmem:[#allocation3 + $0x110] sm:$0xf0]  ;;  %v4186_v17 = vor.u32 %v4836_v62, %v4185_v61  ;;  %v3550_v21 = vor.u32 %v4674_v63, %v3547_v2  ;;  %v320_v36 = vld [vmem:[%s5354_s5 + $0x8] sm:$0xf] }
  0xf3   :  { %1590 = vmatpush.bf16.msrb.mxu0 %v4106_v30  ;;  %v302_v13 = vld [vmem:[%s5359_s9] sm:$0xff]  ;;  %v3678_v23 = vor.u32 %v4706_v3, %v3675_v4  ;;  %v4766_v41 = vld [vmem:[#allocation3 + $0x2e4] sm:$0xf] }
  0xf4   :  { %1603 = vmatpush.bf16.msrb.mxu1 %v4234_v34  ;;  %v293_v5 = vld.sshfl [vmem:[#allocation1] sm:$0xff pattern:$0x73625140]  ;;  %v294_v6 = vld.sshfl [vmem:[#allocation1 + $0x8] sm:$0xff pattern:$0x73625140] }
  0xf5   :  { %1616 = vmatpush.bf16.msrb.mxu2 %v3598_v35  ;;  %297 = vst [vmem:[#allocation1] ss:$4 sm:$0xff] %v5582_v15  ;;  %v305_v9 = vrot.slane %v293_v5, 4  ;;  %v306_v10 = vrot.slane %v294_v6, 2  ;;  %v323_v11 = vsub.f32 1.0, %v293_v5  ;;  %v324_v12 = vsub.f32 1.0, %v294_v6 }
  0xf6   :  { %1629 = vmatpush.bf16.msrb.mxu3 %v3726_v39  ;;  %v319_v22 = vld [vmem:[%s5354_s5] sm:$0xff]  ;;  %v303_v34 = vld [vmem:[%s5359_s9 + $0x8] sm:$0xf]  ;;  %v4830_v45 = vld [vmem:[#allocation3 + $0x4e4] sm:$0xf]  ;;  %s5986_s5 = sld [smem:[#allocation28_spill]] }
  0xf7   :  { %1591 = vmatpush.bf16.msrb.mxu0 %v4090_v43  ;;  %v311_v18 = vsel %vm310_vm2, %v305_v9, %v306_v10  ;;  %v334_v19 = vrot.slane %v323_v11, 4  ;;  %v335_v20 = vrot.slane %v324_v12, 2  ;;  %v3915_v42 = vld [vmem:[#allocation3 + $0x2f0] sm:$0xf0]  ;;  %v4798_v43 = vld [vmem:[#allocation3 + $0x3e4] sm:$0xf] }
  0xf8   :  { %1604 = vmatpush.bf16.msrb.mxu1 %v4218_v47  ;;  %v313_v15 = vsel %vm312_vm3, %v309_v7, %v311_v18  ;;  %v4043_v44 = vld [vmem:[#allocation3 + $0x3f0] sm:$0xf0]  ;;  %v4862_v47 = vld [vmem:[#allocation3 + $0x5e4] sm:$0xf]  ;;  %s5987_s9 = sld [smem:[#allocation29_spill]] }
  0xf9   :  { %1617 = vmatpush.bf16.msrb.mxu2 %v3582_v48  ;;  %v317_v24 = vmul.f32 %v313_v15, %v302_v13  ;;  %v338_v25 = vsel %vm310_vm2, %v334_v19, %v335_v20  ;;  %v4171_v46 = vld [vmem:[#allocation3 + $0x4f0] sm:$0xf0]  ;;  %v4794_v54 = vld [vmem:[#allocation3 + $0x3c4] sm:$0xf]  ;;  %v4046_v61 = vor.u32 %v4798_v43, %v4043_v44  ;;  %vm2885_vm2 = vcmask 130048  }
  0xfa   :  { %1630 = vmatpush.bf16.msrb.mxu3 %v3710_v52  ;;  %v339_v26 = vsel %vm312_vm3, %v337_v14, %v338_v25  ;;  %v4299_v48 = vld [vmem:[#allocation3 + $0x5f0] sm:$0xf0]  ;;  %v4762_v52 = vld [vmem:[#allocation3 + $0x2c4] sm:$0xf] }
  0xfb   :  { %1592 = vmatpush.bf16.msrb.mxu0 %v4074_v60  ;;  %v343_v27 = vmul.f32 %v339_v26, %v319_v22  ;;  %v3899_v53 = vld [vmem:[#allocation3 + $0x2d0] sm:$0xf0]  ;;  %v3918_v60 = vor.u32 %v4766_v41, %v3915_v42  ;;  %v4826_v2 = vld [vmem:[#allocation3 + $0x4c4] sm:$0xf] }
  0xfc   :  { %1605 = vmatpush.bf16.msrb.mxu1 %v4202_v0  ;;  %v299_v28 = vld.sshfl [vmem:[#allocation1 + $0x8] sm:$0xff pattern:$0x73625140]  ;;  %v298_v29 = vld.sshfl [vmem:[#allocation1] sm:$0xff pattern:$0x73625140]  ;;  %v4174_v0 = vor.u32 %v4830_v45, %v4171_v46  ;;  %v3902_v6 = vor.u32 %v4762_v52, %v3899_v53 }
  0xfd   :  { %1618 = vmatpush.bf16.msrb.mxu2 %v3566_v1  ;;  %v345_v30 = vadd.f32 %v343_v27, %v317_v24  ;;  %v307_v31 = vrot.slane %v299_v28, 6  ;;  %v325_v32 = vsub.f32 1.0, %v298_v29  ;;  %v326_v33 = vsub.f32 1.0, %v299_v28  ;;  %v4027_v55 = vld [vmem:[#allocation3 + $0x3d0] sm:$0xf0] }
  0xfe   :  { %1631 = vmatpush.bf16.msrb.mxu3 %v3694_v8  ;;  %v4302_v1 = vor.u32 %v4862_v47, %v4299_v48  ;;  %v4155_v3 = vld [vmem:[#allocation3 + $0x4d0] sm:$0xf0]  ;;  %v4858_v4 = vld [vmem:[#allocation3 + $0x5c4] sm:$0xf]  ;;  %v4030_v7 = vor.u32 %v4794_v54, %v4027_v55 }
  0xff   :  { %1593 = vmatpush.bf16.msrb.mxu0 %v4058_v16  ;;  %347 = vst [vmem:[%s5497_s29] sm:$0xff] %v345_v30  ;;  %v314_v35 = vsel %vm308_vm1, %v298_v29, %v307_v31  ;;  %v336_v37 = vrot.slane %v326_v33, 6  ;;  %v4283_v5 = vld [vmem:[#allocation3 + $0x5d0] sm:$0xf0]  ;;  %v4758_v8 = vld [vmem:[#allocation3 + $0x2a4] sm:$0xf]  ;;  %v4158_v10 = vor.u32 %v4826_v2, %v4155_v3 }
 0x100   :  { %1606 = vmatpush.bf16.msrb.mxu1 %v4186_v17  ;;  %351 = vst [vmem:[#allocation1] ss:$4 sm:$0xff] %v345_v30  ;;  %v318_v38 = vmul.f32 %v314_v35, %v303_v34  ;;  %v3883_v9 = vld [vmem:[#allocation3 + $0x2b0] sm:$0xf0]  ;;  %v4286_v11 = vor.u32 %v4858_v4, %v4283_v5  ;;  %v4790_v12 = vld [vmem:[#allocation3 + $0x3a4] sm:$0xf] }
 0x101   :  { %1619 = vmatpush.bf16.msrb.mxu2 %v3550_v21  ;;  %v340_v39 = vsel %vm308_vm1, %v325_v32, %v336_v37  ;;  %v4011_v13 = vld [vmem:[#allocation3 + $0x3b0] sm:$0xf0]  ;;  %v4822_v14 = vld [vmem:[#allocation3 + $0x4a4] sm:$0xf]  ;;  %v3886_v19 = vor.u32 %v4758_v8, %v3883_v9 }
 0x102   :  { %1632 = vmatpush.bf16.msrb.mxu3 %v3678_v23  ;;  %v344_v40 = vmul.f32 %v340_v39, %v320_v36  ;;  %v4139_v16 = vld [vmem:[#allocation3 + $0x4b0] sm:$0xf0]  ;;  %v4854_v17 = vld [vmem:[#allocation3 + $0x5a4] sm:$0xf]  ;;  %v4014_v20 = vor.u32 %v4790_v12, %v4011_v13 }
 0x103   :  { %v4267_v18 = vld [vmem:[#allocation3 + $0x5b0] sm:$0xf0]  ;;  %v4754_v21 = vld [vmem:[#allocation3 + $0x284] sm:$0xf]  ;;  %v4142_v22 = vor.u32 %v4822_v14, %v4139_v16 }
 0x104   :  { %v346_v49 = vadd.f32 %v344_v40, %v318_v38  ;;  %v3867_v15 = vld [vmem:[#allocation3 + $0x290] sm:$0xf0]  ;;  %v4270_v23 = vor.u32 %v4854_v17, %v4267_v18  ;;  %v4786_v24 = vld [vmem:[#allocation3 + $0x384] sm:$0xf] }
 0x105   :  { %v3995_v25 = vld [vmem:[#allocation3 + $0x390] sm:$0xf0]  ;;  %v4818_v26 = vld [vmem:[#allocation3 + $0x484] sm:$0xf]  ;;  %v3870_v33 = vor.u32 %v4754_v21, %v3867_v15 }
 0x106   :  { %348 = vst [vmem:[%s5497_s29 + $0x8] sm:$0xf] %v346_v49  ;;  %v4123_v27 = vld [vmem:[#allocation3 + $0x490] sm:$0xf0]  ;;  %v4850_v28 = vld [vmem:[#allocation3 + $0x584] sm:$0xf]  ;;  %v3998_v34 = vor.u32 %v4786_v24, %v3995_v25 }
 0x107   :  { %v356_v50 = vld.sshfl [vmem:[#allocation1 + $0x10] sm:$0xff pattern:$0x73625140]  ;;  %v354_v51 = vld.sshfl [vmem:[#allocation1] sm:$0xff pattern:$0x73625140]  ;;  %v4126_v36 = vor.u32 %v4818_v26, %v4123_v27 }
 0x108   :  { %v5600_v56 = vpack.c.bf16 %v356_v50, %v356_v50  ;;  %v5602_v57 = vpack.c.bf16 %v354_v51, %v354_v51  ;;  %v357_v58 = vld.sshfl [vmem:[#allocation1 + $0x18] sm:$0xff pattern:$0x73625140]  ;;  %v355_v59 = vld.sshfl [vmem:[#allocation1 + $0x8] sm:$0xff pattern:$0x73625140] }
 0x109   :  { %v5604_v62 = vpack.c.bf16 %v357_v58, %v357_v58  ;;  %v5606_v63 = vpack.c.bf16 %v355_v59, %v355_v59  ;;  %353 = vst [vmem:[#allocation1 + $0x20] ss:$4 sm:$0xff] %v346_v49  ;;  %v4251_v29 = vld [vmem:[#allocation3 + $0x590] sm:$0xf0]  ;;  %v4750_v31 = vld [vmem:[#allocation3 + $0x264] sm:$0xf] }
 0x10a   :  { %1568 = vmatmul.bf16.vlgmr.msra.gmra.mxu2 %v5600_v56  ;;  %1542 = vmatmul.bf16.vlgmr.msra.gmra.mxu0 %v5602_v57  ;;  %v3851_v35 = vld [vmem:[#allocation3 + $0x270] sm:$0xf0]  ;;  %v4254_v37 = vor.u32 %v4850_v28, %v4251_v29  ;;  %v4782_v38 = vld [vmem:[#allocation3 + $0x364] sm:$0xf]  ;;  %v3793_v24 = vld [vmem:[#allocation3 + $0x1e8] sm:$0xf] }
 0x10b   :  { %1581 = vmatmul.bf16.vlgmr.msra.gmra.mxu3 %v5604_v62  ;;  %1555 = vmatmul.bf16.vlgmr.msra.gmra.mxu1 %v5606_v63  ;;  %v3979_v39 = vld [vmem:[#allocation3 + $0x370] sm:$0xf0]  ;;  %v4814_v40 = vld [vmem:[#allocation3 + $0x464] sm:$0xf]  ;;  %v3854_v46 = vor.u32 %v4750_v31, %v3851_v35  ;;  %v4737_v25 = vld [vmem:[#allocation3 + $0x1f4] sm:$0xf0] }
 0x10c   :  { %1638 = vmatpush.bf16.msra.mxu0 %v3918_v60  ;;  %1651 = vmatpush.bf16.msra.mxu1 %v4046_v61  ;;  %v4107_v42 = vld [vmem:[#allocation3 + $0x470] sm:$0xf0]  ;;  %v4846_v43 = vld [vmem:[#allocation3 + $0x564] sm:$0xf]  ;;  %v3982_v47 = vor.u32 %v4782_v38, %v3979_v39  ;;  %v3921_v26 = vld [vmem:[#allocation3 + $0x2e8] sm:$0xf]  ;;  %v3794_v35 = vor.u32 %v4737_v25, %v3793_v24 }
 0x10d   :  { %1664 = vmatpush.bf16.msra.mxu2 %v4174_v0  ;;  %1677 = vmatpush.bf16.msra.mxu3 %v4302_v1  ;;  %v4235_v44 = vld [vmem:[#allocation3 + $0x570] sm:$0xf0]  ;;  %v4746_v48 = vld [vmem:[#allocation3 + $0x244] sm:$0xf]  ;;  %v4110_v50 = vor.u32 %v4814_v40, %v4107_v42  ;;  %v4769_v29 = vld [vmem:[#allocation3 + $0x2f4] sm:$0xf0] }
 0x10e   :  { %v3835_v49 = vld [vmem:[#allocation3 + $0x250] sm:$0xf0]  ;;  %v4238_v51 = vor.u32 %v4846_v43, %v4235_v44  ;;  %v4778_v52 = vld [vmem:[#allocation3 + $0x344] sm:$0xf]  ;;  %v4801_v31 = vld [vmem:[#allocation3 + $0x3f4] sm:$0xf0]  ;;  %v3922_v38 = vor.u32 %v4769_v29, %v3921_v26 }
 0x10f   :  { %v3963_v53 = vld [vmem:[#allocation3 + $0x350] sm:$0xf0]  ;;  %v4810_v54 = vld [vmem:[#allocation3 + $0x444] sm:$0xf]  ;;  %v3838_v60 = vor.u32 %v4746_v48, %v3835_v49  ;;  %v3777_v40 = vld [vmem:[#allocation3 + $0x1c8] sm:$0xf] }
 0x110   :  { %1639 = vmatpush.bf16.msra.mxu0 %v3902_v6  ;;  %1652 = vmatpush.bf16.msra.mxu1 %v4030_v7  ;;  %v358_v30 = vld.sshfl [vmem:[#allocation1 + $0x20] sm:$0xff pattern:$0x73625140]  ;;  %v359_v32 = vld.sshfl [vmem:[#allocation1 + $0x28] sm:$0xff pattern:$0x73625140]  ;;  %v3966_v61 = vor.u32 %v4778_v52, %v3963_v53 }
 0x111   :  { %1665 = vmatpush.bf16.msra.mxu2 %v4158_v10  ;;  %1678 = vmatpush.bf16.msra.mxu3 %v4286_v11  ;;  %v5613_v41 = vpack.c.bf16 %v358_v30, %v358_v30  ;;  %v5615_v45 = vpack.c.bf16 %v359_v32, %v359_v32  ;;  %v4091_v55 = vld [vmem:[#allocation3 + $0x450] sm:$0xf0]  ;;  %v4842_v58 = vld [vmem:[#allocation3 + $0x544] sm:$0xf]  ;;  %v4049_v30 = vld [vmem:[#allocation3 + $0x3e8] sm:$0xf] }
 0x112   :  { %v4219_v59 = vld [vmem:[#allocation3 + $0x550] sm:$0xf0]  ;;  %v4742_v0 = vld [vmem:[#allocation3 + $0x224] sm:$0xf]  ;;  %v4094_v2 = vor.u32 %v4810_v54, %v4091_v55  ;;  %v4050_v39 = vor.u32 %v4801_v31, %v4049_v30  ;;  %v4733_v42 = vld [vmem:[#allocation3 + $0x1d4] sm:$0xf0] }
 0x113   :  { %v3819_v1 = vld [vmem:[#allocation3 + $0x230] sm:$0xf0]  ;;  %v4222_v3 = vor.u32 %v4842_v58, %v4219_v59  ;;  %v4774_v4 = vld [vmem:[#allocation3 + $0x324] sm:$0xf]  ;;  %v3905_v43 = vld [vmem:[#allocation3 + $0x2c8] sm:$0xf]  ;;  %v3778_v49 = vor.u32 %v4733_v42, %v3777_v40 }
 0x114   :  { %1640 = vmatpush.bf16.msra.mxu0 %v3886_v19  ;;  %1653 = vmatpush.bf16.msra.mxu1 %v4014_v20  ;;  %v3947_v5 = vld [vmem:[#allocation3 + $0x330] sm:$0xf0]  ;;  %v4806_v6 = vld [vmem:[#allocation3 + $0x424] sm:$0xf]  ;;  %v3822_v11 = vor.u32 %v4742_v0, %v3819_v1  ;;  %v4765_v44 = vld [vmem:[#allocation3 + $0x2d4] sm:$0xf0] }
 0x115   :  { %1666 = vmatpush.bf16.msra.mxu2 %v4142_v22  ;;  %1679 = vmatpush.bf16.msra.mxu3 %v4270_v23  ;;  %v4075_v7 = vld [vmem:[#allocation3 + $0x430] sm:$0xf0]  ;;  %v4838_v8 = vld [vmem:[#allocation3 + $0x524] sm:$0xf]  ;;  %v3950_v12 = vor.u32 %v4774_v4, %v3947_v5  ;;  %v3665_v22 = vld [vmem:[#allocation3 + $0xe8] sm:$0xf]  ;;  %v3906_v52 = vor.u32 %v4765_v44, %v3905_v43 }
 0x116   :  { %v4203_v9 = vld [vmem:[#allocation3 + $0x530] sm:$0xf0]  ;;  %v4738_v10 = vld [vmem:[#allocation3 + $0x204] sm:$0xf]  ;;  %v4078_v17 = vor.u32 %v4806_v6, %v4075_v7  ;;  %v4705_v23 = vld [vmem:[#allocation3 + $0xf4] sm:$0xf0] }
 0x117   :  { %v3803_v13 = vld [vmem:[#allocation3 + $0x210] sm:$0xf0]  ;;  %v4770_v14 = vld [vmem:[#allocation3 + $0x304] sm:$0xf]  ;;  %v4206_v18 = vor.u32 %v4838_v8, %v4203_v9  ;;  %v3761_v54 = vld [vmem:[#allocation3 + $0x1a8] sm:$0xf] }
 0x118   :  { %1641 = vmatpush.bf16.msra.mxu0 %v3870_v33  ;;  %1654 = vmatpush.bf16.msra.mxu1 %v3998_v34  ;;  %v3931_v16 = vld [vmem:[#allocation3 + $0x310] sm:$0xf0]  ;;  %v4802_v19 = vld [vmem:[#allocation3 + $0x404] sm:$0xf]  ;;  %v3806_v27 = vor.u32 %v4738_v10, %v3803_v13  ;;  %v3666_v34 = vor.u32 %v4705_v23, %v3665_v22  ;;  %v4729_v55 = vld [vmem:[#allocation3 + $0x1b4] sm:$0xf0] }
 0x119   :  { %1667 = vmatpush.bf16.msra.mxu2 %v4126_v36  ;;  %1680 = vmatpush.bf16.msra.mxu3 %v4254_v37  ;;  %v4059_v20 = vld [vmem:[#allocation3 + $0x410] sm:$0xf0]  ;;  %v4834_v21 = vld [vmem:[#allocation3 + $0x504] sm:$0xf]  ;;  %v3934_v28 = vor.u32 %v4770_v14, %v3931_v16  ;;  %v3649_v36 = vld [vmem:[#allocation3 + $0xc8] sm:$0xf]  ;;  %v3762_v1 = vor.u32 %v4729_v55, %v3761_v54 }
 0x11a   :  { %1594 = vmatmul.bf16.vlgmr.msrb.gmra.mxu0 %v5613_v41  ;;  %1620 = vmatmul.bf16.vlgmr.msrb.gmra.mxu2 %v5602_v57  ;;  %v4187_v15 = vld [vmem:[#allocation3 + $0x510] sm:$0xf0]  ;;  %v4062_v32 = vor.u32 %v4802_v19, %v4059_v20  ;;  %v4701_v37 = vld [vmem:[#allocation3 + $0xd4] sm:$0xf0]  ;;  %v3889_v58 = vld [vmem:[#allocation3 + $0x2a8] sm:$0xf] }
 0x11b   :  { %1607 = vmatmul.bf16.vlgmr.msrb.gmra.mxu1 %v5615_v45  ;;  %1633 = vmatmul.bf16.vlgmr.msrb.gmra.mxu3 %v5606_v63  ;;  %v4190_v33 = vor.u32 %v4834_v21, %v4187_v15  ;;  %v3650_v48 = vor.u32 %v4701_v37, %v3649_v36  ;;  %v4761_v59 = vld [vmem:[#allocation3 + $0x2b4] sm:$0xf0]  ;;  %v3745_v6 = vld [vmem:[#allocation3 + $0x188] sm:$0xf]  ;;  %s5990_s29 = sld [smem:[#allocation32_spill]] }
 0x11c   :  { %1642 = vmatpush.bf16.msra.mxu0 %v3854_v46  ;;  %1655 = vmatpush.bf16.msra.mxu1 %v3982_v47  ;;  %v4033_v46 = vld [vmem:[#allocation3 + $0x3c8] sm:$0xf]  ;;  %v4797_v47 = vld [vmem:[#allocation3 + $0x3d4] sm:$0xf0]  ;;  %v3890_v4 = vor.u32 %v4761_v59, %v3889_v58 }
 0x11d   :  { %1668 = vmatpush.bf16.msra.mxu2 %v4110_v50  ;;  %1681 = vmatpush.bf16.msra.mxu3 %v4238_v51  ;;  %v3633_v50 = vld [vmem:[#allocation3 + $0xa8] sm:$0xf]  ;;  %v4697_v51 = vld [vmem:[#allocation3 + $0xb4] sm:$0xf0]  ;;  %v4034_v53 = vor.u32 %v4797_v47, %v4033_v46 }
 0x11e   :  { %v3634_v0 = vor.u32 %v4697_v51, %v3633_v50  ;;  %v4725_v7 = vld [vmem:[#allocation3 + $0x194] sm:$0xf0]  ;;  %v3873_v8 = vld [vmem:[#allocation3 + $0x288] sm:$0xf] }
 0x11f   :  { %v4757_v9 = vld [vmem:[#allocation3 + $0x294] sm:$0xf0]  ;;  %v4001_v10 = vld [vmem:[#allocation3 + $0x388] sm:$0xf]  ;;  %v3746_v13 = vor.u32 %v4725_v7, %v3745_v6  ;;  %v4703_v6 = vld [vmem:[#allocation3 + $0xec] sm:$0xf] }
 0x120   :  { %1643 = vmatpush.bf16.msra.mxu0 %v3838_v60  ;;  %1656 = vmatpush.bf16.msra.mxu1 %v3966_v61  ;;  %v4017_v60 = vld [vmem:[#allocation3 + $0x3a8] sm:$0xf]  ;;  %v4793_v61 = vld [vmem:[#allocation3 + $0x3b4] sm:$0xf0] }
 0x121   :  { %1669 = vmatpush.bf16.msra.mxu2 %v4094_v2  ;;  %1682 = vmatpush.bf16.msra.mxu3 %v4222_v3  ;;  %v3617_v2 = vld [vmem:[#allocation3 + $0x88] sm:$0xf]  ;;  %v4693_v3 = vld [vmem:[#allocation3 + $0x94] sm:$0xf0]  ;;  %v4018_v5 = vor.u32 %v4793_v61, %v4017_v60 }
 0x122   :  { %v3601_v14 = vld [vmem:[#allocation3 + $0x68] sm:$0xf]  ;;  %v4689_v16 = vld [vmem:[#allocation3 + $0x74] sm:$0xf0] }
 0x123   :  { %v3729_v19 = vld [vmem:[#allocation3 + $0x168] sm:$0xf]  ;;  %v4721_v20 = vld [vmem:[#allocation3 + $0x174] sm:$0xf0]  ;;  %v3602_v24 = vor.u32 %v4689_v16, %v3601_v14 }
 0x124   :  { %1644 = vmatpush.bf16.msra.mxu0 %v3822_v11  ;;  %1657 = vmatpush.bf16.msra.mxu1 %v3950_v12  ;;  %v4789_v11 = vld [vmem:[#allocation3 + $0x394] sm:$0xf0]  ;;  %v3618_v12 = vor.u32 %v4693_v3, %v3617_v2  ;;  %v3857_v21 = vld [vmem:[#allocation3 + $0x268] sm:$0xf]  ;;  %v3730_v25 = vor.u32 %v4721_v20, %v3729_v19 }
 0x125   :  { %1670 = vmatpush.bf16.msra.mxu2 %v4078_v17  ;;  %1683 = vmatpush.bf16.msra.mxu3 %v4206_v18  ;;  %v3874_v17 = vor.u32 %v4757_v9, %v3873_v8  ;;  %v4002_v18 = vor.u32 %v4789_v11, %v4001_v10  ;;  %v4753_v15 = vld [vmem:[#allocation3 + $0x274] sm:$0xf0]  ;;  %v3985_v22 = vld [vmem:[#allocation3 + $0x368] sm:$0xf]  ;;  %v3667_v9 = vld [vmem:[#allocation3 + $0xf8] sm:$0xf0] }
 0x126   :  { %v4785_v23 = vld [vmem:[#allocation3 + $0x374] sm:$0xf0]  ;;  %v3585_v26 = vld [vmem:[#allocation3 + $0x48] sm:$0xf]  ;;  %v4735_v10 = vld [vmem:[#allocation3 + $0x1ec] sm:$0xf]  ;;  %v3670_v19 = vor.u32 %v4703_v6, %v3667_v9 }
 0x127   :  { %v3986_v29 = vor.u32 %v4785_v23, %v3985_v22  ;;  %v3713_v30 = vld [vmem:[#allocation3 + $0x148] sm:$0xf]  ;;  %v4717_v31 = vld [vmem:[#allocation3 + $0x154] sm:$0xf0]  ;;  %v3795_v11 = vld [vmem:[#allocation3 + $0x1f8] sm:$0xf0] }
 0x128   :  { %1645 = vmatpush.bf16.msra.mxu0 %v3806_v27  ;;  %1658 = vmatpush.bf16.msra.mxu1 %v3934_v28  ;;  %v4685_v27 = vld [vmem:[#allocation3 + $0x54] sm:$0xf0]  ;;  %v3858_v28 = vor.u32 %v4753_v15, %v3857_v21  ;;  %v3714_v37 = vor.u32 %v4717_v31, %v3713_v30  ;;  %v3697_v43 = vld [vmem:[#allocation3 + $0x128] sm:$0xf]  ;;  %v3798_v20 = vor.u32 %v4735_v10, %v3795_v11  ;;  %v4699_v22 = vld [vmem:[#allocation3 + $0xcc] sm:$0xf] }
 0x129   :  { %1671 = vmatpush.bf16.msra.mxu2 %v4062_v32  ;;  %1684 = vmatpush.bf16.msra.mxu3 %v4190_v33  ;;  %v3841_v32 = vld [vmem:[#allocation3 + $0x248] sm:$0xf]  ;;  %v4749_v33 = vld [vmem:[#allocation3 + $0x254] sm:$0xf0]  ;;  %v3586_v36 = vor.u32 %v4685_v27, %v3585_v26  ;;  %v3651_v23 = vld [vmem:[#allocation3 + $0xd8] sm:$0xf0] }
 0x12a   :  { %v3842_v40 = vor.u32 %v4749_v33, %v3841_v32  ;;  %v4713_v44 = vld [vmem:[#allocation3 + $0x134] sm:$0xf0]  ;;  %v3825_v46 = vld [vmem:[#allocation3 + $0x228] sm:$0xf]  ;;  %v3654_v30 = vor.u32 %v4699_v22, %v3651_v23 }
 0x12b   :  { %1646 = vmatmul.bf16.vlgmr.msra.gmra.mxu0 %v5600_v56  ;;  %1659 = vmatmul.bf16.vlgmr.msra.gmra.mxu1 %v5604_v62  ;;  %v4745_v47 = vld [vmem:[#allocation3 + $0x234] sm:$0xf0]  ;;  %v3553_v50 = vld [vmem:[#allocation3 + $0x8] sm:$0xf] }
 0x12c   :  { %1690 = vmatpush.bf16.msrb.mxu0 %v3666_v34  ;;  %1703 = vmatpush.bf16.msrb.mxu1 %v3794_v35  ;;  %v3969_v34 = vld [vmem:[#allocation3 + $0x348] sm:$0xf]  ;;  %v4781_v35 = vld [vmem:[#allocation3 + $0x354] sm:$0xf0]  ;;  %v3826_v58 = vor.u32 %v4745_v47, %v3825_v46 }
 0x12d   :  { %1716 = vmatpush.bf16.msrb.mxu2 %v3922_v38  ;;  %1729 = vmatpush.bf16.msrb.mxu3 %v4050_v39  ;;  %v3569_v38 = vld [vmem:[#allocation3 + $0x28] sm:$0xf]  ;;  %v4681_v39 = vld [vmem:[#allocation3 + $0x34] sm:$0xf0]  ;;  %v3970_v42 = vor.u32 %v4781_v35, %v3969_v34  ;;  %v4695_v34 = vld [vmem:[#allocation3 + $0xac] sm:$0xf] }
 0x12e   :  { %1672 = vmatmul.bf16.vlgmr.msra.gmra.mxu2 %v5613_v41  ;;  %1685 = vmatmul.bf16.vlgmr.msra.gmra.mxu3 %v5615_v45  ;;  %v3570_v51 = vor.u32 %v4681_v39, %v3569_v38  ;;  %v3681_v54 = vld [vmem:[#allocation3 + $0x108] sm:$0xf]  ;;  %v4709_v55 = vld [vmem:[#allocation3 + $0x114] sm:$0xf0]  ;;  %v3635_v35 = vld [vmem:[#allocation3 + $0xb8] sm:$0xf0] }
 0x12f   :  { %v3809_v60 = vld [vmem:[#allocation3 + $0x208] sm:$0xf]  ;;  %v4741_v61 = vld [vmem:[#allocation3 + $0x214] sm:$0xf0]  ;;  %v3682_v8 = vor.u32 %v4709_v55, %v3681_v54 }
 0x130   :  { %1691 = vmatpush.bf16.msrb.mxu0 %v3650_v48  ;;  %1704 = vmatpush.bf16.msrb.mxu1 %v3778_v49  ;;  %v3953_v48 = vld [vmem:[#allocation3 + $0x328] sm:$0xf]  ;;  %v4777_v49 = vld [vmem:[#allocation3 + $0x334] sm:$0xf0] }
 0x131   :  { %1717 = vmatpush.bf16.msrb.mxu2 %v3906_v52  ;;  %1730 = vmatpush.bf16.msrb.mxu3 %v4034_v53  ;;  %v3698_v52 = vor.u32 %v4713_v44, %v3697_v43  ;;  %v4677_v53 = vld [vmem:[#allocation3 + $0x14] sm:$0xf0]  ;;  %v3954_v59 = vor.u32 %v4777_v49, %v3953_v48  ;;  %v4177_v2 = vld [vmem:[#allocation3 + $0x4e8] sm:$0xf]  ;;  %v3638_v43 = vor.u32 %v4695_v34, %v3635_v35  ;;  %v4691_v48 = vld [vmem:[#allocation3 + $0x8c] sm:$0xf] }
 0x132   :  { %v4833_v3 = vld [vmem:[#allocation3 + $0x4f4] sm:$0xf0]  ;;  %v3554_v7 = vor.u32 %v4677_v53, %v3553_v50  ;;  %v4289_v21 = vld [vmem:[#allocation3 + $0x5c8] sm:$0xf]  ;;  %v3619_v49 = vld [vmem:[#allocation3 + $0x98] sm:$0xf0] }
 0x133   :  { %v4178_v14 = vor.u32 %v4833_v3, %v4177_v2  ;;  %v4861_v15 = vld [vmem:[#allocation3 + $0x5d4] sm:$0xf0]  ;;  %v4273_v32 = vld [vmem:[#allocation3 + $0x5a8] sm:$0xf]  ;;  %v4723_v50 = vld [vmem:[#allocation3 + $0x18c] sm:$0xf] }
 0x134   :  { %1692 = vmatpush.bf16.msrb.mxu0 %v3634_v0  ;;  %1705 = vmatpush.bf16.msrb.mxu1 %v3762_v1  ;;  %v3937_v0 = vld [vmem:[#allocation3 + $0x308] sm:$0xf]  ;;  %v4773_v1 = vld [vmem:[#allocation3 + $0x314] sm:$0xf0]  ;;  %v4290_v27 = vor.u32 %v4861_v15, %v4289_v21  ;;  %v4719_v2 = vld [vmem:[#allocation3 + $0x16c] sm:$0xf] }
 0x135   :  { %1718 = vmatpush.bf16.msrb.mxu2 %v3890_v4  ;;  %1731 = vmatpush.bf16.msrb.mxu3 %v4018_v5  ;;  %v4305_v4 = vld [vmem:[#allocation3 + $0x5e8] sm:$0xf]  ;;  %v4865_v5 = vld [vmem:[#allocation3 + $0x5f4] sm:$0xf0]  ;;  %v3731_v3 = vld [vmem:[#allocation3 + $0x178] sm:$0xf0] }
 0x136   :  { %v4306_v16 = vor.u32 %v4865_v5, %v4305_v4  ;;  %v4857_v33 = vld [vmem:[#allocation3 + $0x5b4] sm:$0xf0]  ;;  %v4257_v46 = vld [vmem:[#allocation3 + $0x588] sm:$0xf]  ;;  %v3734_v9 = vor.u32 %v4719_v2, %v3731_v3  ;;  %v4827_v2 = vld [vmem:[#allocation3 + $0x4cc] sm:$0xf] }
 0x137   :  { %v4274_v39 = vor.u32 %v4857_v33, %v4273_v32  ;;  %v4853_v47 = vld [vmem:[#allocation3 + $0x594] sm:$0xf0]  ;;  %v4113_v54 = vld [vmem:[#allocation3 + $0x468] sm:$0xf]  ;;  %v4163_v3 = vld [vmem:[#allocation3 + $0x4d8] sm:$0xf0] }
 0x138   :  { %1693 = vmatpush.bf16.msrb.mxu0 %v3618_v12  ;;  %1706 = vmatpush.bf16.msrb.mxu1 %v3746_v13  ;;  %v3810_v12 = vor.u32 %v4741_v61, %v3809_v60  ;;  %v3938_v13 = vor.u32 %v4773_v1, %v3937_v0  ;;  %v4258_v53 = vor.u32 %v4853_v47, %v4257_v46  ;;  %v4817_v55 = vld [vmem:[#allocation3 + $0x474] sm:$0xf0]  ;;  %v4241_v60 = vld [vmem:[#allocation3 + $0x568] sm:$0xf]  ;;  %v4687_v0 = vld [vmem:[#allocation3 + $0x6c] sm:$0xf] }
 0x139   :  { %1719 = vmatpush.bf16.msrb.mxu2 %v3874_v17  ;;  %1732 = vmatpush.bf16.msrb.mxu3 %v4002_v18  ;;  %v4161_v17 = vld [vmem:[#allocation3 + $0x4c8] sm:$0xf]  ;;  %v4829_v18 = vld [vmem:[#allocation3 + $0x4d4] sm:$0xf0]  ;;  %v3603_v1 = vld [vmem:[#allocation3 + $0x78] sm:$0xf0]  ;;  %v4114_v4 = vor.u32 %v4817_v55, %v4113_v54 }
 0x13a   :  { %v4162_v26 = vor.u32 %v4829_v18, %v4161_v17  ;;  %v4849_v61 = vld [vmem:[#allocation3 + $0x574] sm:$0xf0]  ;;  %v4097_v6 = vld [vmem:[#allocation3 + $0x448] sm:$0xf]  ;;  %v4831_v46 = vld [vmem:[#allocation3 + $0x4ec] sm:$0xf] }
 0x13b   :  { %v4242_v5 = vor.u32 %v4849_v61, %v4241_v60  ;;  %v4225_v10 = vld [vmem:[#allocation3 + $0x548] sm:$0xf]  ;;  %v4845_v11 = vld [vmem:[#allocation3 + $0x554] sm:$0xf0] }
 0x13c   :  { %1694 = vmatpush.bf16.msrb.mxu0 %v3602_v24  ;;  %1707 = vmatpush.bf16.msrb.mxu1 %v3730_v25  ;;  %v4731_v24 = vld [vmem:[#allocation3 + $0x1cc] sm:$0xf]  ;;  %v3779_v25 = vld [vmem:[#allocation3 + $0x1d8] sm:$0xf0]  ;;  %v4226_v18 = vor.u32 %v4845_v11, %v4225_v10  ;;  %v4209_v22 = vld [vmem:[#allocation3 + $0x528] sm:$0xf]  ;;  %v4166_v10 = vor.u32 %v4827_v2, %v4163_v3 }
 0x13d   :  { %1720 = vmatpush.bf16.msrb.mxu2 %v3858_v28  ;;  %1733 = vmatpush.bf16.msrb.mxu3 %v3986_v29  ;;  %v4145_v28 = vld [vmem:[#allocation3 + $0x4a8] sm:$0xf]  ;;  %v4825_v29 = vld [vmem:[#allocation3 + $0x4b4] sm:$0xf0]  ;;  %v3782_v31 = vor.u32 %v4731_v24, %v3779_v25  ;;  %v4679_v24 = vld [vmem:[#allocation3 + $0x2c] sm:$0xf] }
 0x13e   :  { %v4146_v38 = vor.u32 %v4825_v29, %v4145_v28  ;;  %v4841_v23 = vld [vmem:[#allocation3 + $0x534] sm:$0xf0]  ;;  %v3571_v25 = vld [vmem:[#allocation3 + $0x38] sm:$0xf0]  ;;  %v4065_v28 = vld [vmem:[#allocation3 + $0x408] sm:$0xf] }
 0x13f   :  { %v4193_v32 = vld [vmem:[#allocation3 + $0x508] sm:$0xf]  ;;  %v4837_v33 = vld [vmem:[#allocation3 + $0x514] sm:$0xf0]  ;;  %v3574_v34 = vor.u32 %v4679_v24, %v3571_v25  ;;  %v4787_v24 = vld [vmem:[#allocation3 + $0x38c] sm:$0xf] }
 0x140   :  { %1695 = vmatpush.bf16.msrb.mxu0 %v3586_v36  ;;  %1708 = vmatpush.bf16.msrb.mxu1 %v3714_v37  ;;  %v4727_v36 = vld [vmem:[#allocation3 + $0x1ac] sm:$0xf]  ;;  %v3763_v37 = vld [vmem:[#allocation3 + $0x1b8] sm:$0xf0] }
 0x141   :  { %1721 = vmatpush.bf16.msrb.mxu2 %v3842_v40  ;;  %1734 = vmatpush.bf16.msrb.mxu3 %v3970_v42  ;;  %v4129_v40 = vld [vmem:[#allocation3 + $0x488] sm:$0xf]  ;;  %v4821_v42 = vld [vmem:[#allocation3 + $0x494] sm:$0xf0]  ;;  %v3766_v44 = vor.u32 %v4727_v36, %v3763_v37  ;;  %v4675_v36 = vld [vmem:[#allocation3 + $0xc] sm:$0xf] }
 0x142   :  { %v3555_v37 = vld [vmem:[#allocation3 + $0x18] sm:$0xf0]  ;;  %v4807_v2 = vld [vmem:[#allocation3 + $0x42c] sm:$0xf] }
 0x143   :  { %v4003_v25 = vld [vmem:[#allocation3 + $0x398] sm:$0xf0] }
 0x144   :  { %1696 = vmatpush.bf16.msrb.mxu0 %v3570_v51  ;;  %1709 = vmatpush.bf16.msrb.mxu1 %v3698_v52  ;;  %v3747_v51 = vld [vmem:[#allocation3 + $0x198] sm:$0xf0]  ;;  %v4130_v52 = vor.u32 %v4821_v42, %v4129_v40  ;;  %v4767_v40 = vld [vmem:[#allocation3 + $0x2ec] sm:$0xf] }
 0x145   :  { %1722 = vmatpush.bf16.msrb.mxu2 %v3826_v58  ;;  %1735 = vmatpush.bf16.msrb.mxu3 %v3954_v59  ;;  %v3622_v58 = vor.u32 %v4691_v48, %v3619_v49  ;;  %v3750_v59 = vor.u32 %v4723_v50, %v3747_v51  ;;  %v3923_v42 = vld [vmem:[#allocation3 + $0x2f8] sm:$0xf0]  ;;  %v4194_v48 = vor.u32 %v4837_v33, %v4193_v32  ;;  %v4863_v50 = vld [vmem:[#allocation3 + $0x5ec] sm:$0xf] }
 0x146   :  { %v4179_v49 = vld [vmem:[#allocation3 + $0x4f8] sm:$0xf0]  ;;  %v3926_v54 = vor.u32 %v4767_v40, %v3923_v42 }
 0x147   :  { %v4307_v51 = vld [vmem:[#allocation3 + $0x5f8] sm:$0xf0]  ;;  %v4182_v60 = vor.u32 %v4831_v46, %v4179_v49 }
 0x148   :  { %1697 = vmatpush.bf16.msrb.mxu0 %v3554_v7  ;;  %1710 = vmatpush.bf16.msrb.mxu1 %v3682_v8  ;;  %v4813_v7 = vld [vmem:[#allocation3 + $0x454] sm:$0xf0]  ;;  %v3606_v8 = vor.u32 %v4687_v0, %v3603_v1  ;;  %v4310_v61 = vor.u32 %v4863_v50, %v4307_v51  ;;  %v4795_v0 = vld [vmem:[#allocation3 + $0x3cc] sm:$0xf]  ;;  %v4035_v1 = vld [vmem:[#allocation3 + $0x3d8] sm:$0xf0] }
 0x149   :  { %1723 = vmatpush.bf16.msrb.mxu2 %v3810_v12  ;;  %1736 = vmatpush.bf16.msrb.mxu3 %v3938_v13  ;;  %v4683_v12 = vld [vmem:[#allocation3 + $0x4c] sm:$0xf]  ;;  %v3587_v13 = vld [vmem:[#allocation3 + $0x58] sm:$0xf0]  ;;  %v4098_v17 = vor.u32 %v4813_v7, %v4097_v6  ;;  %v4038_v7 = vor.u32 %v4795_v0, %v4035_v1 }
 0x14a   :  { %v3590_v21 = vor.u32 %v4683_v12, %v3587_v13  ;;  %v4791_v12 = vld [vmem:[#allocation3 + $0x3ac] sm:$0xf]  ;;  %v4019_v13 = vld [vmem:[#allocation3 + $0x3b8] sm:$0xf0] }
 0x14b   :  { %1698 = vmatmul.bf16.vlgmr.msrb.gmra.mxu0 %v5602_v57  ;;  %1711 = vmatmul.bf16.vlgmr.msrb.gmra.mxu1 %v5606_v63  ;;  %v3971_v49 = vld [vmem:[#allocation3 + $0x358] sm:$0xf0]  ;;  %v4811_v50 = vld [vmem:[#allocation3 + $0x44c] sm:$0xf] }
 0x14c   :  { %1742 = vmatpush.bf16.msra.mxu0 %v4178_v14  ;;  %1755 = vmatpush.bf16.msra.mxu1 %v4306_v16  ;;  %v4715_v14 = vld [vmem:[#allocation3 + $0x14c] sm:$0xf]  ;;  %v3715_v16 = vld [vmem:[#allocation3 + $0x158] sm:$0xf0] }
 0x14d   :  { %1768 = vmatpush.bf16.msra.mxu2 %v3670_v19  ;;  %1781 = vmatpush.bf16.msra.mxu3 %v3798_v20  ;;  %v4081_v19 = vld [vmem:[#allocation3 + $0x428] sm:$0xf]  ;;  %v4809_v20 = vld [vmem:[#allocation3 + $0x434] sm:$0xf0]  ;;  %v3718_v15 = vor.u32 %v4715_v14, %v3715_v16  ;;  %v4823_v14 = vld [vmem:[#allocation3 + $0x4ac] sm:$0xf] }
 0x14e   :  { %1724 = vmatmul.bf16.vlgmr.msrb.gmra.mxu2 %v5600_v56  ;;  %1737 = vmatmul.bf16.vlgmr.msrb.gmra.mxu3 %v5604_v62  ;;  %v4082_v29 = vor.u32 %v4809_v20, %v4081_v19  ;;  %v4147_v16 = vld [vmem:[#allocation3 + $0x4b8] sm:$0xf0]  ;;  %v4022_v20 = vor.u32 %v4791_v12, %v4019_v13  ;;  %v4775_v0 = vld [vmem:[#allocation3 + $0x32c] sm:$0xf] }
 0x14f   :  { %v4099_v51 = vld [vmem:[#allocation3 + $0x458] sm:$0xf0]  ;;  %v4771_v12 = vld [vmem:[#allocation3 + $0x30c] sm:$0xf] }
 0x150   :  { %1743 = vmatpush.bf16.msra.mxu0 %v4162_v26  ;;  %1756 = vmatpush.bf16.msra.mxu1 %v4290_v27  ;;  %v4711_v26 = vld [vmem:[#allocation3 + $0x12c] sm:$0xf]  ;;  %v3699_v27 = vld [vmem:[#allocation3 + $0x138] sm:$0xf0] }
 0x151   :  { %1769 = vmatpush.bf16.msra.mxu2 %v3654_v30  ;;  %1782 = vmatpush.bf16.msra.mxu3 %v3782_v31  ;;  %v4210_v30 = vor.u32 %v4841_v23, %v4209_v22  ;;  %v4805_v31 = vld [vmem:[#allocation3 + $0x414] sm:$0xf0]  ;;  %v3702_v35 = vor.u32 %v4711_v26, %v3699_v27  ;;  %v4150_v22 = vor.u32 %v4823_v14, %v4147_v16  ;;  %v4819_v26 = vld [vmem:[#allocation3 + $0x48c] sm:$0xf]  ;;  %v4131_v27 = vld [vmem:[#allocation3 + $0x498] sm:$0xf0] }
 0x152   :  { %v4066_v47 = vor.u32 %v4805_v31, %v4065_v28  ;;  %v4851_v28 = vld [vmem:[#allocation3 + $0x58c] sm:$0xf]  ;;  %v3859_v31 = vld [vmem:[#allocation3 + $0x278] sm:$0xf0]  ;;  %v4134_v32 = vor.u32 %v4819_v26, %v4131_v27 }
 0x153   :  { %v3955_v1 = vld [vmem:[#allocation3 + $0x338] sm:$0xf0]  ;;  %v4803_v14 = vld [vmem:[#allocation3 + $0x40c] sm:$0xf] }
 0x154   :  { %1744 = vmatpush.bf16.msra.mxu0 %v4146_v38  ;;  %1757 = vmatpush.bf16.msra.mxu1 %v4274_v39  ;;  %v4707_v38 = vld [vmem:[#allocation3 + $0x10c] sm:$0xf]  ;;  %v3683_v39 = vld [vmem:[#allocation3 + $0x118] sm:$0xf0] }
 0x155   :  { %1770 = vmatpush.bf16.msra.mxu2 %v3638_v43  ;;  %1783 = vmatpush.bf16.msra.mxu3 %v3766_v44  ;;  %v4799_v43 = vld [vmem:[#allocation3 + $0x3ec] sm:$0xf]  ;;  %v4051_v44 = vld [vmem:[#allocation3 + $0x3f8] sm:$0xf0] }
 0x156   :  { %v4054_v55 = vor.u32 %v4799_v43, %v4051_v44  ;;  %v4747_v43 = vld [vmem:[#allocation3 + $0x24c] sm:$0xf]  ;;  %v3843_v44 = vld [vmem:[#allocation3 + $0x258] sm:$0xf0] }
 0x157   :  { %v4083_v3 = vld [vmem:[#allocation3 + $0x438] sm:$0xf0]  ;;  %v5647_v26 = vld [vmem:[#allocation6 + $0x68] sm:$0xff] }
 0x158   :  { %1745 = vmatpush.bf16.msra.mxu0 %v4130_v52  ;;  %1758 = vmatpush.bf16.msra.mxu1 %v4258_v53  ;;  %v3558_v52 = vor.u32 %v4675_v36, %v3555_v37  ;;  %v3686_v53 = vor.u32 %v4707_v38, %v3683_v39  ;;  %v4815_v36 = vld [vmem:[#allocation3 + $0x46c] sm:$0xf]  ;;  %v4115_v37 = vld [vmem:[#allocation3 + $0x478] sm:$0xf0] }
 0x159   :  { %1771 = vmatpush.bf16.msra.mxu2 %v3622_v58  ;;  %1784 = vmatpush.bf16.msra.mxu3 %v3750_v59  ;;  %v4763_v58 = vld [vmem:[#allocation3 + $0x2cc] sm:$0xf]  ;;  %v3907_v59 = vld [vmem:[#allocation3 + $0x2d8] sm:$0xf0]  ;;  %v4118_v46 = vor.u32 %v4815_v36, %v4115_v37 }
 0x15a   :  { %v3910_v6 = vor.u32 %v4763_v58, %v3907_v59  ;;  %v4847_v38 = vld [vmem:[#allocation3 + $0x56c] sm:$0xf]  ;;  %v4243_v39 = vld [vmem:[#allocation3 + $0x578] sm:$0xf0] }
 0x15b   :  { %v4743_v58 = vld [vmem:[#allocation3 + $0x22c] sm:$0xf]  ;;  %v3827_v59 = vld [vmem:[#allocation3 + $0x238] sm:$0xf0] }
 0x15c   :  { %1746 = vmatpush.bf16.msra.mxu0 %v4114_v4  ;;  %1759 = vmatpush.bf16.msra.mxu1 %v4242_v5  ;;  %v4859_v4 = vld [vmem:[#allocation3 + $0x5cc] sm:$0xf]  ;;  %v4291_v5 = vld [vmem:[#allocation3 + $0x5d8] sm:$0xf0] }
 0x15d   :  { %1772 = vmatpush.bf16.msra.mxu2 %v3606_v8  ;;  %1785 = vmatpush.bf16.msra.mxu3 %v3734_v9  ;;  %v4759_v8 = vld [vmem:[#allocation3 + $0x2ac] sm:$0xf]  ;;  %v3891_v9 = vld [vmem:[#allocation3 + $0x2b8] sm:$0xf0]  ;;  %v4294_v11 = vor.u32 %v4859_v4, %v4291_v5 }
 0x15e   :  { %v3894_v19 = vor.u32 %v4759_v8, %v3891_v9  ;;  %v4839_v4 = vld [vmem:[#allocation3 + $0x52c] sm:$0xf]  ;;  %v4211_v5 = vld [vmem:[#allocation3 + $0x538] sm:$0xf0] }
 0x15f   :  { %v4739_v8 = vld [vmem:[#allocation3 + $0x20c] sm:$0xf]  ;;  %v3811_v9 = vld [vmem:[#allocation3 + $0x218] sm:$0xf0] }
 0x160   :  { %1747 = vmatpush.bf16.msra.mxu0 %v4098_v17  ;;  %1760 = vmatpush.bf16.msra.mxu1 %v4226_v18  ;;  %v4855_v17 = vld [vmem:[#allocation3 + $0x5ac] sm:$0xf]  ;;  %v4275_v18 = vld [vmem:[#allocation3 + $0x5b8] sm:$0xf0] }
 0x161   :  { %1773 = vmatpush.bf16.msra.mxu2 %v3590_v21  ;;  %1786 = vmatpush.bf16.msra.mxu3 %v3718_v15  ;;  %v4755_v21 = vld [vmem:[#allocation3 + $0x28c] sm:$0xf]  ;;  %v3875_v15 = vld [vmem:[#allocation3 + $0x298] sm:$0xf0]  ;;  %v4278_v23 = vor.u32 %v4855_v17, %v4275_v18 }
 0x162   :  { %v3939_v13 = vld [vmem:[#allocation3 + $0x318] sm:$0xf0]  ;;  %v4835_v17 = vld [vmem:[#allocation3 + $0x50c] sm:$0xf] }
 0x163   :  { %v4067_v16 = vld [vmem:[#allocation3 + $0x418] sm:$0xf0]  ;;  %v5649_v27 = vld [vmem:[#allocation6 + $0xe8] sm:$0xff] }
 0x164   :  { %1748 = vmatpush.bf16.msra.mxu0 %v4082_v29  ;;  %1761 = vmatpush.bf16.msra.mxu1 %v4210_v30  ;;  %v4259_v29 = vld [vmem:[#allocation3 + $0x598] sm:$0xf0]  ;;  %v4751_v30 = vld [vmem:[#allocation3 + $0x26c] sm:$0xf] }
 0x165   :  { %1774 = vmatpush.bf16.msra.mxu2 %v3574_v34  ;;  %1787 = vmatpush.bf16.msra.mxu3 %v3702_v35  ;;  %v4262_v33 = vor.u32 %v4851_v28, %v4259_v29  ;;  %v4783_v34 = vld [vmem:[#allocation3 + $0x36c] sm:$0xf]  ;;  %v3987_v35 = vld [vmem:[#allocation3 + $0x378] sm:$0xf0]  ;;  %v3862_v40 = vor.u32 %v4751_v30, %v3859_v31  ;;  %v5654_v28 = vld [vmem:[%s5374_s21] sm:$0xf] }
 0x166   :  { %v3990_v42 = vor.u32 %v4783_v34, %v3987_v35  ;;  %v4195_v18 = vld [vmem:[#allocation3 + $0x518] sm:$0xf0]  ;;  %v5669_v30 = vld [vmem:[#allocation6 + $0x50] sm:$0xff]  ;;  %v5675_v35 = vld [vmem:[#allocation6 + $0x48] sm:$0xff]  ;;  %s5989_s21 = sld [smem:[#allocation31_spill]] }
 0x167   :  { %v5671_v31 = vld [vmem:[#allocation6 + $0xd0] sm:$0xff]  ;;  %v5677_v36 = vld [vmem:[#allocation6 + $0xc8] sm:$0xff] }
 0x168   :  { %1749 = vmatpush.bf16.msra.mxu0 %v4066_v47  ;;  %1762 = vmatpush.bf16.msra.mxu1 %v4194_v48  ;;  %v4246_v47 = vor.u32 %v4847_v38, %v4243_v39  ;;  %v4779_v48 = vld [vmem:[#allocation3 + $0x34c] sm:$0xf]  ;;  %v5681_v39 = vld [vmem:[#allocation6 + $0x40] sm:$0xff] }
 0x169   :  { %1775 = vmatpush.bf16.msra.mxu2 %v3558_v52  ;;  %1788 = vmatpush.bf16.msra.mxu3 %v3686_v53  ;;  %v4843_v52 = vld [vmem:[#allocation3 + $0x54c] sm:$0xf]  ;;  %v4227_v53 = vld [vmem:[#allocation3 + $0x558] sm:$0xf0] }
 0x16b   :  { %1750 = vmatmul.bf16.vlgmr.msra.gmra.mxu0 %v5613_v41  ;;  %1763 = vmatmul.bf16.vlgmr.msra.gmra.mxu1 %v5615_v45 }
 0x16c   :  { %1794 = vmatpush.bf16.msrb.mxu0 %v3926_v54  ;;  %1807 = vmatpush.bf16.msrb.mxu1 %v4054_v55  ;;  %v3846_v54 = vor.u32 %v4747_v43, %v3843_v44  ;;  %v3974_v55 = vor.u32 %v4779_v48, %v3971_v49  ;;  %v5687_v43 = vld [vmem:[#allocation6 + $0x38] sm:$0xff] }
 0x16d   :  { %1820 = vmatpush.bf16.msrb.mxu2 %v4182_v60  ;;  %1833 = vmatpush.bf16.msrb.mxu3 %v4310_v61  ;;  %v4102_v60 = vor.u32 %v4811_v50, %v4099_v51  ;;  %v4230_v61 = vor.u32 %v4843_v52, %v4227_v53  ;;  %v5689_v44 = vld [vmem:[#allocation6 + $0xb8] sm:$0xff]  ;;  %v5701_v52 = vld [vmem:[#allocation6 + $0x28] sm:$0xff] }
 0x16e   :  { %1776 = vmatmul.bf16.vlgmr.msra.gmra.mxu2 %v5602_v57  ;;  %1789 = vmatmul.bf16.vlgmr.msra.gmra.mxu3 %v5606_v63  ;;  %v3878_v57 = vor.u32 %v4755_v21, %v3875_v15  ;;  %v4006_v63 = vor.u32 %v4787_v24, %v4003_v25  ;;  %v4070_v21 = vor.u32 %v4803_v14, %v4067_v16  ;;  %v5639_v24 = vld [vmem:[#allocation6 + $0x70] sm:$0xff]  ;;  %v5699_v49 = vld [vmem:[#allocation6 + $0x178] sm:$0xff]  ;;  %v5703_v53 = vld [vmem:[#allocation6 + $0xa8] sm:$0xff] }
 0x16f   :  { %v4198_v15 = vor.u32 %v4835_v17, %v4195_v18  ;;  %v5641_v25 = vld [vmem:[#allocation6 + $0xf0] sm:$0xff]  ;;  %v5747_v16 = vld [vmem:[#allocation6] sm:$0xff] }
 0x170   :  { %1795 = vmatpush.bf16.msrb.mxu0 %v3910_v6  ;;  %1808 = vmatpush.bf16.msrb.mxu1 %v4038_v7  ;;  %v3830_v6 = vor.u32 %v4743_v58, %v3827_v59  ;;  %v3958_v7 = vor.u32 %v4775_v0, %v3955_v1  ;;  %v5710_v59 = vld [vmem:[#allocation6 + $0x20] sm:$0xff]  ;;  %v5719_v1 = vld [vmem:[#allocation6 + $0x18] sm:$0xff]  ;;  %v5745_v14 = vld [vmem:[#allocation6 + $0x150] sm:$0xff] }
 0x171   :  { %1821 = vmatpush.bf16.msrb.mxu2 %v4166_v10  ;;  %1834 = vmatpush.bf16.msrb.mxu3 %v4294_v11  ;;  %v4086_v10 = vor.u32 %v4807_v2, %v4083_v3  ;;  %v4214_v11 = vor.u32 %v4839_v4, %v4211_v5  ;;  %v5721_v2 = vld [vmem:[#allocation6 + $0x98] sm:$0xff]  ;;  %v5726_v3 = vld [vmem:[#allocation6 + $0x160] sm:$0xff]  ;;  %v5728_v4 = vld [vmem:[#allocation6 + $0x10] sm:$0xff] }
 0x172   :  { %v5730_v5 = vld [vmem:[#allocation6 + $0x90] sm:$0xff]  ;;  %v5749_v17 = vld [vmem:[#allocation6 + $0x80] sm:$0xff] }
 0x174   :  { %1796 = vmatpush.bf16.msrb.mxu0 %v3894_v19  ;;  %1809 = vmatpush.bf16.msrb.mxu1 %v4022_v20  ;;  %v3814_v19 = vor.u32 %v4739_v8, %v3811_v9  ;;  %v3942_v20 = vor.u32 %v4771_v12, %v3939_v13  ;;  %v5737_v9 = vld [vmem:[#allocation6 + $0x8] sm:$0xff] }
 0x175   :  { %1822 = vmatpush.bf16.msrb.mxu2 %v4150_v22  ;;  %1835 = vmatpush.bf16.msrb.mxu3 %v4278_v23  ;;  %v5633_v22 = vld [vmem:[#allocation6 + $0x78] sm:$0xff] }
 0x176   :  { %v5635_v23 = vld [vmem:[#allocation6 + $0xf8] sm:$0xff] }
 0x178   :  { %1797 = vmatpush.bf16.msrb.mxu0 %v3878_v57  ;;  %1810 = vmatpush.bf16.msrb.mxu1 %v4006_v63  ;;  %v5656_v63 = vld [vmem:[#allocation6 + $0x60] sm:$0xff] }
 0x179   :  { %1823 = vmatpush.bf16.msrb.mxu2 %v4134_v32  ;;  %1836 = vmatpush.bf16.msrb.mxu3 %v4262_v33 }
 0x17c   :  { %1798 = vmatpush.bf16.msrb.mxu0 %v3862_v40  ;;  %1811 = vmatpush.bf16.msrb.mxu1 %v3990_v42  ;;  %v5683_v40 = vld [vmem:[#allocation6 + $0xc0] sm:$0xff] }
 0x17d   :  { %1824 = vmatpush.bf16.msrb.mxu2 %v4118_v46  ;;  %1837 = vmatpush.bf16.msrb.mxu3 %v4246_v47  ;;  %v5693_v46 = vld [vmem:[#allocation6 + $0x30] sm:$0xff] }
 0x17e   :  { %v5695_v47 = vld [vmem:[#allocation6 + $0xb0] sm:$0xff] }
 0x180   :  { %1799 = vmatpush.bf16.msrb.mxu0 %v3846_v54  ;;  %1812 = vmatpush.bf16.msrb.mxu1 %v3974_v55  ;;  %v5708_v55 = vld [vmem:[#allocation6 + $0x170] sm:$0xff] }
 0x181   :  { %1825 = vmatpush.bf16.msrb.mxu2 %v4102_v60  ;;  %1838 = vmatpush.bf16.msrb.mxu3 %v4230_v61  ;;  %v5712_v60 = vld [vmem:[#allocation6 + $0xa0] sm:$0xff]  ;;  %v5717_v61 = vld [vmem:[#allocation6 + $0x168] sm:$0xff] }
 0x184   :  { %1800 = vmatpush.bf16.msrb.mxu0 %v3830_v6  ;;  %1813 = vmatpush.bf16.msrb.mxu1 %v3958_v7  ;;  %v5735_v7 = vld [vmem:[#allocation6 + $0x158] sm:$0xff] }
 0x185   :  { %1826 = vmatpush.bf16.msrb.mxu2 %v4086_v10  ;;  %1839 = vmatpush.bf16.msrb.mxu3 %v4214_v11  ;;  %v5739_v10 = vld [vmem:[#allocation6 + $0x88] sm:$0xff]  ;;  %v567_v11 = vperm.slane %v5654_v28, 1 }
 0x187   :  { %v1543_v29 = vpop.f32.mrf.mxu0 }
 0x188   :  { %1801 = vmatpush.bf16.msrb.mxu0 %v3814_v19  ;;  %1814 = vmatpush.bf16.msrb.mxu1 %v3942_v20  ;;  %v1556_v57 = vpop.f32.mrf.mxu1  ;;  %v5754_v19 = vld [vmem:[#allocation6 + $0x148] sm:$0xff] }
 0x189   :  { %1827 = vmatpush.bf16.msrb.mxu2 %v4070_v21  ;;  %1840 = vmatpush.bf16.msrb.mxu3 %v4198_v15  ;;  %v5763_v15 = vld [vmem:[#allocation6 + $0x140] sm:$0xff] }
 0x18b   :  { %1802 = vmatmul.bf16.vlgmr.msrb.gmra.mxu0 %v5600_v56  ;;  %1815 = vmatmul.bf16.vlgmr.msrb.gmra.mxu1 %v5604_v62  ;;  %v5658_v56 = vld [vmem:[#allocation6 + $0xe0] sm:$0xff]  ;;  %v566_v62 = vperm.slane %v5654_v28, 0 }
 0x18c   :  { %1910 = vmatpush.msra.mxu0 %v5633_v22  ;;  %1930 = vmatpush.msra.mxu1 %v5635_v23 }
 0x18d   :  { %1828 = vmatmul.bf16.vlgmr.msrb.gmra.mxu2 %v5613_v41  ;;  %1841 = vmatmul.bf16.vlgmr.msrb.gmra.mxu3 %v5615_v45  ;;  %v5663_v41 = vld [vmem:[#allocation6 + $0x58] sm:$0xff]  ;;  %v1569_v32 = vpop.f32.mrf.mxu2  ;;  %v1544_v33 = vadd.f32 %v1543_v29, %v566_v62 }
 0x18e   :  { %1911 = vmatpush.msra.mxu0 %v5639_v24  ;;  %1931 = vmatpush.msra.mxu1 %v5641_v25  ;;  %v5665_v45 = vld [vmem:[#allocation6 + $0xd8] sm:$0xff]  ;;  %v1582_v34 = vpop.f32.mrf.mxu3 }
 0x18f   :  { %v1545_v37 = vpop.f32.mrf.mxu0  ;;  %v1557_v42 = vadd.f32 %v1556_v57, %v1544_v33  ;;  %1950 = vmatpush.msra.mxu2 %v5699_v49  ;;  %v5765_v29 = vld [vmem:[#allocation6 + $0x138] sm:$0xff]  ;;  %v5770_v33 = vld [vmem:[#allocation6 + $0x130] sm:$0xff] }
 0x190   :  { %1912 = vmatpush.msra.mxu0 %v5647_v26  ;;  %1932 = vmatpush.msra.mxu1 %v5649_v27  ;;  %v1558_v38 = vpop.f32.mrf.mxu1  ;;  %v5780_v37 = vld [vmem:[#allocation6 + $0x120] sm:$0xff] }
 0x191   :  { %v1570_v50 = vadd.f32 %v1569_v32, %v1557_v42  ;;  %1951 = vmatpush.msra.mxu2 %v5708_v55  ;;  %v5782_v38 = vld [vmem:[#allocation6 + $0x1f8] sm:$0xff]  ;;  %v5802_v42 = vld [vmem:[#allocation6 + $0x1e0] sm:$0xff] }
 0x192   :  { %1913 = vmatpush.msra.mxu0 %v5656_v63  ;;  %1933 = vmatpush.msra.mxu1 %v5658_v56 }
 0x193   :  { %v1583_v0 = vadd.f32 %v1582_v34, %v1570_v50  ;;  %1952 = vmatpush.msra.mxu2 %v5717_v61  ;;  %1970 = vmatpush.msra.mxu3 %v5782_v38  ;;  %v5805_v50 = vld [vmem:[#allocation6 + $0x108] sm:$0xff] }
 0x194   :  { %1914 = vmatpush.msra.mxu0 %v5663_v41  ;;  %1934 = vmatpush.msra.mxu1 %v5665_v45 }
 0x195   :  { %v1571_v48 = vpop.f32.mrf.mxu2  ;;  %1953 = vmatpush.msra.mxu2 %v5726_v3 }
 0x196   :  { %1915 = vmatpush.msra.mxu0 %v5669_v30  ;;  %1935 = vmatpush.msra.mxu1 %v5671_v31  ;;  %v1584_v51 = vpop.f32.mrf.mxu3 }
 0x197   :  { %v1595_v54 = vpop.f32.mrf.mxu0  ;;  %1954 = vmatpush.msra.mxu2 %v5735_v7  ;;  %v5810_v51 = vld [vmem:[#allocation6 + $0x1d8] sm:$0xff] }
 0x198   :  { %1916 = vmatpush.msra.mxu0 %v5675_v35  ;;  %1936 = vmatpush.msra.mxu1 %v5677_v36  ;;  %v1608_v58 = vpop.f32.mrf.mxu1  ;;  %v1596_v8 = vadd.f32 %v1595_v54, %v1583_v0 }
 0x199   :  { %1955 = vmatpush.msra.mxu2 %v5745_v14 }
 0x19a   :  { %1917 = vmatpush.msra.mxu0 %v5681_v39  ;;  %1937 = vmatpush.msra.mxu1 %v5683_v40  ;;  %v5756_v20 = vadd.f32 %v1608_v58, %v1596_v8  ;;  %v1899_v58 = vld [vmem:[#allocation6 + $0x1a8] sm:$0xff] }
 0x19b   :  { %1956 = vmatpush.msra.mxu2 %v5754_v19 }
 0x19c   :  { %1918 = vmatpush.msra.mxu0 %v5687_v43  ;;  %1938 = vmatpush.msra.mxu1 %v5689_v44 }
 0x19d   :  { %v1621_v6 = vpop.f32.mrf.mxu2  ;;  %1957 = vmatpush.msra.mxu2 %v5763_v15 }
 0x19e   :  { %1919 = vmatpush.msra.mxu0 %v5693_v46  ;;  %1939 = vmatpush.msra.mxu1 %v5695_v47  ;;  %v1634_v12 = vpop.f32.mrf.mxu3  ;;  %v1622_v21 = vadd.f32 %v1621_v6, %v567_v11  ;;  %v1894_v6 = vld [vmem:[#allocation6 + $0x180] sm:$0xff] }
 0x19f   :  { %v1597_v13 = vpop.f32.mrf.mxu0  ;;  %1958 = vmatpush.msra.mxu2 %v5765_v29 }
 0x1a0   :  { %1920 = vmatpush.msra.mxu0 %v5701_v52  ;;  %1940 = vmatpush.msra.mxu1 %v5703_v53  ;;  %v1610_v18 = vpop.f32.mrf.mxu1  ;;  %v1635_v62 = vadd.f32 %v1634_v12, %v1622_v21 }
 0x1a1   :  { %1959 = vmatpush.msra.mxu2 %v5770_v33 }
 0x1a2   :  { %1921 = vmatpush.msra.mxu0 %v5710_v59  ;;  %1941 = vmatpush.msra.mxu1 %v5712_v60 }
 0x1a4   :  { %1922 = vmatpush.msra.mxu0 %v5719_v1  ;;  %1942 = vmatpush.msra.mxu1 %v5721_v2 }
 0x1a5   :  { %v1623_v57 = vpop.f32.mrf.mxu2 }
 0x1a6   :  { %1923 = vmatpush.msra.mxu0 %v5728_v4  ;;  %1943 = vmatpush.msra.mxu1 %v5730_v5  ;;  %v1636_v32 = vpop.f32.mrf.mxu3 }
 0x1a7   :  { %v569_v32 = vperm.slane %v5654_v28, 3 }
 0x1a8   :  { %1924 = vmatpush.msra.mxu0 %v5737_v9  ;;  %1944 = vmatpush.msra.mxu1 %v5739_v10 }
 0x1aa   :  { %1925 = vmatpush.msra.mxu0 %v5747_v16  ;;  %1945 = vmatpush.msra.mxu1 %v5749_v17 }
 0x1ab   :  { %1926 = vmatmul.f32.vlgmr.msra.gmra.mxu0 %v5756_v20 }
 0x1ac   :  { %2023 = vmatpush.msrb.mxu1 %v5635_v23  ;;  %2003 = vmatpush.msrb.mxu0 %v5633_v22  ;;  %v5775_v23 = vld [vmem:[#allocation6 + $0x128] sm:$0xff]  ;;  %v1647_v22 = vpop.f32.mrf.mxu0 }
 0x1ad   :  { %v1648_v34 = vadd.f32 %v1647_v22, %v1635_v62  ;;  %1960 = vmatpush.msra.mxu2 %v5775_v23 }
 0x1ae   :  { %2024 = vmatpush.msrb.mxu1 %v5641_v25  ;;  %2004 = vmatpush.msrb.mxu0 %v5639_v24  ;;  %v1660_v25 = vpop.f32.mrf.mxu1  ;;  %v5786_v24 = vld [vmem:[#allocation6 + $0x1f0] sm:$0xff] }
 0x1af   :  { %1961 = vmatpush.msra.mxu2 %v5780_v37  ;;  %1971 = vmatpush.msra.mxu3 %v5786_v24 }
 0x1b0   :  { %2025 = vmatpush.msrb.mxu1 %v5649_v27  ;;  %2005 = vmatpush.msrb.mxu0 %v5647_v26  ;;  %v1661_v26 = vadd.f32 %v1660_v25, %v1648_v34  ;;  %v5789_v27 = vld [vmem:[#allocation6 + $0x118] sm:$0xff] }
 0x1b1   :  { %1962 = vmatpush.msra.mxu2 %v5789_v27  ;;  %v1686_v48 = vpop.f32.mrf.mxu3 }
 0x1b2   :  { %2026 = vmatpush.msrb.mxu1 %v5658_v56  ;;  %2006 = vmatpush.msrb.mxu0 %v5656_v63  ;;  %v5794_v56 = vld [vmem:[#allocation6 + $0x1e8] sm:$0xff]  ;;  %v5797_v63 = vld [vmem:[#allocation6 + $0x110] sm:$0xff] }
 0x1b3   :  { %1972 = vmatpush.msra.mxu3 %v5794_v56  ;;  %1963 = vmatpush.msra.mxu2 %v5797_v63 }
 0x1b4   :  { %2027 = vmatpush.msrb.mxu1 %v5665_v45  ;;  %2007 = vmatpush.msrb.mxu0 %v5663_v41  ;;  %v1673_v45 = vpop.f32.mrf.mxu2 }
 0x1b5   :  { %v1674_v41 = vadd.f32 %v1673_v45, %v1661_v26  ;;  %1973 = vmatpush.msra.mxu3 %v5802_v42  ;;  %1964 = vmatpush.msra.mxu2 %v5805_v50 }
 0x1b6   :  { %2028 = vmatpush.msrb.mxu1 %v5671_v31  ;;  %2008 = vmatpush.msrb.mxu0 %v5669_v30  ;;  %v1649_v31 = vpop.f32.mrf.mxu0  ;;  %v1662_v54 = vpop.f32.mrf.mxu1 }
 0x1b7   :  { %v5813_v30 = vadd.f32 %v1686_v48, %v1674_v41  ;;  %1974 = vmatpush.msra.mxu3 %v5810_v51 }
 0x1b8   :  { %2029 = vmatpush.msrb.mxu1 %v5677_v36  ;;  %2009 = vmatpush.msrb.mxu0 %v5675_v35  ;;  %v5818_v36 = vld [vmem:[#allocation6 + $0x100] sm:$0xff]  ;;  %v5824_v35 = vld [vmem:[#allocation6 + $0x1d0] sm:$0xff] }
 0x1b9   :  { %1946 = vmatmul.f32.vlgmr.msra.gmra.mxu1 %v5813_v30  ;;  %1965 = vmatpush.msra.mxu2 %v5818_v36 }
 0x1ba   :  { %2030 = vmatpush.msrb.mxu1 %v5683_v40  ;;  %2010 = vmatpush.msrb.mxu0 %v5681_v39  ;;  %v5830_v40 = vld [vmem:[#allocation6 + $0x1c8] sm:$0xff] }
 0x1bb   :  { %2043 = vmatpush.msrb.mxu2 %v5699_v49  ;;  %1975 = vmatpush.msra.mxu3 %v5824_v35 }
 0x1bc   :  { %2031 = vmatpush.msrb.mxu1 %v5689_v44  ;;  %2011 = vmatpush.msrb.mxu0 %v5687_v43  ;;  %v1675_v39 = vpop.f32.mrf.mxu2  ;;  %v1688_v44 = vpop.f32.mrf.mxu3  ;;  %v2000_v43 = vmul.f32 %v5813_v30, %v5813_v30 }
 0x1bd   :  { %2044 = vmatpush.msrb.mxu2 %v5708_v55  ;;  %1976 = vmatpush.msra.mxu3 %v5830_v40  ;;  %v1900_v55 = vld [vmem:[#allocation6 + $0x1b0] sm:$0xff] }
 0x1be   :  { %2032 = vmatpush.msrb.mxu1 %v5695_v47  ;;  %2012 = vmatpush.msrb.mxu0 %v5693_v46  ;;  %v1999_v46 = vmul.f32 %v5756_v20, %v5756_v20  ;;  %v1902_v47 = vld [vmem:[#allocation6 + $0x1c0] sm:$0xff] }
 0x1bf   :  { %2045 = vmatpush.msrb.mxu2 %v5717_v61  ;;  %1977 = vmatpush.msra.mxu3 %v1902_v47 }
 0x1c0   :  { %2033 = vmatpush.msrb.mxu1 %v5703_v53  ;;  %2013 = vmatpush.msrb.mxu0 %v5701_v52  ;;  %v1901_v53 = vld [vmem:[#allocation6 + $0x1b8] sm:$0xff] }
 0x1c1   :  { %2046 = vmatpush.msrb.mxu2 %v5726_v3  ;;  %1978 = vmatpush.msra.mxu3 %v1901_v53  ;;  %v1896_v3 = vld [vmem:[#allocation6 + $0x190] sm:$0xff] }
 0x1c2   :  { %2034 = vmatpush.msrb.mxu1 %v5712_v60  ;;  %2014 = vmatpush.msrb.mxu0 %v5710_v59  ;;  %v1898_v59 = vld [vmem:[#allocation6 + $0x1a0] sm:$0xff] }
 0x1c3   :  { %2047 = vmatpush.msrb.mxu2 %v5735_v7  ;;  %1979 = vmatpush.msra.mxu3 %v1900_v55 }
 0x1c4   :  { %2035 = vmatpush.msrb.mxu1 %v5721_v2  ;;  %2015 = vmatpush.msrb.mxu0 %v5719_v1  ;;  %v1897_v2 = vld [vmem:[#allocation6 + $0x198] sm:$0xff] }
 0x1c5   :  { %2048 = vmatpush.msrb.mxu2 %v5745_v14  ;;  %1980 = vmatpush.msra.mxu3 %v1899_v58 }
 0x1c6   :  { %2036 = vmatpush.msrb.mxu1 %v5730_v5  ;;  %2016 = vmatpush.msrb.mxu0 %v5728_v4  ;;  %v568_v4 = vperm.slane %v5654_v28, 2  ;;  %v1895_v5 = vld [vmem:[#allocation6 + $0x188] sm:$0xff] }
 0x1c7   :  { %2049 = vmatpush.msrb.mxu2 %v5754_v19  ;;  %1981 = vmatpush.msra.mxu3 %v1898_v59 }
 0x1c8   :  { %2037 = vmatpush.msrb.mxu1 %v5739_v10  ;;  %2017 = vmatpush.msrb.mxu0 %v5737_v9  ;;  %v1699_v49 = vpop.f32.mrf.mxu0  ;;  %v1712_v52 = vpop.f32.mrf.mxu1 }
 0x1c9   :  { %2050 = vmatpush.msrb.mxu2 %v5763_v15  ;;  %1982 = vmatpush.msra.mxu3 %v1897_v2  ;;  %v1700_v7 = vadd.f32 %v1699_v49, %v568_v4 }
 0x1ca   :  { %2038 = vmatpush.msrb.mxu1 %v5749_v17  ;;  %2018 = vmatpush.msrb.mxu0 %v5747_v16 }
 0x1cb   :  { %2039 = vmatmul.f32.vlgmr.msrb.gmra.mxu1 %v2000_v43  ;;  %2019 = vmatmul.f32.vlgmr.msrb.gmra.mxu0 %v1999_v46  ;;  %v1713_v10 = vadd.f32 %v1712_v52, %v1700_v7 }
 0x1cc   :  { %2051 = vmatpush.msrb.mxu2 %v5765_v29  ;;  %1983 = vmatpush.msra.mxu3 %v1896_v3 }
 0x1ce   :  { %2052 = vmatpush.msrb.mxu2 %v5770_v33  ;;  %1984 = vmatpush.msra.mxu3 %v1895_v5 }
 0x1d0   :  { %2053 = vmatpush.msrb.mxu2 %v5775_v23  ;;  %v1701_v0 = vpop.f32.mrf.mxu0  ;;  %v1714_v1 = vpop.f32.mrf.mxu1  ;;  %1985 = vmatpush.msra.mxu3 %v1894_v6 }
 0x1d1   :  { %v1725_v60 = vpop.f32.mrf.mxu2  ;;  %v1738_v61 = vpop.f32.mrf.mxu3 }
 0x1d2   :  { %2054 = vmatpush.msrb.mxu2 %v5780_v37  ;;  %2063 = vmatpush.msrb.mxu3 %v5782_v38  ;;  %v1726_v11 = vadd.f32 %v1725_v60, %v1713_v10  ;;  %v2115_v60 = vld [vmem:[#allocation8 + $0x8] sm:$0xff] }
 0x1d3   :  { %2157 = vmatpush.msra.mxu1 %v2115_v60  ;;  %v4873_v60 = vld [vmem:[#allocation9 + $0x34] sm:$0xf0] }
 0x1d4   :  { %2055 = vmatpush.msrb.mxu2 %v5789_v27  ;;  %2064 = vmatpush.msrb.mxu3 %v5786_v24  ;;  %v1739_v12 = vadd.f32 %v1738_v61, %v1726_v11 }
 0x1d6   :  { %2056 = vmatpush.msrb.mxu2 %v5797_v63  ;;  %2065 = vmatpush.msrb.mxu3 %v5794_v56 }
 0x1d8   :  { %2057 = vmatpush.msrb.mxu2 %v5805_v50  ;;  %2066 = vmatpush.msrb.mxu3 %v5802_v42 }
 0x1d9   :  { %v1727_v8 = vpop.f32.mrf.mxu2  ;;  %v1740_v9 = vpop.f32.mrf.mxu3 }
 0x1da   :  { %2058 = vmatpush.msrb.mxu2 %v5818_v36  ;;  %2067 = vmatpush.msrb.mxu3 %v5810_v51 }
 0x1dc   :  { %2068 = vmatpush.msrb.mxu3 %v5824_v35 }
 0x1de   :  { %2069 = vmatpush.msrb.mxu3 %v5830_v40 }
 0x1e0   :  { %2070 = vmatpush.msrb.mxu3 %v1902_v47 }
 0x1e2   :  { %2071 = vmatpush.msrb.mxu3 %v1901_v53 }
 0x1e4   :  { %2072 = vmatpush.msrb.mxu3 %v1900_v55 }
 0x1e6   :  { %2073 = vmatpush.msrb.mxu3 %v1899_v58  ;;  %v2116_v58 = vld [vmem:[#allocation8 + $0x10] sm:$0xff] }
 0x1e8   :  { %v1751_v13 = vpop.f32.mrf.mxu0  ;;  %v1764_v14 = vpop.f32.mrf.mxu1  ;;  %2074 = vmatpush.msrb.mxu3 %v1898_v59  ;;  %v2114_v59 = vld [vmem:[#allocation8] sm:$0xff] }
 0x1e9   :  { %v1752_v16 = vadd.f32 %v1751_v13, %v1739_v12  ;;  %2137 = vmatpush.msra.mxu0 %v2114_v59  ;;  %v2117_v13 = vld [vmem:[#allocation8 + $0x18] sm:$0xff]  ;;  %v4341_v59 = vld [vmem:[#allocation9 + $0x30] sm:$0xf] }
 0x1ea   :  { %2075 = vmatpush.msrb.mxu3 %v1897_v2 }
 0x1eb   :  { %v5873_v17 = vadd.f32 %v1764_v14, %v1752_v16  ;;  %v4373_v16 = vld [vmem:[#allocation9 + $0x70] sm:$0xf] }
 0x1ec   :  { %2076 = vmatpush.msrb.mxu3 %v1896_v3 }
 0x1ed   :  { %1966 = vmatmul.f32.vlgmr.msra.gmra.mxu2 %v5873_v17  ;;  %v2001_v29 = vmul.f32 %v5873_v17, %v5873_v17 }
 0x1ee   :  { %2077 = vmatpush.msrb.mxu3 %v1895_v5 }
 0x1f0   :  { %v1753_v21 = vpop.f32.mrf.mxu0  ;;  %v1766_v15 = vpop.f32.mrf.mxu1  ;;  %2078 = vmatpush.msrb.mxu3 %v1894_v6 }
 0x1f1   :  { %v1777_v18 = vpop.f32.mrf.mxu2  ;;  %v1790_v19 = vpop.f32.mrf.mxu3  ;;  %v4897_v15 = vld [vmem:[#allocation9 + $0xf4] sm:$0xf0] }
 0x1f2   :  { %v1778_v33 = vadd.f32 %v1777_v18, %v569_v32  ;;  %v4881_v18 = vld [vmem:[#allocation9 + $0x74] sm:$0xf0] }
 0x1f3   :  { %v4374_v21 = vor.u32 %v4881_v18, %v4373_v16  ;;  %v4929_v16 = vld [vmem:[#allocation9 + $0x1f4] sm:$0xf0]  ;;  %v4397_v18 = vld [vmem:[#allocation9 + $0xa0] sm:$0xf] }
 0x1f4   :  { %v1791_v23 = vadd.f32 %v1790_v19, %v1778_v33  ;;  %v4437_v19 = vld [vmem:[#allocation9 + $0xf0] sm:$0xf]  ;;  %v4429_v33 = vld [vmem:[#allocation9 + $0xe0] sm:$0xf] }
 0x1f5   :  { %2059 = vmatmul.f32.vlgmr.msrb.gmra.mxu2 %v2001_v29  ;;  %v4365_v29 = vld [vmem:[#allocation9 + $0x60] sm:$0xf]  ;;  %v4438_v32 = vor.u32 %v4897_v15, %v4437_v19  ;;  %2624 = vmatpush.bf16.msrb.mxu0 %v4374_v21  ;;  %v4887_v19 = vld [vmem:[#allocation9 + $0xa4] sm:$0xf0] }
 0x1f6   :  { %v4461_v15 = vld [vmem:[#allocation9 + $0x120] sm:$0xf] }
 0x1f7   :  { %2637 = vmatpush.bf16.msrb.mxu1 %v4438_v32  ;;  %v4557_v32 = vld [vmem:[#allocation9 + $0x1e0] sm:$0xf] }
 0x1f9   :  { %v1779_v57 = vpop.f32.mrf.mxu2  ;;  %v1792_v62 = vpop.f32.mrf.mxu3 }
 0x1fa   :  { %v4879_v57 = vld [vmem:[#allocation9 + $0x64] sm:$0xf0] }
 0x208   :  { %v1803_v22 = vpop.f32.mrf.mxu0  ;;  %v1816_v34 = vpop.f32.mrf.mxu1 }
 0x209   :  { %v1804_v25 = vadd.f32 %v1803_v22, %v1791_v23  ;;  %v4895_v23 = vld [vmem:[#allocation9 + $0xe4] sm:$0xf0]  ;;  %v4501_v22 = vld [vmem:[#allocation9 + $0x170] sm:$0xf] }
 0x20b   :  { %v1817_v37 = vadd.f32 %v1816_v34, %v1804_v25  ;;  %v4366_v25 = vor.u32 %v4879_v57, %v4365_v29  ;;  %v4903_v29 = vld [vmem:[#allocation9 + $0x124] sm:$0xf0] }
 0x20d   :  { %2625 = vmatpush.bf16.msrb.mxu0 %v4366_v25  ;;  %v4927_v25 = vld [vmem:[#allocation9 + $0x1e4] sm:$0xf0] }
 0x210   :  { %v1829_v38 = vpop.f32.mrf.mxu2  ;;  %v1842_v24 = vpop.f32.mrf.mxu3 }
 0x211   :  { %v1830_v26 = vadd.f32 %v1829_v38, %v1817_v37  ;;  %v1805_v27 = vpop.f32.mrf.mxu0  ;;  %v1818_v56 = vpop.f32.mrf.mxu1  ;;  %v4913_v37 = vld [vmem:[#allocation9 + $0x174] sm:$0xf0]  ;;  %v4430_v38 = vor.u32 %v4895_v23, %v4429_v33  ;;  %v4398_v33 = vor.u32 %v4887_v19, %v4397_v18  ;;  %v4325_v23 = vld [vmem:[#allocation9 + $0x10] sm:$0xf]  ;;  %v4359_v18 = vld [vmem:[#allocation9 + $0x58] sm:$0xf0] }
 0x212   :  { %v4877_v27 = vld [vmem:[#allocation9 + $0x54] sm:$0xf0]  ;;  %v4421_v56 = vld [vmem:[#allocation9 + $0xd0] sm:$0xf]  ;;  %v4892_v19 = vld [vmem:[#allocation9 + $0xd4] sm:$0xf] }
 0x213   :  { %v5879_v63 = vadd.f32 %v1842_v24, %v1830_v26  ;;  %v4502_v24 = vor.u32 %v4913_v37, %v4501_v22  ;;  %v4357_v26 = vld [vmem:[#allocation9 + $0x50] sm:$0xf]  ;;  %2638 = vmatpush.bf16.msrb.mxu1 %v4430_v38  ;;  %v4869_v22 = vld [vmem:[#allocation9 + $0x14] sm:$0xf0] }
 0x214   :  { %v4389_v37 = vld [vmem:[#allocation9 + $0x90] sm:$0xf]  ;;  %v4885_v38 = vld [vmem:[#allocation9 + $0x94] sm:$0xf0] }
 0x215   :  { %1986 = vmatmul.f32.vlgmr.msra.gmra.mxu3 %v5879_v63  ;;  %v2002_v28 = vmul.f32 %v5879_v63, %v5879_v63  ;;  %2650 = vmatpush.bf16.msra.mxu2 %v4502_v24  ;;  %v4462_v24 = vor.u32 %v4903_v29, %v4461_v15  ;;  %v4423_v15 = vld [vmem:[#allocation9 + $0xd8] sm:$0xf0]  ;;  %v4517_v29 = vld [vmem:[#allocation9 + $0x190] sm:$0xf] }
 0x216   :  { %2177 = vmatpush.msra.mxu3 %v2116_v58 }
 0x218   :  { %v1831_v45 = vpop.f32.mrf.mxu2  ;;  %v1844_v42 = vpop.f32.mrf.mxu3 }
 0x219   :  { %v4893_v42 = vld [vmem:[#allocation9 + $0xd4] sm:$0xf0] }
 0x21d   :  { %2079 = vmatmul.f32.vlgmr.msrb.gmra.mxu3 %v2002_v28  ;;  %v4493_v28 = vld [vmem:[#allocation9 + $0x160] sm:$0xf] }
 0x21e   :  { %2197 = vmatpush.msrb.mxu3 %v2117_v13  ;;  %v4871_v13 = vld [vmem:[#allocation9 + $0x24] sm:$0xf0] }
 0x228   :  { %v1927_v41 = vpop.f32.mrf.mxu0 }
 0x236   :  { %v1947_v48 = vpop.f32.mrf.mxu1 }
 0x237   :  { %v1948_v31 = vadd.f32 %v1947_v48, %v1927_v41  ;;  %v4911_v41 = vld [vmem:[#allocation9 + $0x164] sm:$0xf0] }
 0x238   :  { %v4494_v48 = vor.u32 %v4911_v41, %v4493_v28  ;;  %v4925_v28 = vld [vmem:[#allocation9 + $0x1d4] sm:$0xf0]  ;;  %v4390_v41 = vor.u32 %v4885_v38, %v4389_v37  ;;  %v4415_v38 = vld [vmem:[#allocation9 + $0xc8] sm:$0xf0] }
 0x23a   :  { %2651 = vmatpush.bf16.msra.mxu2 %v4494_v48  ;;  %v4317_v48 = vld [vmem:[#allocation9] sm:$0xf] }
 0x248   :  { %v2020_v35 = vpop.f32.mrf.mxu0  ;;  %v2040_v39 = vpop.f32.mrf.mxu1 }
 0x249   :  { %v2041_v46 = vadd.f32 %v2040_v39, %v2020_v35  ;;  %v4349_v35 = vld [vmem:[#allocation9 + $0x40] sm:$0xf]  ;;  %v4875_v39 = vld [vmem:[#allocation9 + $0x44] sm:$0xf0] }
 0x270   :  { %v1967_v50 = vpop.f32.mrf.mxu2 }
 0x271   :  { %v1968_v51 = vadd.f32 %v1967_v50, %v1948_v31  ;;  %v4358_v31 = vor.u32 %v4877_v27, %v4357_v26  ;;  %v4453_v26 = vld [vmem:[#allocation9 + $0x110] sm:$0xf]  ;;  %v4901_v27 = vld [vmem:[#allocation9 + $0x114] sm:$0xf0] }
 0x273   :  { %2626 = vmatpush.bf16.msrb.mxu0 %v4358_v31  ;;  %v4381_v31 = vld [vmem:[#allocation9 + $0x80] sm:$0xf] }
 0x278   :  { %v2060_v44 = vpop.f32.mrf.mxu2 }
 0x279   :  { %v2061_v49 = vadd.f32 %v2060_v44, %v2041_v46  ;;  %v4413_v44 = vld [vmem:[#allocation9 + $0xc0] sm:$0xf] }
 0x298   :  { %v1987_v54 = vpop.f32.mrf.mxu3 }
 0x299   :  { %v1988_v36 = vadd.f32 %v1987_v54, %v1968_v51  ;;  %v4485_v51 = vld [vmem:[#allocation9 + $0x150] sm:$0xf]  ;;  %v4909_v54 = vld [vmem:[#allocation9 + $0x154] sm:$0xf0] }
 0x29a   :  { %v4486_v46 = vor.u32 %v4909_v54, %v4485_v51  ;;  %v4883_v51 = vld [vmem:[#allocation9 + $0x84] sm:$0xf0]  ;;  %v4880_v54 = vld [vmem:[#allocation9 + $0x74] sm:$0xf] }
 0x29b   :  { %v1991_v40 = vsel %vm1990_vm4, %v1988_v36, 0.0  ;;  %v4422_v36 = vor.u32 %v4893_v42, %v4421_v56  ;;  %v4549_v56 = vld [vmem:[#allocation9 + $0x1d0] sm:$0xf]  ;;  %v4558_v42 = vor.u32 %v4927_v25, %v4557_v32  ;;  %v4910_v32 = vld [vmem:[#allocation9 + $0x164] sm:$0xf] }
 0x29c   :  { %v1992_v43 = vrot.slane %v1991_v40, 4  ;;  %2652 = vmatpush.bf16.msra.mxu2 %v4486_v46  ;;  %v4382_v46 = vor.u32 %v4883_v51, %v4381_v31  ;;  %v4890_v25 = vld [vmem:[#allocation9 + $0xc4] sm:$0xf]  ;;  %v4872_v31 = vld [vmem:[#allocation9 + $0x34] sm:$0xf] }
 0x29d   :  { %2639 = vmatpush.bf16.msrb.mxu1 %v4422_v36  ;;  %v4454_v36 = vor.u32 %v4901_v27, %v4453_v26  ;;  %v4915_v26 = vld [vmem:[#allocation9 + $0x184] sm:$0xf0]  ;;  %v4418_v27 = vor.u32 %v4890_v25, %v4415_v38  ;;  %v4343_v51 = vld [vmem:[#allocation9 + $0x38] sm:$0xf0]  ;;  %v4447_v38 = vld [vmem:[#allocation9 + $0x108] sm:$0xf0] }
 0x29e   :  { %v1993_v47 = vadd.f32 %v1992_v43, %v1991_v40  ;;  %v4891_v43 = vld [vmem:[#allocation9 + $0xc4] sm:$0xf0] }
 0x29f   :  { %v4414_v58 = vor.u32 %v4891_v43, %v4413_v44  ;;  %v4550_v43 = vor.u32 %v4925_v28, %v4549_v56  ;;  %v4928_v28 = vld [vmem:[#allocation9 + $0x1f4] sm:$0xf] }
 0x2a0   :  { %v1994_v52 = vrot.slane %v1993_v47, 2  ;;  %v2080_v53 = vpop.f32.mrf.mxu3 }
 0x2a1   :  { %v2081_v55 = vadd.f32 %v2080_v53, %v2061_v49  ;;  %v4477_v53 = vld [vmem:[#allocation9 + $0x140] sm:$0xf]  ;;  %2640 = vmatpush.bf16.msrb.mxu1 %v4414_v58  ;;  %v4533_v58 = vld [vmem:[#allocation9 + $0x1b0] sm:$0xf] }
 0x2a2   :  { %v1995_v61 = vadd.f32 %v1994_v52, %v1993_v47  ;;  %v2093_v47 = vld [vmem:[%s5986_s5] sm:$0x1]  ;;  %v4350_v52 = vor.u32 %v4875_v39, %v4349_v35  ;;  %v4375_v35 = vld [vmem:[#allocation9 + $0x78] sm:$0xf0] }
 0x2a3   :  { %v2083_v0 = vsel %vm1990_vm4, %v2081_v55, 0.0  ;;  %v4907_v55 = vld [vmem:[#allocation9 + $0x144] sm:$0xf0]  ;;  %v4896_v39 = vld [vmem:[#allocation9 + $0xf4] sm:$0xf] }
 0x2a4   :  { %v1996_v1 = vrot.slane %v1995_v61, 1  ;;  %v2084_v2 = vrot.slane %v2083_v0, 4  ;;  %2627 = vmatpush.bf16.msrb.mxu0 %v4350_v52  ;;  %v4378_v52 = vor.u32 %v4880_v54, %v4375_v35  ;;  %v4888_v54 = vld [vmem:[#allocation9 + $0xb4] sm:$0xf]  ;;  %v4407_v35 = vld [vmem:[#allocation9 + $0xb8] sm:$0xf0] }
 0x2a6   :  { %v2085_v3 = vadd.f32 %v2084_v2, %v2083_v0  ;;  %v1997_v4 = vadd.f32 %v1996_v1, %v1995_v61  ;;  %v4405_v0 = vld [vmem:[#allocation9 + $0xb0] sm:$0xf]  ;;  %v4889_v1 = vld [vmem:[#allocation9 + $0xb4] sm:$0xf0] }
 0x2a8   :  { %v2086_v5 = vrot.slane %v2085_v3, 2  ;;  %v5886_v7 = vmul.f32 0.0078125, %v1997_v4  ;;  %v2106_v4 = vld [vmem:[%s5987_s9] sm:$0x1] }
 0x2aa   :  { %v2087_v6 = vadd.f32 %v2086_v5, %v2085_v3  ;;  %v2091_v10 = vmul.f32 %v5886_v7, %v5886_v7  ;;  %v4478_v3 = vor.u32 %v4907_v55, %v4477_v53  ;;  %v4342_v5 = vor.u32 %v4873_v60, %v4341_v59  ;;  %v4921_v59 = vld [vmem:[#allocation9 + $0x1b4] sm:$0xf0] }
 0x2ab   :  { %v4534_v60 = vor.u32 %v4921_v59, %v4533_v58  ;;  %v4399_v59 = vld [vmem:[#allocation9 + $0xa8] sm:$0xf0] }
 0x2ac   :  { %v2088_v8 = vrot.slane %v2087_v6, 1  ;;  %2653 = vmatpush.bf16.msra.mxu2 %v4478_v3  ;;  %2628 = vmatpush.bf16.msrb.mxu0 %v4342_v5  ;;  %v4431_v3 = vld [vmem:[#allocation9 + $0xe8] sm:$0xf0]  ;;  %v4899_v5 = vld [vmem:[#allocation9 + $0x104] sm:$0xf0] }
 0x2ae   :  { %v2089_v9 = vadd.f32 %v2088_v8, %v2087_v6  ;;  %v4469_v6 = vld [vmem:[#allocation9 + $0x130] sm:$0xf]  ;;  %v4905_v8 = vld [vmem:[#allocation9 + $0x134] sm:$0xf0] }
 0x2af   :  { %v4470_v21 = vor.u32 %v4905_v8, %v4469_v6 }
 0x2b0   :  { %v2090_v11 = vmul.f32 0.0078125, %v2089_v9 }
 0x2b1   :  { %2654 = vmatpush.bf16.msra.mxu2 %v4470_v21 }
 0x2b2   :  { %v2092_v12 = vsub.f32 %v2090_v11, %v2091_v10  ;;  %v4406_v10 = vor.u32 %v4889_v1, %v4405_v0  ;;  %v4565_v11 = vld [vmem:[#allocation9 + $0x1f0] sm:$0xf]  ;;  %v4367_v0 = vld [vmem:[#allocation9 + $0x68] sm:$0xf0]  ;;  %v4894_v1 = vld [vmem:[#allocation9 + $0xe4] sm:$0xf] }
 0x2b3   :  { %v4434_v6 = vor.u32 %v4894_v1, %v4431_v3  ;;  %v4924_v1 = vld [vmem:[#allocation9 + $0x1d4] sm:$0xf]  ;;  %v4551_v3 = vld [vmem:[#allocation9 + $0x1d8] sm:$0xf0] }
 0x2b4   :  { %v2094_v14 = vadd.f32 1e-05, %v2092_v12  ;;  %v4333_v12 = vld [vmem:[#allocation9 + $0x20] sm:$0xf]  ;;  %2641 = vmatpush.bf16.msrb.mxu1 %v4406_v10  ;;  %v4919_v10 = vld [vmem:[#allocation9 + $0x1a4] sm:$0xf0] }
 0x2b5   :  { %2655 = vmatpush.bf16.msra.mxu2 %v4462_v24  ;;  %v4509_v24 = vld [vmem:[#allocation9 + $0x180] sm:$0xf] }
 0x2b6   :  { %5009 = vrsqrt.f32 %v2094_v14  ;;  %vm2101_vm6 = vweird.f32 %v2094_v14  ;;  %v4510_v56 = vor.u32 %v4915_v26, %v4509_v24  ;;  %v4918_v24 = vld [vmem:[#allocation9 + $0x1a4] sm:$0xf]  ;;  %v4527_v26 = vld [vmem:[#allocation9 + $0x1a8] sm:$0xf0] }
 0x2b8   :  { %2642 = vmatpush.bf16.msrb.mxu1 %v4398_v33  ;;  %v4495_v33 = vld [vmem:[#allocation9 + $0x168] sm:$0xf0] }
 0x2b9   :  { %2656 = vmatpush.bf16.msra.mxu2 %v4454_v36  ;;  %v4346_v36 = vor.u32 %v4872_v31, %v4343_v51  ;;  %v4519_v31 = vld [vmem:[#allocation9 + $0x198] sm:$0xf0] }
 0x2bc   :  { %v5010_v62 = vpop.eup %5009  ;;  %2643 = vmatpush.bf16.msrb.mxu1 %v4390_v41 }
 0x2bd   :  { %v2096_v34 = vmul.f32 %v5010_v62, %v2094_v14  ;;  %vm2102_vm5 = vweird.f32 %v5010_v62 }
 0x2be   :  { %vm2103_vm7 = vmor %vm2101_vm6, %vm2102_vm5  ;;  %vm3139_vm5 = vcmask 254976  }
 0x2bf   :  { %v2097_v45 = vmul.f32 %v5010_v62, %v2096_v34 }
 0x2c0   :  { %2644 = vmatpush.bf16.msrb.mxu1 %v4382_v46 }
 0x2c1   :  { %v2098_v50 = vmul.f32 0.5, %v2097_v45  ;;  %v4326_v45 = vor.u32 %v4869_v22, %v4325_v23  ;;  %v4498_v23 = vor.u32 %v4910_v32, %v4495_v33  ;;  %v4874_v22 = vld [vmem:[#allocation9 + $0x44] sm:$0xf]  ;;  %v4900_v32 = vld [vmem:[#allocation9 + $0x114] sm:$0xf] }
 0x2c2   :  { %v4455_v33 = vld [vmem:[#allocation9 + $0x118] sm:$0xf0] }
 0x2c3   :  { %v2099_v40 = vsub.f32 1.5, %v2098_v50  ;;  %v4867_v50 = vld [vmem:[#allocation9 + $0x4] sm:$0xf0] }
 0x2c4   :  { %v4318_v44 = vor.u32 %v4867_v50, %v4317_v48  ;;  %v4567_v48 = vld [vmem:[#allocation9 + $0x1f8] sm:$0xf0] }
 0x2c5   :  { %v2100_v49 = vmul.f32 %v5010_v62, %v2099_v40  ;;  %v4439_v40 = vld [vmem:[#allocation9 + $0xf8] sm:$0xf0]  ;;  %v4570_v50 = vor.u32 %v4928_v28, %v4567_v48 }
 0x2c6   :  { %v4442_v53 = vor.u32 %v4896_v39, %v4439_v40  ;;  %v4410_v39 = vor.u32 %v4888_v54, %v4407_v35  ;;  %v4906_v40 = vld [vmem:[#allocation9 + $0x144] sm:$0xf] }
 0x2c7   :  { %v2104_v61 = vsel %vm2103_vm7, %v5010_v62, %v2100_v49  ;;  %v4334_v62 = vor.u32 %v4871_v13, %v4333_v12  ;;  %v4923_v49 = vld [vmem:[#allocation9 + $0x1c4] sm:$0xf0]  ;;  %v4503_v13 = vld [vmem:[#allocation9 + $0x178] sm:$0xf0] }
 0x2c8   :  { %v2105_v2 = vmul.f32 %v2104_v61, %v2093_v47  ;;  %v4541_v47 = vld [vmem:[#allocation9 + $0x1c0] sm:$0xf]  ;;  %v4878_v61 = vld [vmem:[#allocation9 + $0x64] sm:$0xf] }
 0x2c9   :  { %2629 = vmatpush.bf16.msrb.mxu0 %v4334_v62  ;;  %v4542_v55 = vor.u32 %v4923_v49, %v4541_v47  ;;  %v4426_v62 = vor.u32 %v4892_v19, %v4423_v15  ;;  %v4559_v47 = vld [vmem:[#allocation9 + $0x1e8] sm:$0xf0]  ;;  %v4866_v19 = vld [vmem:[#allocation9 + $0x4] sm:$0xf] }
 0x2ca   :  { %v2107_v9 = vmul.f32 %v2105_v2, %v5886_v7  ;;  %v4566_v7 = vor.u32 %v4929_v16, %v4565_v11  ;;  %v4912_v11 = vld [vmem:[#allocation9 + $0x174] sm:$0xf] }
 0x2cb   :  { %v4876_v16 = vld [vmem:[#allocation9 + $0x54] sm:$0xf] }
 0x2cc   :  { %v2108_v14 = vsub.f32 %v2106_v4, %v2107_v9  ;;  %v4445_v4 = vld [vmem:[#allocation9 + $0x100] sm:$0xf]  ;;  %v4362_v21 = vor.u32 %v4876_v16, %v4359_v18  ;;  %v4543_v18 = vld [vmem:[#allocation9 + $0x1c8] sm:$0xf0] }
 0x2cd   :  { %2630 = vmatpush.bf16.msrb.mxu0 %v4326_v45  ;;  %v4446_v8 = vor.u32 %v4899_v5, %v4445_v4  ;;  %v4525_v9 = vld [vmem:[#allocation9 + $0x1a0] sm:$0xf]  ;;  %v4908_v45 = vld [vmem:[#allocation9 + $0x154] sm:$0xf]  ;;  %v4554_v4 = vor.u32 %v4924_v1, %v4551_v3  ;;  %v2741_v3 = vld [vmem:[#allocation11 + $0x68] sm:$0xff] }
 0x2ce   :  { %v2110_v57 = vperm.slane %v2108_v14, 0  ;;  %v4526_v12 = vor.u32 %v4919_v10, %v4525_v9  ;;  %v4506_v14 = vor.u32 %v4912_v11, %v4503_v13  ;;  %v4868_v5 = vld [vmem:[#allocation9 + $0x14] sm:$0xf]  ;;  %v4391_v10 = vld [vmem:[#allocation9 + $0x98] sm:$0xf0] }
 0x2cf   :  { %2657 = vmatpush.bf16.msra.mxu2 %v4446_v8  ;;  %v4884_v8 = vld [vmem:[#allocation9 + $0x94] sm:$0xf]  ;;  %v4463_v13 = vld [vmem:[#allocation9 + $0x128] sm:$0xf0] }
 0x2d0   :  { %v2113_v34 = vsel %vm2112_vm8, %v2105_v2, %v2110_v57  ;;  %v4370_v2 = vor.u32 %v4878_v61, %v4367_v0  ;;  %v4917_v57 = vld [vmem:[#allocation9 + $0x194] sm:$0xf0]  ;;  %v4904_v61 = vld [vmem:[#allocation9 + $0x134] sm:$0xf]  ;;  %v4471_v0 = vld [vmem:[#allocation9 + $0x138] sm:$0xf0]  ;;  %v4394_v11 = vor.u32 %v4884_v8, %v4391_v10 }
 0x2d1   :  { %4311 = vmatmul.msk.f32.vlgmr.msra.gmra.mxu0 %vm2118_vm9, %v2113_v34  ;;  %4312 = vmatmul.msk.f32.vlgmr.msra.gmra.mxu1 %vm2118_vm9, %v2113_v34  ;;  %v2742_v1 = vld [vmem:[#allocation11 + $0x70] sm:$0xff]  ;;  %v2740_v8 = vld [vmem:[#allocation11 + $0x60] sm:$0xff] }
 0x2d2   :  { %4313 = vmatmul.msk.f32.vlgmr.msra.gmra.mxu3 %vm2118_vm9, %v2113_v34  ;;  %2631 = vmatpush.bf16.msrb.mxu0 %v4318_v44  ;;  %v4479_v44 = vld [vmem:[#allocation9 + $0x148] sm:$0xf0] }
 0x2d3   :  { %2663 = vmatpush.bf16.msra.mxu3 %v4566_v7  ;;  %2689 = vmatpush.bf16.msra.mxu1 %v4442_v53  ;;  %v4518_v7 = vor.u32 %v4917_v57, %v4517_v29  ;;  %v4482_v46 = vor.u32 %v4906_v40, %v4479_v44  ;;  %v4335_v53 = vld [vmem:[#allocation9 + $0x28] sm:$0xf0]  ;;  %v4882_v57 = vld [vmem:[#allocation9 + $0x84] sm:$0xf] }
 0x2d4   :  { %2702 = vmatpush.bf16.msrb.mxu2 %v4506_v14  ;;  %v4922_v14 = vld [vmem:[#allocation9 + $0x1c4] sm:$0xf]  ;;  %v4511_v40 = vld [vmem:[#allocation9 + $0x188] sm:$0xf0] }
 0x2d5   :  { %v4546_v15 = vor.u32 %v4922_v14, %v4543_v18  ;;  %v2737_v18 = vld [vmem:[#allocation11 + $0x48] sm:$0xff] }
 0x2d6   :  { %2676 = vmatpush.bf16.msra.mxu0 %v4378_v52  ;;  %v4870_v52 = vld [vmem:[#allocation9 + $0x24] sm:$0xf] }
 0x2d7   :  { %2664 = vmatpush.bf16.msra.mxu3 %v4558_v42  ;;  %2690 = vmatpush.bf16.msra.mxu1 %v4434_v6  ;;  %v4487_v42 = vld [vmem:[#allocation9 + $0x158] sm:$0xf0]  ;;  %v4338_v58 = vor.u32 %v4870_v52, %v4335_v53 }
 0x2d8   :  { %2703 = vmatpush.bf16.msrb.mxu2 %v4498_v23  ;;  %v4490_v41 = vor.u32 %v4908_v45, %v4487_v42  ;;  %v4327_v6 = vld [vmem:[#allocation9 + $0x18] sm:$0xf0]  ;;  %v4920_v23 = vld [vmem:[#allocation9 + $0x1b4] sm:$0xf] }
 0x2d9   :  { %v4330_v9 = vor.u32 %v4868_v5, %v4327_v6 }
 0x2da   :  { %4314 = vmatmul.msk.f32.vlgmr.msrb.gmra.mxu3 %vm2118_vm9, %v2113_v34  ;;  %2677 = vmatpush.bf16.msra.mxu0 %v4370_v2  ;;  %v4351_v34 = vld [vmem:[#allocation9 + $0x48] sm:$0xf0]  ;;  %v4474_v2 = vor.u32 %v4904_v61, %v4471_v0  ;;  %v2743_v61 = vld [vmem:[#allocation11 + $0x78] sm:$0xff] }
 0x2db   :  { %2665 = vmatpush.bf16.msra.mxu3 %v4550_v43  ;;  %2691 = vmatpush.bf16.msra.mxu1 %v4426_v62  ;;  %v4354_v37 = vor.u32 %v4874_v22, %v4351_v34  ;;  %v4926_v43 = vld [vmem:[#allocation9 + $0x1e4] sm:$0xf]  ;;  %v4383_v62 = vld [vmem:[#allocation9 + $0x88] sm:$0xf0]  ;;  %v4458_v22 = vor.u32 %v4900_v32, %v4455_v33  ;;  %v4535_v34 = vld [vmem:[#allocation9 + $0x1b8] sm:$0xf0] }
 0x2dc   :  { %2704 = vmatpush.bf16.msrb.mxu2 %v4490_v41  ;;  %v4562_v49 = vor.u32 %v4926_v43, %v4559_v47  ;;  %v4538_v25 = vor.u32 %v4920_v23, %v4535_v34  ;;  %v2732_v32 = vld [vmem:[#allocation11 + $0x20] sm:$0xff]  ;;  %v2731_v23 = vld [vmem:[#allocation11 + $0x18] sm:$0xff]  ;;  %v2730_v34 = vld [vmem:[#allocation11 + $0x10] sm:$0xff] }
 0x2dd   :  { %v2756_v33 = vld [vmem:[#allocation11 + $0xe0] sm:$0xff] }
 0x2de   :  { %2678 = vmatpush.bf16.msra.mxu0 %v4362_v21  ;;  %v4319_v21 = vld [vmem:[#allocation9 + $0x8] sm:$0xf0] }
 0x2df   :  { %2666 = vmatpush.bf16.msra.mxu3 %v4542_v55  ;;  %2692 = vmatpush.bf16.msra.mxu1 %v4418_v27  ;;  %v4886_v55 = vld [vmem:[#allocation9 + $0xa4] sm:$0xf]  ;;  %v4322_v29 = vor.u32 %v4866_v19, %v4319_v21  ;;  %v2735_v21 = vld [vmem:[#allocation11 + $0x38] sm:$0xff] }
 0x2e0   :  { %2705 = vmatpush.bf16.msrb.mxu2 %v4482_v46  ;;  %v2736_v19 = vld [vmem:[#allocation11 + $0x40] sm:$0xff] }
 0x2e2   :  { %2679 = vmatpush.bf16.msra.mxu0 %v4354_v37  ;;  %v4898_v37 = vld [vmem:[#allocation9 + $0x104] sm:$0xf] }
 0x2e3   :  { %2667 = vmatpush.bf16.msra.mxu3 %v4534_v60  ;;  %2693 = vmatpush.bf16.msra.mxu1 %v4410_v39  ;;  %v4402_v60 = vor.u32 %v4886_v55, %v4399_v59  ;;  %v4450_v27 = vor.u32 %v4898_v37, %v4447_v38  ;;  %v4914_v39 = vld [vmem:[#allocation9 + $0x184] sm:$0xf]  ;;  %v2729_v37 = vld [vmem:[#allocation11 + $0x8] sm:$0xff] }
 0x2e4   :  { %2706 = vmatpush.bf16.msrb.mxu2 %v4474_v2  ;;  %v4514_v46 = vor.u32 %v4914_v39, %v4511_v40  ;;  %v2753_v38 = vld [vmem:[#allocation11 + $0xc8] sm:$0xff] }
 0x2e6   :  { %2680 = vmatpush.bf16.msra.mxu0 %v4346_v36 }
 0x2e7   :  { %2668 = vmatpush.bf16.msra.mxu3 %v4526_v12  ;;  %2694 = vmatpush.bf16.msra.mxu1 %v4402_v60  ;;  %v4902_v12 = vld [vmem:[#allocation9 + $0x124] sm:$0xf] }
 0x2e8   :  { %v4466_v16 = vor.u32 %v4902_v12, %v4463_v13 }
 0x2ea   :  { %2681 = vmatpush.bf16.msra.mxu0 %v4338_v58  ;;  %2707 = vmatpush.bf16.msrb.mxu2 %v4466_v16  ;;  %v2739_v16 = vld [vmem:[#allocation11 + $0x58] sm:$0xff] }
 0x2eb   :  { %2669 = vmatpush.bf16.msra.mxu3 %v4518_v7  ;;  %2695 = vmatpush.bf16.msra.mxu1 %v4394_v11  ;;  %v4386_v7 = vor.u32 %v4882_v57, %v4383_v62  ;;  %v2758_v57 = vld [vmem:[#allocation11 + $0xf0] sm:$0xff]  ;;  %v2733_v62 = vld [vmem:[#allocation11 + $0x28] sm:$0xff] }
 0x2ee   :  { %2682 = vmatpush.bf16.msra.mxu0 %v4330_v9  ;;  %2708 = vmatpush.bf16.msrb.mxu2 %v4458_v22  ;;  %v2755_v22 = vld [vmem:[#allocation11 + $0xd8] sm:$0xff] }
 0x2ef   :  { %2670 = vmatpush.bf16.msra.mxu3 %v4510_v56  ;;  %2696 = vmatpush.bf16.msra.mxu1 %v4386_v7  ;;  %v4530_v56 = vor.u32 %v4918_v24, %v4527_v26  ;;  %v2757_v7 = vld [vmem:[#allocation11 + $0xe8] sm:$0xff]  ;;  %v2728_v24 = vld [vmem:[#allocation11] sm:$0xff] }
 0x2f0   :  { %v2752_v26 = vld [vmem:[#allocation11 + $0xc0] sm:$0xff] }
 0x2f2   :  { %2683 = vmatpush.bf16.msra.mxu0 %v4322_v29  ;;  %2709 = vmatpush.bf16.msrb.mxu2 %v4450_v27  ;;  %v2734_v29 = vld [vmem:[#allocation11 + $0x30] sm:$0xff]  ;;  %v2751_v27 = vld [vmem:[#allocation11 + $0xb8] sm:$0xff] }
 0x2f3   :  { %2715 = vmatpush.bf16.msrb.mxu3 %v4570_v50  ;;  %v4916_v50 = vld [vmem:[#allocation9 + $0x194] sm:$0xf] }
 0x2f4   :  { %v4522_v35 = vor.u32 %v4916_v50, %v4519_v31  ;;  %v2746_v50 = vld [vmem:[#allocation11 + $0x90] sm:$0xff]  ;;  %v2745_v31 = vld [vmem:[#allocation11 + $0x88] sm:$0xff] }
 0x2f7   :  { %2716 = vmatpush.bf16.msrb.mxu3 %v4562_v49 }
 0x2fb   :  { %2717 = vmatpush.bf16.msrb.mxu3 %v4554_v4 }
 0x2ff   :  { %2718 = vmatpush.bf16.msrb.mxu3 %v4546_v15  ;;  %v2759_v15 = vld [vmem:[#allocation11 + $0xf8] sm:$0xff] }
 0x303   :  { %2719 = vmatpush.bf16.msrb.mxu3 %v4538_v25  ;;  %v2754_v25 = vld [vmem:[#allocation11 + $0xd0] sm:$0xff] }
 0x307   :  { %2720 = vmatpush.bf16.msrb.mxu3 %v4530_v56  ;;  %v2750_v56 = vld [vmem:[#allocation11 + $0xb0] sm:$0xff] }
 0x30b   :  { %2721 = vmatpush.bf16.msrb.mxu3 %v4522_v35 }
 0x30f   :  { %2722 = vmatpush.bf16.msrb.mxu3 %v4514_v46 }
 0x34e   :  { %v2139_v45 = vpop.f32.mrf.mxu0  ;;  %v2159_v42 = vpop.f32.mrf.mxu1 }
 0x34f   :  { %v2202_v28 = vperm.slane %v2139_v45, 0  ;;  %v2203_v41 = vperm.slane %v2159_v42, 0  ;;  %v2210_v48 = vperm.slane %v2139_v45, 1  ;;  %v2211_v36 = vperm.slane %v2159_v42, 1  ;;  %v2749_v45 = vld [vmem:[#allocation11 + $0xa8] sm:$0xff]  ;;  %v2748_v42 = vld [vmem:[#allocation11 + $0xa0] sm:$0xff] }
 0x351   :  { %v2206_v51 = vmul.f32 %v2202_v28, %v5756_v20  ;;  %v2207_v54 = vmul.f32 %v2203_v41, %v5813_v30  ;;  %v2747_v28 = vld [vmem:[#allocation11 + $0x98] sm:$0xff] }
 0x353   :  { %v2214_v44 = vadd.f32 %v2210_v48, %v2206_v51  ;;  %v2215_v43 = vadd.f32 %v2211_v36, %v2207_v54  ;;  %v2298_v51 = vld [vmem:[%s5988_s13] sm:$0x3]  ;;  %v2744_v54 = vld [vmem:[#allocation11 + $0x80] sm:$0xff] }
 0x354   :  { %v2300_v39 = vperm.slane %v2298_v51, 0 }
 0x355   :  { %vm2218_vm10 = vcmp.ge.f32.partialorder %v2214_v44, 0.0  ;;  %v2222_v47 = vmul.f32 0.2, %v2214_v44  ;;  %vm2219_vm11 = vcmp.ge.f32.partialorder %v2215_v43, 0.0  ;;  %v2223_v49 = vmul.f32 0.2, %v2215_v43  ;;  %v2179_v52 = vpop.f32.mrf.mxu3 }
 0x356   :  { %v2204_v53 = vperm.slane %v2179_v52, 0  ;;  %v2212_v59 = vperm.slane %v2179_v52, 1 }
 0x357   :  { %v2226_v55 = vsel %vm2218_vm10, %v2214_v44, %v2222_v47  ;;  %v2227_v58 = vsel %vm2219_vm11, %v2215_v43, %v2223_v49  ;;  %vm3203_vm10 = vcmask 261120  }
 0x358   :  { %v2208_v20 = vmul.f32 %v2204_v53, %v5873_v17  ;;  %v2230_v30 = vpack.c.bf16 %v2226_v55, %v2226_v55  ;;  %v2231_v60 = vpack.c.bf16 %v2227_v58, %v2227_v58 }
 0x35a   :  { %v2216_v0 = vadd.f32 %v2212_v59, %v2208_v20  ;;  %2632 = vmatmul.bf16.vlgmr.msrb.gmra.mxu0 %v2230_v30  ;;  %2645 = vmatmul.bf16.vlgmr.msrb.gmra.mxu1 %v2231_v60 }
 0x35b   :  { %2760 = vmatpush.msrb.mxu0 %v2743_v61  ;;  %2780 = vmatpush.msrb.mxu1 %v2759_v15 }
 0x35c   :  { %vm2220_vm12 = vcmp.ge.f32.partialorder %v2216_v0, 0.0  ;;  %v2224_v2 = vmul.f32 0.2, %v2216_v0 }
 0x35d   :  { %v2199_v4 = vpop.f32.mrf.mxu3  ;;  %2761 = vmatpush.msrb.mxu0 %v2742_v1  ;;  %2781 = vmatpush.msrb.mxu1 %v2758_v57 }
 0x35e   :  { %v2205_v5 = vperm.slane %v2199_v4, 0  ;;  %v2228_v6 = vsel %vm2220_vm12, %v2216_v0, %v2224_v2  ;;  %v2213_v10 = vperm.slane %v2199_v4, 1  ;;  %vm3324_vm12 = vcmask 523264  }
 0x35f   :  { %v2232_v9 = vpack.c.bf16 %v2228_v6, %v2228_v6  ;;  %2762 = vmatpush.msrb.mxu0 %v2741_v3  ;;  %2782 = vmatpush.msrb.mxu1 %v2757_v7 }
 0x360   :  { %v2209_v17 = vmul.f32 %v2205_v5, %v5879_v63  ;;  %v2738_v63 = vld [vmem:[#allocation11 + $0x50] sm:$0xff] }
 0x361   :  { %2658 = vmatmul.bf16.vlgmr.msra.gmra.mxu2 %v2232_v9  ;;  %2763 = vmatpush.msrb.mxu0 %v2740_v8 }
 0x362   :  { %v2217_v11 = vadd.f32 %v2213_v10, %v2209_v17  ;;  %2811 = vmatpush.msra.mxu2 %v2743_v61  ;;  %2783 = vmatpush.msrb.mxu1 %v2756_v33 }
 0x363   :  { %2764 = vmatpush.msrb.mxu0 %v2739_v16 }
 0x364   :  { %vm2221_vm13 = vcmp.ge.f32.partialorder %v2217_v11, 0.0  ;;  %v2225_v12 = vmul.f32 0.2, %v2217_v11  ;;  %2812 = vmatpush.msra.mxu2 %v2742_v1  ;;  %2784 = vmatpush.msrb.mxu1 %v2755_v22 }
 0x365   :  { %2765 = vmatpush.msrb.mxu0 %v2738_v63 }
 0x366   :  { %v2229_v13 = vsel %vm2221_vm13, %v2217_v11, %v2225_v12  ;;  %2813 = vmatpush.msra.mxu2 %v2741_v3  ;;  %2785 = vmatpush.msrb.mxu1 %v2754_v25  ;;  %vm3348_vm13 = vcmask 517120  }
 0x367   :  { %v2233_v14 = vpack.c.bf16 %v2229_v13, %v2229_v13  ;;  %2766 = vmatpush.msrb.mxu0 %v2737_v18 }
 0x368   :  { %2814 = vmatpush.msra.mxu2 %v2740_v8  ;;  %2786 = vmatpush.msrb.mxu1 %v2753_v38 }
 0x369   :  { %2671 = vmatmul.bf16.vlgmr.msra.gmra.mxu3 %v2233_v14  ;;  %2767 = vmatpush.msrb.mxu0 %v2736_v19 }
 0x36a   :  { %2684 = vmatmul.bf16.vlgmr.msra.gmra.mxu0 %v2230_v30  ;;  %2697 = vmatmul.bf16.vlgmr.msra.gmra.mxu1 %v2231_v60  ;;  %v2301_v30 = vperm.slane %v2298_v51, 1  ;;  %v4942_v51 = vld [vmem:[#allocation14 + $0x60] sm:$0xff] }
 0x36b   :  { %2815 = vmatpush.msra.mxu2 %v2739_v16  ;;  %2831 = vmatpush.msra.mxu3 %v2759_v15  ;;  %v2881_v15 = vld [vmem:[#allocation12] sm:$0xff] }
 0x36c   :  { %2768 = vmatpush.msrb.mxu0 %v2735_v21  ;;  %2787 = vmatpush.msrb.mxu1 %v2752_v26 }
 0x36d   :  { %2816 = vmatpush.msra.mxu2 %v2738_v63  ;;  %2832 = vmatpush.msra.mxu3 %v2758_v57  ;;  %v2882_v57 = vld [vmem:[#allocation12 + $0x8] sm:$0xff] }
 0x36e   :  { %2769 = vmatpush.msrb.mxu0 %v2734_v29  ;;  %2788 = vmatpush.msrb.mxu1 %v2751_v27 }
 0x36f   :  { %2817 = vmatpush.msra.mxu2 %v2737_v18  ;;  %2833 = vmatpush.msra.mxu3 %v2757_v7 }
 0x370   :  { %2770 = vmatpush.msrb.mxu0 %v2733_v62  ;;  %2789 = vmatpush.msrb.mxu1 %v2750_v56 }
 0x371   :  { %2710 = vmatmul.bf16.vlgmr.msrb.gmra.mxu2 %v2232_v9  ;;  %2834 = vmatpush.msra.mxu3 %v2756_v33 }
 0x372   :  { %2818 = vmatpush.msra.mxu2 %v2736_v19  ;;  %2771 = vmatpush.msrb.mxu0 %v2732_v32  ;;  %v2883_v19 = vld [vmem:[#allocation12 + $0x10] sm:$0xff] }
 0x373   :  { %2835 = vmatpush.msra.mxu3 %v2755_v22  ;;  %2790 = vmatpush.msrb.mxu1 %v2749_v45 }
 0x374   :  { %2819 = vmatpush.msra.mxu2 %v2735_v21  ;;  %2772 = vmatpush.msrb.mxu0 %v2731_v23  ;;  %v2884_v21 = vld [vmem:[#allocation12 + $0x18] sm:$0xff] }
 0x375   :  { %2836 = vmatpush.msra.mxu3 %v2754_v25  ;;  %2791 = vmatpush.msrb.mxu1 %v2748_v42 }
 0x376   :  { %2820 = vmatpush.msra.mxu2 %v2734_v29  ;;  %2773 = vmatpush.msrb.mxu0 %v2730_v34 }
 0x377   :  { %2837 = vmatpush.msra.mxu3 %v2753_v38  ;;  %2792 = vmatpush.msrb.mxu1 %v2747_v28 }
 0x378   :  { %2821 = vmatpush.msra.mxu2 %v2733_v62  ;;  %2774 = vmatpush.msrb.mxu0 %v2729_v37 }
 0x379   :  { %2723 = vmatmul.bf16.vlgmr.msrb.gmra.mxu3 %v2233_v14  ;;  %2793 = vmatpush.msrb.mxu1 %v2746_v50 }
 0x37a   :  { %2822 = vmatpush.msra.mxu2 %v2732_v32  ;;  %2775 = vmatpush.msrb.mxu0 %v2728_v24 }
 0x37b   :  { %2838 = vmatpush.msra.mxu3 %v2752_v26  ;;  %2794 = vmatpush.msrb.mxu1 %v2745_v31 }
 0x37c   :  { %2823 = vmatpush.msra.mxu2 %v2731_v23  ;;  %2903 = vmatpush.msra.mxu0 %v2883_v19  ;;  %v3107_v19 = vld [vmem:[%s5991_s30 + $0x20] sm:$0xff] }
 0x37d   :  { %2839 = vmatpush.msra.mxu3 %v2751_v27  ;;  %2795 = vmatpush.msrb.mxu1 %v2744_v54  ;;  %v4937_v27 = vld [vmem:[#allocation14 + $0x38] sm:$0xff] }
 0x37e   :  { %2824 = vmatpush.msra.mxu2 %v2730_v34  ;;  %2904 = vmatpush.msra.mxu0 %v2881_v15 }
 0x37f   :  { %2840 = vmatpush.msra.mxu3 %v2750_v56  ;;  %2923 = vmatpush.msra.mxu1 %v2884_v21  ;;  %v4945_v56 = vld [vmem:[#allocation14 + $0x78] sm:$0xff] }
 0x380   :  { %2825 = vmatpush.msra.mxu2 %v2729_v37 }
 0x381   :  { %2841 = vmatpush.msra.mxu3 %v2749_v45  ;;  %2924 = vmatpush.msra.mxu1 %v2882_v57 }
 0x382   :  { %2826 = vmatpush.msra.mxu2 %v2728_v24 }
 0x383   :  { %2842 = vmatpush.msra.mxu3 %v2748_v42  ;;  %v4936_v42 = vld [vmem:[#allocation14 + $0x30] sm:$0xff] }
 0x384   :  { %3077 = vmatpush.bf16.msrb.mxu2 %v4937_v27  ;;  %v5005_v27 = vld [vmem:[%s5992_s26] ss:$0 sm:$0xff] }
 0x385   :  { %2843 = vmatpush.msra.mxu3 %v2747_v28  ;;  %v4944_v28 = vld [vmem:[#allocation14 + $0x70] sm:$0xff] }
 0x387   :  { %2844 = vmatpush.msra.mxu3 %v2746_v50  ;;  %v4943_v50 = vld [vmem:[#allocation14 + $0x68] sm:$0xff] }
 0x388   :  { %3078 = vmatpush.bf16.msrb.mxu2 %v4936_v42 }
 0x389   :  { %2845 = vmatpush.msra.mxu3 %v2745_v31  ;;  %v4934_v31 = vld [vmem:[#allocation14 + $0x20] sm:$0xff] }
 0x38b   :  { %2846 = vmatpush.msra.mxu3 %v2744_v54 }
 0x38d   :  { %3090 = vmatpush.bf16.msrb.mxu3 %v4945_v56 }
 0x391   :  { %3091 = vmatpush.bf16.msrb.mxu3 %v4944_v28 }
 0x395   :  { %3092 = vmatpush.bf16.msrb.mxu3 %v4943_v50 }
 0x399   :  { %3093 = vmatpush.bf16.msrb.mxu3 %v4942_v51 }
 0x3d7   :  { %v2633_v41 = vpop.f32.mrf.mxu0  ;;  %v2646_v48 = vpop.f32.mrf.mxu1 }
 0x3d8   :  { %v2634_v44 = vadd.f32 %v2633_v41, %v2300_v39  ;;  %v4933_v39 = vld [vmem:[#allocation14 + $0x18] sm:$0xff] }
 0x3da   :  { %v2647_v47 = vadd.f32 %v2646_v48, %v2634_v44  ;;  %v4935_v48 = vld [vmem:[#allocation14 + $0x28] sm:$0xff] }
 0x3db   :  { %3079 = vmatpush.bf16.msrb.mxu2 %v4935_v48 }
 0x3df   :  { %v2635_v36 = vpop.f32.mrf.mxu0  ;;  %v2648_v35 = vpop.f32.mrf.mxu1  ;;  %3080 = vmatpush.bf16.msrb.mxu2 %v4934_v31 }
 0x3e3   :  { %3081 = vmatpush.bf16.msrb.mxu2 %v4933_v39  ;;  %v3202_v39 = vld [vmem:[%s5993_s1 + $0x18] sm:$0xff] }
 0x3e4   :  { %v2659_v40 = vpop.f32.mrf.mxu2 }
 0x3e5   :  { %v2660_v49 = vadd.f32 %v2659_v40, %v2647_v47  ;;  %v4941_v40 = vld [vmem:[#allocation14 + $0x58] sm:$0xff] }
 0x3e6   :  { %3094 = vmatpush.bf16.msrb.mxu3 %v4941_v40  ;;  %v3201_v40 = vld [vmem:[%s5993_s1 + $0x10] sm:$0xff] }
 0x3e7   :  { %v2685_v43 = vpop.f32.mrf.mxu0  ;;  %v2698_v46 = vpop.f32.mrf.mxu1 }
 0x3e8   :  { %v2686_v0 = vadd.f32 %v2685_v43, %v2301_v30 }
 0x3ea   :  { %v2699_v1 = vadd.f32 %v2698_v46, %v2686_v0  ;;  %v2861_v46 = vld [vmem:[%s5989_s21] sm:$0x1]  ;;  %v4931_v0 = vld [vmem:[#allocation14 + $0x8] sm:$0xff] }
 0x3ec   :  { %v2661_v52 = vpop.f32.mrf.mxu2  ;;  %v2672_v53 = vpop.f32.mrf.mxu3 }
 0x3ed   :  { %v5903_v55 = vadd.f32 %v2672_v53, %v2660_v49  ;;  %v2874_v53 = vld [vmem:[%s5990_s29] sm:$0x1] }
 0x3ef   :  { %v2809_v58 = vmul.f32 %v5903_v55, %v5903_v55  ;;  %2776 = vmatmul.f32.vlgmr.msrb.gmra.mxu0 %v5903_v55  ;;  %v2687_v20 = vpop.f32.mrf.mxu0  ;;  %v2700_v59 = vpop.f32.mrf.mxu1 }
 0x3f1   :  { %2827 = vmatmul.f32.vlgmr.msra.gmra.mxu2 %v2809_v58 }
 0x3f4   :  { %v2674_v60 = vpop.f32.mrf.mxu3  ;;  %v2711_v61 = vpop.f32.mrf.mxu2 }
 0x3f5   :  { %v2712_v2 = vadd.f32 %v2711_v61, %v2699_v1  ;;  %v4932_v60 = vld [vmem:[#allocation14 + $0x10] sm:$0xff]  ;;  %v4939_v1 = vld [vmem:[#allocation14 + $0x48] sm:$0xff] }
 0x3f6   :  { %v4940_v61 = vld [vmem:[#allocation14 + $0x50] sm:$0xff]  ;;  %3082 = vmatpush.bf16.msrb.mxu2 %v4932_v60 }
 0x3f7   :  { %3095 = vmatpush.bf16.msrb.mxu3 %v4940_v61 }
 0x3fa   :  { %3083 = vmatpush.bf16.msrb.mxu2 %v4931_v0 }
 0x3fb   :  { %3096 = vmatpush.bf16.msrb.mxu3 %v4939_v1 }
 0x3fc   :  { %v2713_v3 = vpop.f32.mrf.mxu2  ;;  %v2724_v4 = vpop.f32.mrf.mxu3 }
 0x3fd   :  { %v5908_v5 = vadd.f32 %v2724_v4, %v2712_v2  ;;  %v4930_v2 = vld [vmem:[#allocation14] sm:$0xff]  ;;  %v3118_v4 = vld [vmem:[%s5991_s30 + $0x78] sm:$0xff] }
 0x3fe   :  { %v4938_v3 = vld [vmem:[#allocation14 + $0x40] sm:$0xff]  ;;  %3084 = vmatpush.bf16.msrb.mxu2 %v4930_v2  ;;  %3119 = vmatpush.msrb.mxu0 %v3118_v4 }
 0x3ff   :  { %v2810_v6 = vmul.f32 %v5908_v5, %v5908_v5  ;;  %2796 = vmatmul.f32.vlgmr.msrb.gmra.mxu1 %v5908_v5  ;;  %3097 = vmatpush.bf16.msrb.mxu3 %v4938_v3  ;;  %v4953_v3 = vld [vmem:[#allocation15 + $0x38] sm:$0xff] }
 0x400   :  { %3149 = vmatpush.msrb.mxu1 %v3118_v4 }
 0x401   :  { %2847 = vmatmul.f32.vlgmr.msra.gmra.mxu3 %v2810_v6  ;;  %v3117_v6 = vld [vmem:[%s5991_s30 + $0x70] sm:$0xff] }
 0x402   :  { %3120 = vmatpush.msrb.mxu0 %v3117_v6  ;;  %3150 = vmatpush.msrb.mxu1 %v3117_v6  ;;  %v4952_v6 = vld [vmem:[#allocation15 + $0x30] sm:$0xff] }
 0x403   :  { %3303 = vmatpush.bf16.msra.mxu2 %v4953_v3 }
 0x404   :  { %v2726_v8 = vpop.f32.mrf.mxu3 }
 0x405   :  { %v3116_v8 = vld [vmem:[%s5991_s30 + $0x68] sm:$0xff] }
 0x406   :  { %3121 = vmatpush.msrb.mxu0 %v3116_v8  ;;  %3151 = vmatpush.msrb.mxu1 %v3116_v8 }
 0x407   :  { %3304 = vmatpush.bf16.msra.mxu2 %v4952_v6  ;;  %v3413_v6 = vld [vmem:[#allocation18 + $0x10] sm:$0xff] }
 0x46c   :  { %v2777_v9 = vpop.f32.mrf.mxu0 }
 0x474   :  { %v2828_v14 = vpop.f32.mrf.mxu2 }
 0x47c   :  { %v2797_v17 = vpop.f32.mrf.mxu1 }
 0x47d   :  { %v2798_v10 = vadd.f32 %v2797_v17, %v2777_v9  ;;  %v3115_v9 = vld [vmem:[%s5991_s30 + $0x60] sm:$0xff]  ;;  %v3114_v17 = vld [vmem:[%s5991_s30 + $0x58] sm:$0xff] }
 0x47e   :  { %3122 = vmatpush.msrb.mxu0 %v3115_v9  ;;  %3152 = vmatpush.msrb.mxu1 %v3115_v9  ;;  %v4951_v9 = vld [vmem:[#allocation15 + $0x28] sm:$0xff] }
 0x47f   :  { %v2801_v11 = vsel %vm2800_vm14, %v2798_v10, 0.0  ;;  %v3113_v10 = vld [vmem:[%s5991_s30 + $0x50] sm:$0xff]  ;;  %3305 = vmatpush.bf16.msra.mxu2 %v4951_v9 }
 0x480   :  { %v2802_v12 = vrot.slane %v2801_v11, 4  ;;  %3123 = vmatpush.msrb.mxu0 %v3114_v17  ;;  %3153 = vmatpush.msrb.mxu1 %v3114_v17  ;;  %v4950_v17 = vld [vmem:[#allocation15 + $0x20] sm:$0xff] }
 0x482   :  { %v2803_v13 = vadd.f32 %v2802_v12, %v2801_v11  ;;  %v3112_v11 = vld [vmem:[%s5991_s30 + $0x48] sm:$0xff]  ;;  %3124 = vmatpush.msrb.mxu0 %v3113_v10  ;;  %3154 = vmatpush.msrb.mxu1 %v3113_v10  ;;  %v3111_v12 = vld [vmem:[%s5991_s30 + $0x40] sm:$0xff] }
 0x483   :  { %3306 = vmatpush.bf16.msra.mxu2 %v4950_v17  ;;  %v3411_v17 = vld [vmem:[#allocation18] sm:$0xff] }
 0x484   :  { %v2804_v16 = vrot.slane %v2803_v13, 2  ;;  %v2848_v63 = vpop.f32.mrf.mxu3  ;;  %3125 = vmatpush.msrb.mxu0 %v3112_v11  ;;  %3155 = vmatpush.msrb.mxu1 %v3112_v11 }
 0x485   :  { %v2849_v18 = vadd.f32 %v2848_v63, %v2828_v14  ;;  %v3109_v14 = vld [vmem:[%s5991_s30 + $0x30] sm:$0xff] }
 0x486   :  { %v2805_v29 = vadd.f32 %v2804_v16, %v2803_v13  ;;  %v3110_v13 = vld [vmem:[%s5991_s30 + $0x38] sm:$0xff]  ;;  %3126 = vmatpush.msrb.mxu0 %v3111_v12  ;;  %3156 = vmatpush.msrb.mxu1 %v3111_v12  ;;  %v3108_v16 = vld [vmem:[%s5991_s30 + $0x28] sm:$0xff] }
 0x487   :  { %v2851_v62 = vsel %vm2800_vm14, %v2849_v18, 0.0 }
 0x488   :  { %v2806_v7 = vrot.slane %v2805_v29, 1  ;;  %v2852_v32 = vrot.slane %v2851_v62, 4  ;;  %3127 = vmatpush.msrb.mxu0 %v3110_v13  ;;  %3157 = vmatpush.msrb.mxu1 %v3110_v13  ;;  %v4949_v13 = vld [vmem:[#allocation15 + $0x18] sm:$0xff] }
 0x489   :  { %3307 = vmatpush.bf16.msra.mxu2 %v4949_v13 }
 0x48a   :  { %v2853_v33 = vadd.f32 %v2852_v32, %v2851_v62  ;;  %v2807_v23 = vadd.f32 %v2806_v7, %v2805_v29  ;;  %3128 = vmatpush.msrb.mxu0 %v3109_v14  ;;  %3158 = vmatpush.msrb.mxu1 %v3109_v14  ;;  %v3106_v29 = vld [vmem:[%s5991_s30 + $0x18] sm:$0xff] }
 0x48c   :  { %v2854_v22 = vrot.slane %v2853_v33, 2  ;;  %v2808_v25 = vmul.f32 0.03125, %v2807_v23  ;;  %3129 = vmatpush.msrb.mxu0 %v3108_v16  ;;  %3159 = vmatpush.msrb.mxu1 %v3108_v16 }
 0x48e   :  { %v2855_v34 = vadd.f32 %v2854_v22, %v2853_v33  ;;  %v2859_v24 = vmul.f32 %v2808_v25, %v2808_v25  ;;  %3130 = vmatpush.msrb.mxu0 %v3107_v19  ;;  %3160 = vmatpush.msrb.mxu1 %v3107_v19 }
 0x490   :  { %v2856_v37 = vrot.slane %v2855_v34, 1  ;;  %3131 = vmatpush.msrb.mxu0 %v3106_v29  ;;  %3161 = vmatpush.msrb.mxu1 %v3106_v29 }
 0x492   :  { %v2857_v38 = vadd.f32 %v2856_v37, %v2855_v34 }
 0x494   :  { %v2858_v26 = vmul.f32 0.03125, %v2857_v38 }
 0x496   :  { %v2860_v45 = vsub.f32 %v2858_v26, %v2859_v24  ;;  %v3104_v24 = vld [vmem:[%s5991_s30 + $0x8] sm:$0xff]  ;;  %v3103_v26 = vld [vmem:[%s5991_s30] sm:$0xff] }
 0x498   :  { %v2862_v41 = vadd.f32 1e-05, %v2860_v45 }
 0x49a   :  { %5011 = vrsqrt.f32 %v2862_v41  ;;  %vm2869_vm0 = vweird.f32 %v2862_v41 }
 0x4a0   :  { %v5012_v54 = vpop.eup %5011 }
 0x4a1   :  { %v2864_v36 = vmul.f32 %v5012_v54, %v2862_v41  ;;  %vm2870_vm15 = vweird.f32 %v5012_v54 }
 0x4a2   :  { %vm2871_vm1 = vmor %vm2869_vm0, %vm2870_vm15 }
 0x4a3   :  { %v2865_v35 = vmul.f32 %v5012_v54, %v2864_v36 }
 0x4a5   :  { %v2866_v44 = vmul.f32 0.5, %v2865_v35 }
 0x4a7   :  { %v2867_v43 = vsub.f32 1.5, %v2866_v44 }
 0x4a9   :  { %v2868_v47 = vmul.f32 %v5012_v54, %v2867_v43 }
 0x4ab   :  { %v2872_v49 = vsel %vm2871_vm1, %v5012_v54, %v2868_v47 }
 0x4ac   :  { %v2873_v52 = vmul.f32 %v2872_v49, %v2861_v46  ;;  %v3200_v46 = vld [vmem:[%s5993_s1 + $0x8] sm:$0xff] }
 0x4ae   :  { %v2875_v58 = vmul.f32 %v2873_v52, %v2808_v25 }
 0x4b0   :  { %v2876_v20 = vsub.f32 %v2874_v53, %v2875_v58 }
 0x4b2   :  { %v2878_v59 = vperm.slane %v2876_v20, 0 }
 0x4b4   :  { %v2880_v30 = vsel %vm2112_vm8, %v2873_v52, %v2878_v59  ;;  %v3199_v52 = vld [vmem:[%s5993_s1] sm:$0xff] }
 0x4b5   :  { %4571 = vmatmul.msk.f32.vlgmr.msra.gmra.mxu0 %vm2885_vm2, %v2880_v30  ;;  %4572 = vmatmul.msk.f32.vlgmr.msra.gmra.mxu1 %vm2885_vm2, %v2880_v30 }
 0x532   :  { %v2906_v63 = vpop.f32.mrf.mxu0  ;;  %v2926_v18 = vpop.f32.mrf.mxu1 }
 0x533   :  { %v2929_v21 = vperm.slane %v2906_v63, 0  ;;  %v2930_v15 = vperm.slane %v2926_v18, 0  ;;  %v2933_v62 = vperm.slane %v2906_v63, 1  ;;  %v2934_v32 = vperm.slane %v2926_v18, 1  ;;  %v3179_v63 = vld [vmem:[%s5994_s10] sm:$0x1] }
 0x535   :  { %v2931_v57 = vmul.f32 %v2929_v21, %v5903_v55  ;;  %v2932_v7 = vmul.f32 %v2930_v15, %v5908_v5  ;;  %v3105_v5 = vld [vmem:[%s5991_s30 + $0x10] sm:$0xff]  ;;  %v3192_v15 = vld [vmem:[%s5995_s18] sm:$0x1] }
 0x536   :  { %3132 = vmatpush.msrb.mxu0 %v3105_v5  ;;  %3162 = vmatpush.msrb.mxu1 %v3105_v5  ;;  %v3317_v5 = vld [vmem:[#allocation17 + $0x8] sm:$0xff] }
 0x537   :  { %v2935_v33 = vadd.f32 %v2933_v62, %v2931_v57  ;;  %v2936_v23 = vadd.f32 %v2934_v32, %v2932_v7  ;;  %v4948_v32 = vld [vmem:[#allocation15 + $0x10] sm:$0xff] }
 0x538   :  { %3133 = vmatpush.msrb.mxu0 %v3104_v24  ;;  %3163 = vmatpush.msrb.mxu1 %v3104_v24 }
 0x539   :  { %vm2937_vm3 = vcmp.ge.f32.partialorder %v2935_v33, 0.0  ;;  %v2939_v22 = vmul.f32 0.2, %v2935_v33  ;;  %vm2938_vm4 = vcmp.ge.f32.partialorder %v2936_v23, 0.0  ;;  %v2940_v34 = vmul.f32 0.2, %v2936_v23  ;;  %3308 = vmatpush.bf16.msra.mxu2 %v4948_v32 }
 0x53a   :  { %3134 = vmatpush.msrb.mxu0 %v3103_v26  ;;  %3164 = vmatpush.msrb.mxu1 %v3103_v26 }
 0x53b   :  { %v2941_v25 = vsel %vm2937_vm3, %v2935_v33, %v2939_v22  ;;  %v2942_v55 = vsel %vm2938_vm4, %v2936_v23, %v2940_v34  ;;  %v4947_v33 = vld [vmem:[#allocation15 + $0x8] sm:$0xff]  ;;  %v4946_v23 = vld [vmem:[#allocation15] sm:$0xff]  ;;  %v3323_v22 = vld [vmem:[#allocation17 + $0x38] sm:$0xff]  ;;  %vm3484_vm3 = vcmask 0  }
 0x53c   :  { %v2943_v37 = vpack.c.bf16 %v2941_v25, %v2941_v25  ;;  %v2944_v38 = vpack.c.bf16 %v2942_v55, %v2942_v55  ;;  %3219 = vmatpush.msra.mxu0 %v3202_v39  ;;  %v3322_v34 = vld [vmem:[#allocation17 + $0x30] sm:$0xff]  ;;  %3336 = vmatpush.msra.mxu3 %v3323_v22  ;;  %v3321_v25 = vld [vmem:[#allocation17 + $0x28] sm:$0xff]  ;;  %v3320_v55 = vld [vmem:[#allocation17 + $0x20] sm:$0xff] }
 0x53d   :  { %3309 = vmatpush.bf16.msra.mxu2 %v4947_v33  ;;  %3369 = vmatpush.msra.mxu1 %v3323_v22 }
 0x53e   :  { %3085 = vmatmul.bf16.vlgmr.msrb.gmra.mxu2 %v2943_v37  ;;  %3098 = vmatmul.bf16.vlgmr.msrb.gmra.mxu3 %v2944_v38  ;;  %v3319_v37 = vld [vmem:[#allocation17 + $0x18] sm:$0xff]  ;;  %v3318_v38 = vld [vmem:[#allocation17 + $0x10] sm:$0xff] }
 0x53f   :  { %3220 = vmatpush.msra.mxu0 %v3201_v40  ;;  %3337 = vmatpush.msra.mxu3 %v3322_v34 }
 0x540   :  { %3370 = vmatpush.msra.mxu1 %v3322_v34 }
 0x541   :  { %3221 = vmatpush.msra.mxu0 %v3200_v46  ;;  %3310 = vmatpush.bf16.msra.mxu2 %v4946_v23 }
 0x542   :  { %3338 = vmatpush.msra.mxu3 %v3321_v25  ;;  %3371 = vmatpush.msra.mxu1 %v3321_v25 }
 0x543   :  { %3222 = vmatpush.msra.mxu0 %v3199_v52  ;;  %v3418_v52 = vld [vmem:[#allocation18 + $0x38] sm:$0xff] }
 0x544   :  { %3339 = vmatpush.msra.mxu3 %v3320_v55  ;;  %3372 = vmatpush.msra.mxu1 %v3320_v55 }
 0x546   :  { %3340 = vmatpush.msra.mxu3 %v3319_v37  ;;  %3373 = vmatpush.msra.mxu1 %v3319_v37 }
 0x548   :  { %3341 = vmatpush.msra.mxu3 %v3318_v38  ;;  %3374 = vmatpush.msra.mxu1 %v3318_v38  ;;  %v5007_v38 = vld [vmem:[%s5489_s24] ss:$0 sm:$0xff]  ;;  %s5345_s24 = smov [#allocation20]  }
 0x549   :  { %s3493_s4 = sshll.u32 %s5345_s24, 4  ;;  %s3494_s4 = int_to_ptr.vmem [resolvable:$true] %s3493_s4 }
 0x54a   :  { %3342 = vmatpush.msra.mxu3 %v3317_v5  ;;  %3375 = vmatpush.msra.mxu1 %v3317_v5 }
 0x5c1   :  { %v3086_v56 = vpop.f32.mrf.mxu2  ;;  %v3099_v45 = vpop.f32.mrf.mxu3 }
 0x5c2   :  { %v3087_v42 = vadd.f32 %v5005_v27, %v3086_v56 }
 0x5c4   :  { %v5937_v28 = vadd.f32 %v3099_v45, %v3087_v42 }
 0x5c6   :  { %v3148_v41 = vmul.f32 %v5937_v28, %v5937_v28  ;;  %3135 = vmatmul.f32.vlgmr.msrb.gmra.mxu0 %v5937_v28 }
 0x5c7   :  { %3430 = vmatpush.msrb.mxu0 %v3418_v52 }
 0x5c8   :  { %3165 = vmatmul.f32.vlgmr.msrb.gmra.mxu1 %v3148_v41 }
 0x5c9   :  { %v3088_v48 = vpop.f32.mrf.mxu2  ;;  %v3101_v50 = vpop.f32.mrf.mxu3 }
 0x5ca   :  { %v3316_v50 = vld [vmem:[#allocation17] sm:$0xff] }
 0x5cb   :  { %3343 = vmatpush.msra.mxu3 %v3316_v50  ;;  %3376 = vmatpush.msra.mxu1 %v3316_v50 }
 0x643   :  { %v3136_v31 = vpop.f32.mrf.mxu0 }
 0x644   :  { %v3140_v51 = vsel %vm3139_vm5, %v3136_v31, 0.0  ;;  %v5006_v31 = vld [vmem:[%s5996_s22] ss:$0 sm:$0xff] }
 0x645   :  { %v3141_v54 = vrot.slane %v3140_v51, 4  ;;  %v3166_v36 = vpop.f32.mrf.mxu1 }
 0x646   :  { %v3169_v35 = vsel %vm3139_vm5, %v3166_v36, 0.0 }
 0x647   :  { %v3142_v44 = vadd.f32 %v3141_v54, %v3140_v51  ;;  %v3170_v43 = vrot.slane %v3169_v35, 4 }
 0x649   :  { %v3143_v47 = vrot.slane %v3142_v44, 2  ;;  %v3171_v49 = vadd.f32 %v3170_v43, %v3169_v35 }
 0x64b   :  { %v3144_v53 = vadd.f32 %v3143_v47, %v3142_v44  ;;  %v3172_v58 = vrot.slane %v3171_v49, 2 }
 0x64d   :  { %v3145_v20 = vrot.slane %v3144_v53, 1  ;;  %v3173_v59 = vadd.f32 %v3172_v58, %v3171_v49 }
 0x64f   :  { %v3146_v30 = vadd.f32 %v3145_v20, %v3144_v53  ;;  %v3174_v60 = vrot.slane %v3173_v59, 1  ;;  %v3417_v20 = vld [vmem:[#allocation18 + $0x30] sm:$0xff] }
 0x650   :  { %3431 = vmatpush.msrb.mxu0 %v3417_v20 }
 0x651   :  { %v3147_v61 = vmul.f32 0.125, %v3146_v30  ;;  %v3175_v0 = vadd.f32 %v3174_v60, %v3173_v59  ;;  %v3416_v30 = vld [vmem:[#allocation18 + $0x28] sm:$0xff] }
 0x652   :  { %3432 = vmatpush.msrb.mxu0 %v3416_v30 }
 0x653   :  { %v3177_v1 = vmul.f32 %v3147_v61, %v3147_v61  ;;  %v3176_v2 = vmul.f32 0.125, %v3175_v0  ;;  %v3415_v0 = vld [vmem:[#allocation18 + $0x20] sm:$0xff] }
 0x654   :  { %3433 = vmatpush.msrb.mxu0 %v3415_v0 }
 0x655   :  { %v3178_v4 = vsub.f32 %v3176_v2, %v3177_v1  ;;  %v3414_v2 = vld [vmem:[#allocation18 + $0x18] sm:$0xff] }
 0x656   :  { %3434 = vmatpush.msrb.mxu0 %v3414_v2 }
 0x657   :  { %v3180_v8 = vadd.f32 1e-05, %v3178_v4 }
 0x658   :  { %3435 = vmatpush.msrb.mxu0 %v3413_v6 }
 0x659   :  { %5013 = vrsqrt.f32 %v3180_v8  ;;  %vm3187_vm7 = vweird.f32 %v3180_v8 }
 0x65f   :  { %v5014_v10 = vpop.eup %5013 }
 0x660   :  { %v3182_v11 = vmul.f32 %v5014_v10, %v3180_v8  ;;  %vm3188_vm6 = vweird.f32 %v5014_v10  ;;  %v3412_v8 = vld [vmem:[#allocation18 + $0x8] sm:$0xff] }
 0x661   :  { %vm3189_vm9 = vmor %vm3187_vm7, %vm3188_vm6  ;;  %3436 = vmatpush.msrb.mxu0 %v3412_v8 }
 0x662   :  { %v3183_v12 = vmul.f32 %v5014_v10, %v3182_v11 }
 0x663   :  { %3437 = vmatpush.msrb.mxu0 %v3411_v17 }
 0x664   :  { %v3184_v14 = vmul.f32 0.5, %v3183_v12 }
 0x666   :  { %v3185_v16 = vsub.f32 1.5, %v3184_v14 }
 0x668   :  { %v3186_v18 = vmul.f32 %v5014_v10, %v3185_v16 }
 0x66a   :  { %v3190_v19 = vsel %vm3189_vm9, %v5014_v10, %v3186_v18 }
 0x66b   :  { %v3191_v21 = vmul.f32 %v3190_v19, %v3179_v63 }
 0x66d   :  { %v3193_v29 = vmul.f32 %v3191_v21, %v3147_v61 }
 0x66f   :  { %v3194_v57 = vsub.f32 %v3192_v15, %v3193_v29 }
 0x671   :  { %v3196_v62 = vperm.slane %v3194_v57, 0 }
 0x673   :  { %v3198_v7 = vsel %vm2112_vm8, %v3191_v21, %v3196_v62  ;;  %v3391_v21 = vld [vmem:[%s5997_s8] sm:$0x1] }
 0x674   :  { %4637 = vmatmul.msk.f32.vlgmr.msra.gmra.mxu0 %vm3203_vm10, %v3198_v7  ;;  %v3404_v62 = vld [vmem:[%s5998_s16] sm:$0x1] }
 0x6f1   :  { %v3224_v24 = vpop.f32.mrf.mxu0 }
 0x6f2   :  { %v3227_v26 = vperm.slane %v3224_v24, 0  ;;  %v3229_v56 = vperm.slane %v3224_v24, 1 }
 0x6f4   :  { %v3228_v27 = vmul.f32 %v3227_v26, %v5937_v28 }
 0x6f6   :  { %v3230_v45 = vadd.f32 %v3229_v56, %v3228_v27  ;;  %v5008_v56 = vld [vmem:[#allocation2] ss:$0 sm:$0xff] }
 0x6f8   :  { %vm3231_vm11 = vcmp.ge.f32.partialorder %v3230_v45, 0.0  ;;  %v3232_v42 = vmul.f32 0.2, %v3230_v45 }
 0x6fa   :  { %v3233_v41 = vsel %vm3231_vm11, %v3230_v45, %v3232_v42 }
 0x6fb   :  { %v3234_v48 = vpack.c.bf16 %v3233_v41, %v3233_v41 }
 0x6fd   :  { %3311 = vmatmul.bf16.vlgmr.msra.gmra.mxu2 %v3234_v48 }
 0x780   :  { %v3312_v51 = vpop.f32.mrf.mxu2 }
 0x781   :  { %v5951_v54 = vadd.f32 %v5006_v31, %v3312_v51 }
 0x783   :  { %v3357_v36 = vmul.f32 %v5951_v54, %v5951_v54  ;;  %4670 = vmatmul.msk.f32.vlgmr.msra.gmra.mxu3 %vm3324_vm12, %v5951_v54 }
 0x785   :  { %4671 = vmatmul.msk.f32.vlgmr.msra.gmra.mxu1 %vm3324_vm12, %v3357_v36 }
 0x788   :  { %v3314_v28 = vpop.f32.mrf.mxu2 }
 0x802   :  { %v3378_v35 = vpop.f32.mrf.mxu1 }
 0x803   :  { %v3381_v39 = vsel %vm3348_vm13, %v3378_v35, 0.0 }
 0x804   :  { %v3382_v40 = vrot.slane %v3381_v39, 4 }
 0x806   :  { %v3383_v44 = vadd.f32 %v3382_v40, %v3381_v39  ;;  %v3345_v43 = vpop.f32.mrf.mxu3  ;;  %v5344_v40 = vmov 2.0  }
 0x807   :  { %v3349_v46 = vsel %vm3348_vm13, %v3345_v43, 0.0 }
 0x808   :  { %v3384_v47 = vrot.slane %v3383_v44, 2  ;;  %v3350_v49 = vrot.slane %v3349_v46, 4 }
 0x80a   :  { %v3385_v53 = vadd.f32 %v3384_v47, %v3383_v44  ;;  %v3351_v58 = vadd.f32 %v3350_v49, %v3349_v46 }
 0x80c   :  { %v3352_v59 = vrot.slane %v3351_v58, 2  ;;  %v3386_v60 = vrot.slane %v3385_v53, 1 }
 0x80e   :  { %v3353_v61 = vadd.f32 %v3352_v59, %v3351_v58  ;;  %v3387_v3 = vadd.f32 %v3386_v60, %v3385_v53 }
 0x810   :  { %v3354_v1 = vrot.slane %v3353_v61, 1  ;;  %v3388_v10 = vmul.f32 0.5, %v3387_v3 }
 0x812   :  { %v3355_v4 = vadd.f32 %v3354_v1, %v3353_v61 }
 0x814   :  { %v3356_v9 = vmul.f32 0.5, %v3355_v4 }
 0x816   :  { %v3389_v11 = vmul.f32 %v3356_v9, %v3356_v9 }
 0x818   :  { %v3390_v12 = vsub.f32 %v3388_v10, %v3389_v11 }
 0x81a   :  { %v3392_v13 = vadd.f32 1e-05, %v3390_v12 }
 0x81c   :  { %5015 = vrsqrt.f32 %v3392_v13  ;;  %vm3399_vm15 = vweird.f32 %v3392_v13 }
 0x81d   :  { %5017 = vrcp.f32 %v5344_v40 }
 0x822   :  { %v5016_v14 = vpop.eup %5015 }
 0x823   :  { %v3394_v16 = vmul.f32 %v5016_v14, %v3392_v13  ;;  %vm3400_vm14 = vweird.f32 %v5016_v14  ;;  %v5018_v44 = vpop.eup %5017 }
 0x824   :  { %vm3401_vm0 = vmor %vm3399_vm15, %vm3400_vm14  ;;  %v3477_v43 = vmul.f32 2.0, %v5018_v44  ;;  %vm3481_vm2 = vweird.f32 %v5018_v44 }
 0x825   :  { %v3395_v63 = vmul.f32 %v5016_v14, %v3394_v16 }
 0x826   :  { %v3478_v46 = vsub.f32 1.0, %v3477_v43 }
 0x827   :  { %v3396_v18 = vmul.f32 0.5, %v3395_v63 }
 0x828   :  { %v3479_v47 = vmul.f32 %v5018_v44, %v3478_v46 }
 0x829   :  { %v3397_v19 = vsub.f32 1.5, %v3396_v18 }
 0x82a   :  { %v3480_v49 = vadd.f32 %v5018_v44, %v3479_v47 }
 0x82b   :  { %v3398_v15 = vmul.f32 %v5016_v14, %v3397_v19 }
 0x82c   :  { %v3482_v52 = vsel %vm3481_vm2, %v5018_v44, %v3480_v49 }
 0x82d   :  { %v3402_v29 = vsel %vm3401_vm0, %v5016_v14, %v3398_v15 }
 0x82e   :  { %v3403_v57 = vmul.f32 %v3402_v29, %v3391_v21 }
 0x830   :  { %v3405_v7 = vmul.f32 %v3403_v57, %v3356_v9 }
 0x832   :  { %v3406_v32 = vsub.f32 %v3404_v62, %v3405_v7 }
 0x834   :  { %v3408_v33 = vperm.slane %v3406_v32, 0 }
 0x836   :  { %v3410_v23 = vsel %vm2112_vm8, %v3403_v57, %v3408_v33  ;;  %vm3464_vm8 = vcmask 1024  }
 0x837   :  { %4672 = vmatmul.msk.f32.vlgmr.msrb.gmra.mxu0 %vm3324_vm12, %v3410_v23 }
 0x8b4   :  { %v3439_v22 = vpop.f32.mrf.mxu0 }
 0x8b5   :  { %v3442_v34 = vperm.slane %v3439_v22, 0  ;;  %v3444_v55 = vperm.slane %v3439_v22, 1 }
 0x8b7   :  { %v3443_v25 = vmul.f32 %v3442_v34, %v5951_v54 }
 0x8b9   :  { %v3445_v37 = vadd.f32 %v3444_v55, %v3443_v25 }
 0x8bb   :  { %v3447_v5 = vmul.f32 0.2, %v3445_v37  ;;  %vm3446_vm1 = vcmp.ge.f32.partialorder %v3445_v37, 0.0 }
 0x8bd   :  { %v3448_v24 = vsel %vm3446_vm1, %v3445_v37, %v3447_v5 }
 0x8be   :  { %v3453_v26 = vmul.f32 %v5007_v38, %v3448_v24 }
 0x8c0   :  { %v3454_v27 = vsel %vm3348_vm13, %v3453_v26, 0.0 }
 0x8c1   :  { %3455 = vadd.xlane.f32.xlu0 %v3454_v27 }
 0x934   :  { %v3456_v45 = vpop.xlane.xlu0 %3455 }
 0x935   :  { %v3461_v42 = vadd.f32 %v5008_v56, %v3456_v45 }
 0x937   :  { %v4673_v41 = vadd.f32 -1.0, %v3461_v42 }
 0x939   :  { %v3463_v48 = vmul.f32 %v4673_v41, %v4673_v41 }
 0x93b   :  { %v3465_v50 = vsel %vm3464_vm8, %v3463_v48, 0.0 }
 0x93c   :  { %3466 = vadd.xlane.f32.xlu0 %v3465_v50 }
 0x9af   :  { %v3467_v31 = vpop.xlane.xlu0 %3466 }
 0x9b0   :  { %v3468_v51 = vrot.slane %v3467_v31, 4 }
 0x9b2   :  { %v3469_v54 = vadd.f32 %v3468_v51, %v3467_v31 }
 0x9b4   :  { %v3470_v36 = vrot.slane %v3469_v54, 2 }
 0x9b6   :  { %v3471_v28 = vadd.f32 %v3470_v36, %v3469_v54 }
 0x9b8   :  { %v3472_v35 = vrot.slane %v3471_v28, 1 }
 0x9ba   :  { %v3473_v39 = vadd.f32 %v3472_v35, %v3471_v28 }
 0x9bc   :  { %4954 = vpush %v3473_v39 }
 0x9ed   :  { %s4955_s6 = spop %4954 }
 0x9ee   :  { %v3475_v53 = vstv %s4955_s6 }
 0x9ef   :  { %v3483_v58 = vmul.f32 %v3482_v52, %v3475_v53 }
 0x9f1   :  { %3485 = vst.msk [vmem:[#allocation20] sm:$0x1] %vm3484_vm3, %v3483_v58 }
 0x9f2   :  { %5282 = shalt.err (!%p5279_p12)
}
 0x9f3   :  { %3498 = dma.vmem_to_hbm [thread:$0]  %s3494_s4, 16, %s3496_s14, [#allocation5]  }
 0x9f4   :  { %5295 = dma.done.wait [#allocation5], 16  }
 0x9f5   :  { %5296 = vsyncadd [#allocation5], 4294967280 }
 0x9f6   :  { %3505 = vsyncpa [#allocation4], 1 }
 0x9f7   :  { %3506 = vsyncpa [#allocation7], 1 }
 0x9f8   :  { %3507 = vsyncpa [#allocation10], 1 }
 0x9f9   :  { %3508 = vsyncpa [#allocation13], 1 }
 0x9fa   :  { %3509 = vsyncpa [#allocation16], 1 }
 0x9fb   :  { %3510 = vsyncpa [#allocation19], 1 }
 0x9fc   :  { %3511 = vsyncpa [#allocation5], 1 }

</bundles_post_ra>
